<compile_context>
chip_gen: v7x
topology: tpu7x:2x2x1
jax: 0.10.0
libtpu: 0.0.40
codegen_flags: <defaults>
</compile_context>

<pallas_src>
import jax
import jax.numpy as jnp
from jax.experimental import pallas as pl
from jax.experimental.pallas import tpu as pltpu


def _round_up(n, m):
    return (n + m - 1) // m * m


def _vmem_limit_bytes():
    """Generation-aware VMEM budget: ~3/4 of physical, capped at 100 MiB
    (v5e/v6e: 128 MiB physical -> ~96-100 MiB; v7x: 64 MiB -> 48 MiB)."""
    try:
        phys = pltpu.get_tpu_info().vmem_capacity_bytes
    except Exception:
        phys = 128 * 1024 * 1024
    return int(min(phys * 3 // 4, 100 * 1024 * 1024))


def _choose_query_tile(S_pad, C, vmem_budget, cap=512):
    """Largest 128-multiple divisor of S_pad (<= cap) whose per-step working
    set fits the VMEM budget.  S_pad must already be a multiple of 128."""
    best = 128
    for t in range(128, min(cap, S_pad) + 128, 128):
        if t > S_pad or S_pad % t:
            continue
        est = (4 * C * S_pad * 2          # q/k/v bf16 scratch + x block (bf16)
               + 3 * t * S_pad * 4        # energy + exp/p f32 temporaries
               + t * S_pad * 2            # bf16 attention MXU operand
               + 2 * C * t * (2 + 4))     # pos (bf16) + out (f32), double-buffered
        if est <= vmem_budget:
            best = t
    return best


def _make_mhsa_kernel(C, S, S_pad, tq):
    mask_cols = S_pad > S  # static: only true when S was padded up

    def kernel(x_ref, w_ref, b_ref, pos_ref, o_ref, q_s, k_s, v_s):
        qi = pl.program_id(1)

        # q/k/v projections: computed once per batch element (qi == 0) into
        # persistent VMEM scratch and reused by the remaining nq-1 steps.
        # Three separate (C,C)@(C,S) dots -> f32 bias add -> immediate bf16
        # cast; no f32 (3C,S) slab and no sublane slicing of results.
        @pl.when(qi == 0)
        def _():
            x = x_ref[0]                                    # (C, S_pad) bf16
            for i, s_ref in enumerate((q_s, k_s, v_s)):
                proj = jnp.dot(w_ref[i], x, preferred_element_type=jnp.float32)
                s_ref[...] = (proj + b_ref[i]).astype(jnp.bfloat16)

        q = q_s[...]                                        # (C, S_pad) bf16
        k = k_s[...]
        # Lane-aligned (free) dynamic slice of the precomputed q -> query tile.
        q0 = pl.multiple_of(qi * tq, 128)
        q_t = q_s[:, pl.ds(q0, tq)]                         # (C, tq)

        # content-content: q_t^T @ k, transpose folded into the MXU.
        cc = jax.lax.dot_general(q_t, k, (((0,), (0,)), ((), ())),
                                 preferred_element_type=jnp.float32)
        # content-position: pos_tile^T @ q; pos kept in (C, S) layout so its
        # (C, tq) tiles are lane-dense.  (Optional v6e fusion of cc+cp into a
        # single 2C-deep contraction is possible when C <= 128.)
        cp = jax.lax.dot_general(pos_ref[...], q, (((0,), (0,)), ((), ())),
                                 preferred_element_type=jnp.float32)
        energy = cc + cp                                    # (tq, S_pad) f32

        if mask_cols:
            col = jax.lax.broadcasted_iota(jnp.int32, energy.shape, 1)
            energy = jnp.where(col < S, energy, -jnp.inf)

        # Softmax in f32 (v5e's EUP has no bf16 exp); approx reciprocal on EUP.
        m = jnp.max(energy, axis=-1, keepdims=True)
        p = jnp.exp(energy - m)
        att = (p * pl.reciprocal(jnp.sum(p, axis=-1, keepdims=True), approx=True)
               ).astype(jnp.bfloat16)

        # out tile: v @ att^T, transpose folded into the MXU.
        out = jax.lax.dot_general(v_s[...], att, (((1,), (1,)), ((), ())),
                                  preferred_element_type=jnp.float32)
        o_ref[0] = out.astype(o_ref.dtype)

    return kernel


def mhsa_forward(x, params, query_tile_cap=512):
    """x: (N, C, W, H) float32.  Returns (N, C, W, H) float32."""
    N, C, W, H = x.shape
    S = W * H
    S_pad = _round_up(max(S, 128), 128)
    vmem_limit = _vmem_limit_bytes()
    tq = _choose_query_tile(S_pad, C, vmem_budget=int(vmem_limit * 0.7),
                            cap=query_tile_cap)
    nq = S_pad // tq

    # --- glue in plain JAX: layout + dtype prep, no hot-path compute --------
    x_flat = x.reshape(N, C, S).astype(jnp.bfloat16)                 # (N, C, S)
    if S_pad != S:
        x_flat = jnp.pad(x_flat, ((0, 0), (0, 0), (0, S_pad - S)))
    w_stack = jnp.stack([params["wq"], params["wk"], params["wv"]]
                        ).astype(jnp.bfloat16)                       # (3, C, C)
    b_stack = jnp.stack([params["bq"], params["bk"], params["bv"]]
                        ).reshape(3, C, 1).astype(jnp.float32)       # (3, C, 1)
    pos = (params["rel_h"] + params["rel_w"]).reshape(C, S).astype(jnp.bfloat16)
    if S_pad != S:
        pos = jnp.pad(pos, ((0, 0), (0, S_pad - S)))                 # (C, S_pad)

    def build_and_run(single_buffer):
        const_kw = dict(pipeline_mode=pl.Buffered(1)) if single_buffer else {}
        # x's block only changes with the batch index; single-buffer it when
        # it is revisited across query tiles, keep double-buffering otherwise.
        x_kw = const_kw if nq > 1 else {}
        in_specs = [
            pl.BlockSpec((1, C, S_pad), lambda b, qi: (b, 0, 0), **x_kw),
            pl.BlockSpec((3, C, C), lambda b, qi: (0, 0, 0), **const_kw),
            pl.BlockSpec((3, C, 1), lambda b, qi: (0, 0, 0), **const_kw),
            pl.BlockSpec((C, tq), lambda b, qi: (0, qi)),
        ]
        out_spec = pl.BlockSpec((1, C, tq), lambda b, qi: (b, 0, qi))
        return pl.pallas_call(
            _make_mhsa_kernel(C, S, S_pad, tq),
            out_shape=jax.ShapeDtypeStruct((N, C, S_pad), jnp.float32),
            grid_spec=pltpu.PrefetchScalarGridSpec(
                num_scalar_prefetch=0,
                grid=(N, nq),
                in_specs=in_specs,
                out_specs=out_spec,
                scratch_shapes=[
                    pltpu.VMEM((C, S_pad), jnp.bfloat16),   # q scratch
                    pltpu.VMEM((C, S_pad), jnp.bfloat16),   # k scratch
                    pltpu.VMEM((C, S_pad), jnp.bfloat16),   # v scratch
                ],
            ),
            compiler_params=pltpu.CompilerParams(
                # Batch axis parallel (megacore / 2 TCs split over N on v7x);
                # query-tile axis 'arbitrary' so the per-batch q/k/v scratch
                # is computed once and legally reused across it.
                dimension_semantics=("parallel", "arbitrary"),
                vmem_limit_bytes=vmem_limit,
            ),
        )(x_flat, w_stack, b_stack, pos)

    try:
        out_flat = jax.block_until_ready(build_and_run(True))
    except Exception:
        # pipeline_mode=pl.Buffered(1) is a pure VMEM-saving hint; fall back
        # to default double-buffering if this build rejects it.
        out_flat = build_and_run(False)

    if S_pad != S:
        out_flat = out_flat[:, :, :S]
    return out_flat.reshape(N, C, W, H)


def mhsa_reference(x, params):
    """Pure-JAX f32 reference mirroring the PyTorch module exactly."""
    N, C, W, H = x.shape
    S = W * H
    xf = x.reshape(N, C, S)
    q = jnp.einsum("oc,ncs->nos", params["wq"], xf) + params["bq"][None, :, None]
    k = jnp.einsum("oc,ncs->nos", params["wk"], xf) + params["bk"][None, :, None]
    v = jnp.einsum("oc,ncs->nos", params["wv"], xf) + params["bv"][None, :, None]
    cc = jnp.einsum("ncs,nct->nst", q, k)
    pos = (params["rel_h"] + params["rel_w"]).reshape(1, C, S)
    cp = jnp.einsum("zsc,nct->nst", jnp.transpose(pos, (0, 2, 1)), q)
    energy = cc + cp
    attention = jax.nn.softmax(energy, axis=-1)
    out = jnp.einsum("nct,nst->ncs", v, attention)
    return out.reshape(N, C, W, H)


def make_params(key, planes, width, height):
    ks = jax.random.split(key, 8)
    f32 = jnp.float32
    # nn.Conv2d(planes, planes, 1) weights have shape (C, C, 1, 1); kept as (C, C).
    return {
        "wq": jax.random.normal(ks[0], (planes, planes), f32) * 0.1,
        "bq": jax.random.normal(ks[1], (planes,), f32) * 0.1,
        "wk": jax.random.normal(ks[2], (planes, planes), f32) * 0.1,
        "bk": jax.random.normal(ks[3], (planes,), f32) * 0.1,
        "wv": jax.random.normal(ks[4], (planes, planes), f32) * 0.1,
        "bv": jax.random.normal(ks[5], (planes,), f32) * 0.1,
        "rel_h": jax.random.normal(ks[6], (1, planes, 1, height), f32),
        "rel_w": jax.random.normal(ks[7], (1, planes, width, 1), f32),
    }


if __name__ == "__main__":
    key = jax.random.PRNGKey(0)
    k_x, k_p = jax.random.split(key)

    N, C, W, H = 2, 4, 16, 16
    x = jax.random.normal(k_x, (N, C, W, H), jnp.float32)
    params = make_params(k_p, planes=C, width=W, height=H)

    out = jax.block_until_ready(mhsa_forward(x, params))
    ref = jax.block_until_ready(mhsa_reference(x, params))

    assert out.shape == (N, C, W, H)
    # Kernel runs its matmuls with bf16 operands (f32 accumulation), so compare
    # against the f32 reference at bf16-appropriate tolerance.
    assert jnp.allclose(out, ref, atol=2e-2, rtol=2e-2), "mismatch vs reference"
    print("KERNEL_OK")
</pallas_src>

<mosaic_0001>
module attributes {stable_mosaic.version = 11 : i64} {
  func.func @kernel(%arg0: i32, %arg1: i32, %arg2: memref<1x4x256xbf16, #tpu.memory_space<vmem>>, %arg3: memref<3x4x4xbf16, #tpu.memory_space<vmem>>, %arg4: memref<3x4x1xf32, #tpu.memory_space<vmem>>, %arg5: memref<4x256xbf16, #tpu.memory_space<vmem>>, %arg6: memref<1x4x256xf32, #tpu.memory_space<vmem>>, %arg7: memref<4x256xbf16, #tpu.memory_space<vmem>>, %arg8: memref<4x256xbf16, #tpu.memory_space<vmem>>, %arg9: memref<4x256xbf16, #tpu.memory_space<vmem>>) attributes {dimension_semantics = [#tpu.dimension_semantics<parallel>, #tpu.dimension_semantics<arbitrary>], iteration_bounds = array<i64: 2, 1>, scalar_prefetch = 0 : i64, scratch_operands = 3 : i64, tpu.core_type = #tpu.core_type<tc>, window_params = [{transform_indices = @transform_0, window_bounds = array<i64: 1, 4, 256>}, {pipeline_mode = #tpu.pipeline_mode<synchronous>, transform_indices = @transform_1, window_bounds = array<i64: 3, 4, 4>}, {pipeline_mode = #tpu.pipeline_mode<synchronous>, transform_indices = @transform_2, window_bounds = array<i64: 3, 4, 1>}, {transform_indices = @transform_3, window_bounds = array<i64: 4, 256>}, {transform_indices = @transform_4, window_bounds = array<i64: 1, 4, 256>}]} {
    %c0_i32 = arith.constant 0 : i32
    %0 = arith.cmpi eq, %arg1, %c0_i32 : i32
    %1 = arith.extui %0 : i1 to i32
    %c0_i32_0 = arith.constant 0 : i32
    %2 = arith.cmpi ne, %1, %c0_i32_0 : i32
    scf.if %2 {
      %c0_16 = arith.constant 0 : index
      %c0_17 = arith.constant 0 : index
      %c0_18 = arith.constant 0 : index
      %29 = vector.load %arg2[%c0_16, %c0_17, %c0_18] : memref<1x4x256xbf16, #tpu.memory_space<vmem>>, vector<1x4x256xbf16>
      %30 = vector.shape_cast %29 : vector<1x4x256xbf16> to vector<4x256xbf16>
      %c0_19 = arith.constant 0 : index
      %c0_20 = arith.constant 0 : index
      %c0_21 = arith.constant 0 : index
      %31 = vector.load %arg3[%c0_19, %c0_20, %c0_21] : memref<3x4x4xbf16, #tpu.memory_space<vmem>>, vector<1x4x4xbf16>
      %32 = vector.shape_cast %31 : vector<1x4x4xbf16> to vector<4x4xbf16>
      %cst_22 = arith.constant dense<0.000000e+00> : vector<4x256xf32>
      %33 = tpu.matmul %32, %30, %cst_22 {dimension_numbers = #tpu.dot_dimension_numbers<[1], [0], [0], [1], [0, 0, 1, 1], [], []>} : vector<4x4xbf16>, vector<4x256xbf16>, vector<4x256xf32> -> vector<4x256xf32>
      %c0_23 = arith.constant 0 : index
      %c0_24 = arith.constant 0 : index
      %c0_25 = arith.constant 0 : index
      %34 = vector.load %arg4[%c0_23, %c0_24, %c0_25] : memref<3x4x1xf32, #tpu.memory_space<vmem>>, vector<1x4x1xf32>
      %35 = vector.shape_cast %34 : vector<1x4x1xf32> to vector<4x1xf32>
      %36 = vector.broadcast %35 : vector<4x1xf32> to vector<4x256xf32>
      %37 = arith.addf %33, %36 : vector<4x256xf32>
      %38 = arith.truncf %37 : vector<4x256xf32> to vector<4x256xbf16>
      %c0_26 = arith.constant 0 : index
      %c0_27 = arith.constant 0 : index
      %39 = vector.load %arg7[%c0_26, %c0_27] : memref<4x256xbf16, #tpu.memory_space<vmem>>, vector<4x256xbf16>
      tpu.vector_store %arg7[%c0_26, %c0_27], %38 {strides = array<i32>} : memref<4x256xbf16, #tpu.memory_space<vmem>>, vector<4x256xbf16>,
      %c1 = arith.constant 1 : index
      %c0_28 = arith.constant 0 : index
      %c0_29 = arith.constant 0 : index
      %40 = vector.load %arg3[%c1, %c0_28, %c0_29] : memref<3x4x4xbf16, #tpu.memory_space<vmem>>, vector<1x4x4xbf16>
      %41 = vector.shape_cast %40 : vector<1x4x4xbf16> to vector<4x4xbf16>
      %cst_30 = arith.constant dense<0.000000e+00> : vector<4x256xf32>
      %42 = tpu.matmul %41, %30, %cst_30 {dimension_numbers = #tpu.dot_dimension_numbers<[1], [0], [0], [1], [0, 0, 1, 1], [], []>} : vector<4x4xbf16>, vector<4x256xbf16>, vector<4x256xf32> -> vector<4x256xf32>
      %c1_31 = arith.constant 1 : index
      %c0_32 = arith.constant 0 : index
      %c0_33 = arith.constant 0 : index
      %43 = vector.load %arg4[%c1_31, %c0_32, %c0_33] : memref<3x4x1xf32, #tpu.memory_space<vmem>>, vector<1x4x1xf32>
      %44 = vector.shape_cast %43 : vector<1x4x1xf32> to vector<4x1xf32>
      %45 = vector.broadcast %44 : vector<4x1xf32> to vector<4x256xf32>
      %46 = arith.addf %42, %45 : vector<4x256xf32>
      %47 = arith.truncf %46 : vector<4x256xf32> to vector<4x256xbf16>
      %c0_34 = arith.constant 0 : index
      %c0_35 = arith.constant 0 : index
      %48 = vector.load %arg8[%c0_34, %c0_35] : memref<4x256xbf16, #tpu.memory_space<vmem>>, vector<4x256xbf16>
      tpu.vector_store %arg8[%c0_34, %c0_35], %47 {strides = array<i32>} : memref<4x256xbf16, #tpu.memory_space<vmem>>, vector<4x256xbf16>,
      %c2 = arith.constant 2 : index
      %c0_36 = arith.constant 0 : index
      %c0_37 = arith.constant 0 : index
      %49 = vector.load %arg3[%c2, %c0_36, %c0_37] : memref<3x4x4xbf16, #tpu.memory_space<vmem>>, vector<1x4x4xbf16>
      %50 = vector.shape_cast %49 : vector<1x4x4xbf16> to vector<4x4xbf16>
      %cst_38 = arith.constant dense<0.000000e+00> : vector<4x256xf32>
      %51 = tpu.matmul %50, %30, %cst_38 {dimension_numbers = #tpu.dot_dimension_numbers<[1], [0], [0], [1], [0, 0, 1, 1], [], []>} : vector<4x4xbf16>, vector<4x256xbf16>, vector<4x256xf32> -> vector<4x256xf32>
      %c2_39 = arith.constant 2 : index
      %c0_40 = arith.constant 0 : index
      %c0_41 = arith.constant 0 : index
      %52 = vector.load %arg4[%c2_39, %c0_40, %c0_41] : memref<3x4x1xf32, #tpu.memory_space<vmem>>, vector<1x4x1xf32>
      %53 = vector.shape_cast %52 : vector<1x4x1xf32> to vector<4x1xf32>
      %54 = vector.broadcast %53 : vector<4x1xf32> to vector<4x256xf32>
      %55 = arith.addf %51, %54 : vector<4x256xf32>
      %56 = arith.truncf %55 : vector<4x256xf32> to vector<4x256xbf16>
      %c0_42 = arith.constant 0 : index
      %c0_43 = arith.constant 0 : index
      %57 = vector.load %arg9[%c0_42, %c0_43] : memref<4x256xbf16, #tpu.memory_space<vmem>>, vector<4x256xbf16>
      tpu.vector_store %arg9[%c0_42, %c0_43], %56 {strides = array<i32>} : memref<4x256xbf16, #tpu.memory_space<vmem>>, vector<4x256xbf16>,
    } else {
    }
    %c0 = arith.constant 0 : index
    %c0_1 = arith.constant 0 : index
    %3 = vector.load %arg7[%c0, %c0_1] : memref<4x256xbf16, #tpu.memory_space<vmem>>, vector<4x256xbf16>
    %c0_2 = arith.constant 0 : index
    %c0_3 = arith.constant 0 : index
    %4 = vector.load %arg8[%c0_2, %c0_3] : memref<4x256xbf16, #tpu.memory_space<vmem>>, vector<4x256xbf16>
    %c256_i32 = arith.constant 256 : i32
    %5 = arith.muli %arg1, %c256_i32 : i32
    %6 = tpu.assume_multiple %5, 128 : i32
    %c0_4 = arith.constant 0 : index
    %7 = arith.index_cast %6 : i32 to index
    %8 = vector.load %arg7[%c0_4, %7] : memref<4x256xbf16, #tpu.memory_space<vmem>>, vector<4x256xbf16>
    %cst = arith.constant dense<0.000000e+00> : vector<256x256xf32>
    %9 = tpu.matmul %8, %4, %cst {dimension_numbers = #tpu.dot_dimension_numbers<[0], [0], [1], [1], [0, 1, 1, 1], [], []>} : vector<4x256xbf16>, vector<4x256xbf16>, vector<256x256xf32> -> vector<256x256xf32>
    %c0_5 = arith.constant 0 : index
    %c0_6 = arith.constant 0 : index
    %10 = vector.load %arg5[%c0_5, %c0_6] : memref<4x256xbf16, #tpu.memory_space<vmem>>, vector<4x256xbf16>
    %cst_7 = arith.constant dense<0.000000e+00> : vector<256x256xf32>
    %11 = tpu.matmul %10, %3, %cst_7 {dimension_numbers = #tpu.dot_dimension_numbers<[0], [0], [1], [1], [0, 1, 1, 1], [], []>} : vector<4x256xbf16>, vector<4x256xbf16>, vector<256x256xf32> -> vector<256x256xf32>
    %12 = arith.addf %9, %11 : vector<256x256xf32>
    %cst_8 = arith.constant dense<0xFF800000> : vector<256xf32>
    %13 = vector.multi_reduction <maximumf>, %12, %cst_8 [1] : vector<256x256xf32> to vector<256xf32>
    %14 = vector.shape_cast %13 : vector<256xf32> to vector<256x1xf32>
    %15 = vector.broadcast %14 : vector<256x1xf32> to vector<256x256xf32>
    %16 = arith.subf %12, %15 : vector<256x256xf32>
    %17 = math.exp %16 : vector<256x256xf32>
    %cst_9 = arith.constant dense<0.000000e+00> : vector<256xf32>
    %18 = vector.multi_reduction <add>, %17, %cst_9 [1] : vector<256x256xf32> to vector<256xf32>
    %19 = vector.shape_cast %18 : vector<256xf32> to vector<256x1xf32>
    %20 = tpu.reciprocal %19 {approx = true} : vector<256x1xf32> -> vector<256x1xf32>
    %21 = vector.broadcast %20 : vector<256x1xf32> to vector<256x256xf32>
    %22 = arith.mulf %17, %21 : vector<256x256xf32>
    %23 = arith.truncf %22 : vector<256x256xf32> to vector<256x256xbf16>
    %c0_10 = arith.constant 0 : index
    %c0_11 = arith.constant 0 : index
    %24 = vector.load %arg9[%c0_10, %c0_11] : memref<4x256xbf16, #tpu.memory_space<vmem>>, vector<4x256xbf16>
    %cst_12 = arith.constant dense<0.000000e+00> : vector<4x256xf32>
    %25 = tpu.matmul %24, %23, %cst_12 {dimension_numbers = #tpu.dot_dimension_numbers<[1], [1], [0], [0], [0, 0, 1, 0], [], []>} : vector<4x256xbf16>, vector<256x256xbf16>, vector<4x256xf32> -> vector<4x256xf32>
    %c0_13 = arith.constant 0 : index
    %c0_14 = arith.constant 0 : index
    %c0_15 = arith.constant 0 : index
    %26 = vector.load %arg6[%c0_13, %c0_14, %c0_15] : memref<1x4x256xf32, #tpu.memory_space<vmem>>, vector<1x4x256xf32>
    %27 = vector.shape_cast %26 : vector<1x4x256xf32> to vector<4x256xf32>
    %28 = vector.shape_cast %25 : vector<4x256xf32> to vector<1x4x256xf32>
    tpu.vector_store %arg6[%c0_13, %c0_14, %c0_15], %28 {strides = array<i32>} : memref<1x4x256xf32, #tpu.memory_space<vmem>>, vector<1x4x256xf32>,
    return
  }
  func.func @transform_0(%arg0: i32, %arg1: i32) -> (i32, i32, i32) {
    %c0_i32 = arith.constant 0 : i32
    %c0_i32_0 = arith.constant 0 : i32
    %c0_i32_1 = arith.constant 0 : i32
    return %arg0, %c0_i32, %c0_i32_0 : i32, i32, i32
  }
  func.func @transform_1(%arg0: i32, %arg1: i32) -> (i32, i32, i32) {
    %c0_i32 = arith.constant 0 : i32
    %c0_i32_0 = arith.constant 0 : i32
    %c0_i32_1 = arith.constant 0 : i32
    %c0_i32_2 = arith.constant 0 : i32
    return %c0_i32, %c0_i32_0, %c0_i32_1 : i32, i32, i32
  }
  func.func @transform_2(%arg0: i32, %arg1: i32) -> (i32, i32, i32) {
    %c0_i32 = arith.constant 0 : i32
    %c0_i32_0 = arith.constant 0 : i32
    %c0_i32_1 = arith.constant 0 : i32
    %c0_i32_2 = arith.constant 0 : i32
    return %c0_i32, %c0_i32_0, %c0_i32_1 : i32, i32, i32
  }
  func.func @transform_3(%arg0: i32, %arg1: i32) -> (i32, i32) {
    %c0_i32 = arith.constant 0 : i32
    %c0_i32_0 = arith.constant 0 : i32
    return %c0_i32, %arg1 : i32, i32
  }
  func.func @transform_4(%arg0: i32, %arg1: i32) -> (i32, i32, i32) {
    %c0_i32 = arith.constant 0 : i32
    %c0_i32_0 = arith.constant 0 : i32
    return %arg0, %c0_i32, %arg1 : i32, i32, i32
  }
}

module attributes {stable_mosaic.version = 11 : i64} {
  func.func @kernel(%arg0: i32, %arg1: i32, %arg2: memref<1x4x256xbf16, #tpu.memory_space<vmem>>, %arg3: memref<3x4x4xbf16, #tpu.memory_space<vmem>>, %arg4: memref<3x4x1xf32, #tpu.memory_space<vmem>>, %arg5: memref<4x256xbf16, #tpu.memory_space<vmem>>, %arg6: memref<1x4x256xf32, #tpu.memory_space<vmem>>, %arg7: memref<4x256xbf16, #tpu.memory_space<vmem>>, %arg8: memref<4x256xbf16, #tpu.memory_space<vmem>>, %arg9: memref<4x256xbf16, #tpu.memory_space<vmem>>) attributes {dimension_semantics = [#tpu.dimension_semantics<parallel>, #tpu.dimension_semantics<arbitrary>], iteration_bounds = array<i64: 2, 1>, scalar_prefetch = 0 : i64, scratch_operands = 3 : i64, tpu.core_type = #tpu.core_type<tc>, window_params = [{transform_indices = @transform_0, window_bounds = array<i64: 1, 4, 256>}, {pipeline_mode = #tpu.pipeline_mode<synchronous>, transform_indices = @transform_1, window_bounds = array<i64: 3, 4, 4>}, {pipeline_mode = #tpu.pipeline_mode<synchronous>, transform_indices = @transform_2, window_bounds = array<i64: 3, 4, 1>}, {transform_indices = @transform_3, window_bounds = array<i64: 4, 256>}, {transform_indices = @transform_4, window_bounds = array<i64: 1, 4, 256>}]} {
    %c0_i32 = arith.constant 0 : i32
    %0 = arith.cmpi eq, %arg1, %c0_i32 : i32
    %1 = arith.extui %0 : i1 to i32
    %c0_i32_0 = arith.constant 0 : i32
    %2 = arith.cmpi ne, %1, %c0_i32_0 : i32
    scf.if %2 {
      %c0_16 = arith.constant 0 : index
      %c0_17 = arith.constant 0 : index
      %c0_18 = arith.constant 0 : index
      %29 = vector.load %arg2[%c0_16, %c0_17, %c0_18] : memref<1x4x256xbf16, #tpu.memory_space<vmem>>, vector<1x4x256xbf16>
      %30 = vector.shape_cast %29 : vector<1x4x256xbf16> to vector<4x256xbf16>
      %c0_19 = arith.constant 0 : index
      %c0_20 = arith.constant 0 : index
      %c0_21 = arith.constant 0 : index
      %31 = vector.load %arg3[%c0_19, %c0_20, %c0_21] : memref<3x4x4xbf16, #tpu.memory_space<vmem>>, vector<1x4x4xbf16>
      %32 = vector.shape_cast %31 : vector<1x4x4xbf16> to vector<4x4xbf16>
      %cst_22 = arith.constant dense<0.000000e+00> : vector<4x256xf32>
      %33 = tpu.matmul %32, %30, %cst_22 {dimension_numbers = #tpu.dot_dimension_numbers<[1], [0], [0], [1], [0, 0, 1, 1], [], []>} : vector<4x4xbf16>, vector<4x256xbf16>, vector<4x256xf32> -> vector<4x256xf32>
      %c0_23 = arith.constant 0 : index
      %c0_24 = arith.constant 0 : index
      %c0_25 = arith.constant 0 : index
      %34 = vector.load %arg4[%c0_23, %c0_24, %c0_25] : memref<3x4x1xf32, #tpu.memory_space<vmem>>, vector<1x4x1xf32>
      %35 = vector.shape_cast %34 : vector<1x4x1xf32> to vector<4x1xf32>
      %36 = vector.broadcast %35 : vector<4x1xf32> to vector<4x256xf32>
      %37 = arith.addf %33, %36 : vector<4x256xf32>
      %38 = arith.truncf %37 : vector<4x256xf32> to vector<4x256xbf16>
      %c0_26 = arith.constant 0 : index
      %c0_27 = arith.constant 0 : index
      %39 = vector.load %arg7[%c0_26, %c0_27] : memref<4x256xbf16, #tpu.memory_space<vmem>>, vector<4x256xbf16>
      tpu.vector_store %arg7[%c0_26, %c0_27], %38 {strides = array<i32>} : memref<4x256xbf16, #tpu.memory_space<vmem>>, vector<4x256xbf16>,
      %c1 = arith.constant 1 : index
      %c0_28 = arith.constant 0 : index
      %c0_29 = arith.constant 0 : index
      %40 = vector.load %arg3[%c1, %c0_28, %c0_29] : memref<3x4x4xbf16, #tpu.memory_space<vmem>>, vector<1x4x4xbf16>
      %41 = vector.shape_cast %40 : vector<1x4x4xbf16> to vector<4x4xbf16>
      %cst_30 = arith.constant dense<0.000000e+00> : vector<4x256xf32>
      %42 = tpu.matmul %41, %30, %cst_30 {dimension_numbers = #tpu.dot_dimension_numbers<[1], [0], [0], [1], [0, 0, 1, 1], [], []>} : vector<4x4xbf16>, vector<4x256xbf16>, vector<4x256xf32> -> vector<4x256xf32>
      %c1_31 = arith.constant 1 : index
      %c0_32 = arith.constant 0 : index
      %c0_33 = arith.constant 0 : index
      %43 = vector.load %arg4[%c1_31, %c0_32, %c0_33] : memref<3x4x1xf32, #tpu.memory_space<vmem>>, vector<1x4x1xf32>
      %44 = vector.shape_cast %43 : vector<1x4x1xf32> to vector<4x1xf32>
      %45 = vector.broadcast %44 : vector<4x1xf32> to vector<4x256xf32>
      %46 = arith.addf %42, %45 : vector<4x256xf32>
      %47 = arith.truncf %46 : vector<4x256xf32> to vector<4x256xbf16>
      %c0_34 = arith.constant 0 : index
      %c0_35 = arith.constant 0 : index
      %48 = vector.load %arg8[%c0_34, %c0_35] : memref<4x256xbf16, #tpu.memory_space<vmem>>, vector<4x256xbf16>
      tpu.vector_store %arg8[%c0_34, %c0_35], %47 {strides = array<i32>} : memref<4x256xbf16, #tpu.memory_space<vmem>>, vector<4x256xbf16>,
      %c2 = arith.constant 2 : index
      %c0_36 = arith.constant 0 : index
      %c0_37 = arith.constant 0 : index
      %49 = vector.load %arg3[%c2, %c0_36, %c0_37] : memref<3x4x4xbf16, #tpu.memory_space<vmem>>, vector<1x4x4xbf16>
      %50 = vector.shape_cast %49 : vector<1x4x4xbf16> to vector<4x4xbf16>
      %cst_38 = arith.constant dense<0.000000e+00> : vector<4x256xf32>
      %51 = tpu.matmul %50, %30, %cst_38 {dimension_numbers = #tpu.dot_dimension_numbers<[1], [0], [0], [1], [0, 0, 1, 1], [], []>} : vector<4x4xbf16>, vector<4x256xbf16>, vector<4x256xf32> -> vector<4x256xf32>
      %c2_39 = arith.constant 2 : index
      %c0_40 = arith.constant 0 : index
      %c0_41 = arith.constant 0 : index
      %52 = vector.load %arg4[%c2_39, %c0_40, %c0_41] : memref<3x4x1xf32, #tpu.memory_space<vmem>>, vector<1x4x1xf32>
      %53 = vector.shape_cast %52 : vector<1x4x1xf32> to vector<4x1xf32>
      %54 = vector.broadcast %53 : vector<4x1xf32> to vector<4x256xf32>
      %55 = arith.addf %51, %54 : vector<4x256xf32>
      %56 = arith.truncf %55 : vector<4x256xf32> to vector<4x256xbf16>
      %c0_42 = arith.constant 0 : index
      %c0_43 = arith.constant 0 : index
      %57 = vector.load %arg9[%c0_42, %c0_43] : memref<4x256xbf16, #tpu.memory_space<vmem>>, vector<4x256xbf16>
      tpu.vector_store %arg9[%c0_42, %c0_43], %56 {strides = array<i32>} : memref<4x256xbf16, #tpu.memory_space<vmem>>, vector<4x256xbf16>,
    } else {
    }
    %c0 = arith.constant 0 : index
    %c0_1 = arith.constant 0 : index
    %3 = vector.load %arg7[%c0, %c0_1] : memref<4x256xbf16, #tpu.memory_space<vmem>>, vector<4x256xbf16>
    %c0_2 = arith.constant 0 : index
    %c0_3 = arith.constant 0 : index
    %4 = vector.load %arg8[%c0_2, %c0_3] : memref<4x256xbf16, #tpu.memory_space<vmem>>, vector<4x256xbf16>
    %c256_i32 = arith.constant 256 : i32
    %5 = arith.muli %arg1, %c256_i32 : i32
    %6 = tpu.assume_multiple %5, 128 : i32
    %c0_4 = arith.constant 0 : index
    %7 = arith.index_cast %6 : i32 to index
    %8 = vector.load %arg7[%c0_4, %7] : memref<4x256xbf16, #tpu.memory_space<vmem>>, vector<4x256xbf16>
    %cst = arith.constant dense<0.000000e+00> : vector<256x256xf32>
    %9 = tpu.matmul %8, %4, %cst {dimension_numbers = #tpu.dot_dimension_numbers<[0], [0], [1], [1], [0, 1, 1, 1], [], []>} : vector<4x256xbf16>, vector<4x256xbf16>, vector<256x256xf32> -> vector<256x256xf32>
    %c0_5 = arith.constant 0 : index
    %c0_6 = arith.constant 0 : index
    %10 = vector.load %arg5[%c0_5, %c0_6] : memref<4x256xbf16, #tpu.memory_space<vmem>>, vector<4x256xbf16>
    %cst_7 = arith.constant dense<0.000000e+00> : vector<256x256xf32>
    %11 = tpu.matmul %10, %3, %cst_7 {dimension_numbers = #tpu.dot_dimension_numbers<[0], [0], [1], [1], [0, 1, 1, 1], [], []>} : vector<4x256xbf16>, vector<4x256xbf16>, vector<256x256xf32> -> vector<256x256xf32>
    %12 = arith.addf %9, %11 : vector<256x256xf32>
    %cst_8 = arith.constant dense<0xFF800000> : vector<256xf32>
    %13 = vector.multi_reduction <maximumf>, %12, %cst_8 [1] : vector<256x256xf32> to vector<256xf32>
    %14 = vector.shape_cast %13 : vector<256xf32> to vector<256x1xf32>
    %15 = vector.broadcast %14 : vector<256x1xf32> to vector<256x256xf32>
    %16 = arith.subf %12, %15 : vector<256x256xf32>
    %17 = math.exp %16 : vector<256x256xf32>
    %cst_9 = arith.constant dense<0.000000e+00> : vector<256xf32>
    %18 = vector.multi_reduction <add>, %17, %cst_9 [1] : vector<256x256xf32> to vector<256xf32>
    %19 = vector.shape_cast %18 : vector<256xf32> to vector<256x1xf32>
    %20 = tpu.reciprocal %19 {approx = true} : vector<256x1xf32> -> vector<256x1xf32>
    %21 = vector.broadcast %20 : vector<256x1xf32> to vector<256x256xf32>
    %22 = arith.mulf %17, %21 : vector<256x256xf32>
    %23 = arith.truncf %22 : vector<256x256xf32> to vector<256x256xbf16>
    %c0_10 = arith.constant 0 : index
    %c0_11 = arith.constant 0 : index
    %24 = vector.load %arg9[%c0_10, %c0_11] : memref<4x256xbf16, #tpu.memory_space<vmem>>, vector<4x256xbf16>
    %cst_12 = arith.constant dense<0.000000e+00> : vector<4x256xf32>
    %25 = tpu.matmul %24, %23, %cst_12 {dimension_numbers = #tpu.dot_dimension_numbers<[1], [1], [0], [0], [0, 0, 1, 0], [], []>} : vector<4x256xbf16>, vector<256x256xbf16>, vector<4x256xf32> -> vector<4x256xf32>
    %c0_13 = arith.constant 0 : index
    %c0_14 = arith.constant 0 : index
    %c0_15 = arith.constant 0 : index
    %26 = vector.load %arg6[%c0_13, %c0_14, %c0_15] : memref<1x4x256xf32, #tpu.memory_space<vmem>>, vector<1x4x256xf32>
    %27 = vector.shape_cast %26 : vector<1x4x256xf32> to vector<4x256xf32>
    %28 = vector.shape_cast %25 : vector<4x256xf32> to vector<1x4x256xf32>
    tpu.vector_store %arg6[%c0_13, %c0_14, %c0_15], %28 {strides = array<i32>} : memref<1x4x256xf32, #tpu.memory_space<vmem>>, vector<1x4x256xf32>,
    return
  }
  func.func @transform_0(%arg0: i32, %arg1: i32) -> (i32, i32, i32) {
    %c0_i32 = arith.constant 0 : i32
    %c0_i32_0 = arith.constant 0 : i32
    %c0_i32_1 = arith.constant 0 : i32
    return %arg0, %c0_i32, %c0_i32_0 : i32, i32, i32
  }
  func.func @transform_1(%arg0: i32, %arg1: i32) -> (i32, i32, i32) {
    %c0_i32 = arith.constant 0 : i32
    %c0_i32_0 = arith.constant 0 : i32
    %c0_i32_1 = arith.constant 0 : i32
    %c0_i32_2 = arith.constant 0 : i32
    return %c0_i32, %c0_i32_0, %c0_i32_1 : i32, i32, i32
  }
  func.func @transform_2(%arg0: i32, %arg1: i32) -> (i32, i32, i32) {
    %c0_i32 = arith.constant 0 : i32
    %c0_i32_0 = arith.constant 0 : i32
    %c0_i32_1 = arith.constant 0 : i32
    %c0_i32_2 = arith.constant 0 : i32
    return %c0_i32, %c0_i32_0, %c0_i32_1 : i32, i32, i32
  }
  func.func @transform_3(%arg0: i32, %arg1: i32) -> (i32, i32) {
    %c0_i32 = arith.constant 0 : i32
    %c0_i32_0 = arith.constant 0 : i32
    return %c0_i32, %arg1 : i32, i32
  }
  func.func @transform_4(%arg0: i32, %arg1: i32) -> (i32, i32, i32) {
    %c0_i32 = arith.constant 0 : i32
    %c0_i32_0 = arith.constant 0 : i32
    return %arg0, %c0_i32, %arg1 : i32, i32, i32
  }
}

</mosaic_0001>

<bundles_post_ra>
// kernel: tpu_custom_call.1
= control target key start
LH: loop header
LB: loop body
LE: loop exit
PB: predicated region body
PF: predicated region fallthrough
CT: control target
= control target key end

     0   :  { %s3525_s0 = inlined_call_operand.hbm [shape: bf16[2,4,256], index: 0, kind: input, shape index: {}]   ;;  %s3526_s1 = inlined_call_operand.hbm [shape: bf16[3,4,4], index: 1, kind: input, shape index: {}]   ;;  %s3527_s2 = inlined_call_operand.hbm [shape: f32[3,4,1], index: 2, kind: input, shape index: {}]   ;;  %s3528_s3 = inlined_call_operand.hbm [shape: bf16[4,256], index: 3, kind: input, shape index: {}]   ;;  %s3529_s4 = inlined_call_operand.hbm [shape: f32[2,4,256], index: 4, kind: output, shape index: {}]  }
   0x1   :  { %3561 = sst [smem:[#allocation34_spill]] %s3526_s1 }
   0x2   :  { %9 = vsyncpa [#allocation6], 0 }
   0x3   :  { %11 = vsyncpa [#allocation6 + $0x1], 0 }
   0x4   :  { %12 = vsyncpa [#allocation9], 0 }
   0x5   :  { %13 = vsyncpa [#allocation12], 0 }
   0x6   :  { %14 = vsyncpa [#allocation7], 0 }
   0x7   :  { %16 = vsyncpa [#allocation7 + $0x1], 0  ;;  %s2483_s15 = smov 0   ;;  %s2485_s16 = smov 0  }
   0x8   :  { %s2487_s17 = smov 0   ;;  %s2489_s18 = smov 0  }
   0x9   :  { %s2491_s19 = smov 0   ;;  %s2493_s20 = smov 0  }
   0xa LB: > { %s1812_s21 = sadd.s32 4294967295, %s2446_s20   ;;  %s1813_s22 = sadd.s32 4294967294, %s2446_s20   ;;  %s2446_s20 = sphi %s2493_s20, %s22_s20   ;;  %s2442_s19 = sphi %s2491_s19, %s3641_s19   ;;  %s2438_s18 = sphi %s2489_s18, %s3640_s18   ;;  %s2434_s17 = sphi %s2487_s17, %s3639_s17   ;;  %s2430_s16 = sphi %s2485_s16, %s3638_s16   ;;  %s2426_s15 = sphi %s2483_s15, %s3637_s15  }
   0xb   : > { %p54_p0 = scmp.ne.s32.totalorder %s2430_s16, %s2426_s15  ;;  %p2517_p1 = scmp.eq.s32.totalorder %s1812_s21, 0 }
   0xc   : > { %p2521_p2 = scmp.eq.s32.totalorder %s1812_s21, 1  ;;  %p154_p3 = scmp.eq.s32.totalorder %s1813_s22, 1 }
   0xd   : > { %s3562_s23 = scalar_select %p2517_p1, 1, 0 }
   0xe   : > { %s3563_s24 = scalar_select %p2521_p2, 1, 0 }
   0xf   : > { %p2527_p4 = por %p2517_p1, %p54_p0  ;;  %p1814_p5 = scmp.ge.s32.totalorder %s2446_s20, 1 }
  0x10   : > { %p2532_p6 = por %p154_p3, %p54_p0  ;;  %p161_p7 = scmp.lt.s32.totalorder %s2446_s20, 3 }
  0x11   : > { %s3564_s25 = scalar_select %p2527_p4, 1, 0 }
  0x12   : > { %s3565_s26 = scalar_select %p2532_p6, 1, 0 }
  0x13   : > { %p2537_p8 = pnand %p1814_p5, %p161_p7  ;;  %s2448_s28 = smov [#allocation8]  }
  0x14   : > { %s173_s29 = sshll.u32 %s2448_s28, 4  ;;  %s2449_s5 = smov [#allocation10]   ;;  %s2541_s29 = int_to_ptr.vmem [resolvable:$true] %s173_s29 }
  0x15   : > { %s3566_s27 = scalar_select %p2537_p8, 1, 0 }
  0x16   : > { %p1967_p9 = pneg %p2537_p8  ;;  %s186_s6 = sshll.u32 %s2449_s5, 4  ;;  %s2552_s6 = int_to_ptr.vmem [resolvable:$true] %s186_s6 }
  0x17   : > { %s3568_s1 = sld [smem:[#allocation34_spill]] }
  0x18   : > { %p2548_p11 = pnand %p1967_p9, %p2517_p1 }
  0x1a   : > { %p2562_p13 = pneg %p2548_p11 }
  0x1d   : > { %s2242_s9 = scalar_lea.hbm %s3568_s1, 96 }
  0x1e   : > { %p2243_p12 = scmp.ne.s32.totalorder %s3568_s1, %s2242_s9  ;;  %p2249_p5 = scmp.lt.u32.totalorder %s2242_s9, %s3568_s1 }
  0x20   : > { %p2245_p0 = pnand %p2562_p13, %p2243_p12 }
  0x22   : > { %p2246_p3 = pneg %p2245_p0 }
  0x24   : > { %p2251_p7 = pnand %p2249_p5, %p2246_p3 }
  0x26   : > { %2254 = shalt.err (!%p2251_p7)
}
  0x27   : > { %s2255_s21 = scalar_lea.vmem %s2541_s29, 96  ;;  %p2263_p1 = scmp.lt.s32.totalorder %s2541_s29, %s2541_s29 }
  0x28   : > { %p2256_p9 = scmp.ne.s32.totalorder %s2541_s29, %s2255_s21  ;;  %p2264_p4 = scmp.lt.s32.totalorder %s2255_s21, %s2255_s21 }
  0x2a   : > { %p2258_p10 = pnand %p2256_p9, %p2562_p13  ;;  %p2265_p12 = por %p2264_p4, %p2263_p1 }
  0x2c   : > { %p2259_p6 = pneg %p2258_p10 }
  0x2e   : > { %p2266_p0 = pnand %p2265_p12, %p2259_p6 }
  0x30   : > { %2269 = shalt.err (!%p2266_p0)
}
  0x31   : > { %s2450_s22 = smov 32   ;;  %s2451_s28 = smov 2  }
  0x32   : > { %1970 = dma.hbm_to_vmem [thread:$0]  (!%p2548_p11), %s3568_s1, 96, %s2541_s29, [#allocation9], %s2450_s22, %s2450_s22, %s2451_s28  }
  0x33   : > { %s2270_s10 = scalar_lea.hbm %s3527_s2, 192 }
  0x34   : > { %p2271_p1 = scmp.ne.s32.totalorder %s3527_s2, %s2270_s10  ;;  %p2277_p10 = scmp.lt.u32.totalorder %s2270_s10, %s3527_s2 }
  0x36   : > { %p2273_p4 = pnand %p2271_p1, %p2562_p13 }
  0x38   : > { %p2274_p6 = pneg %p2273_p4 }
  0x3a   : > { %p2279_p3 = pnand %p2277_p10, %p2274_p6 }
  0x3c   : > { %2282 = shalt.err (!%p2279_p3)
}
  0x3d   : > { %s2283_s29 = scalar_lea.vmem %s2552_s6, 192  ;;  %p2291_p12 = scmp.lt.s32.totalorder %s2552_s6, %s2552_s6 }
  0x3e   : > { %p2284_p5 = scmp.ne.s32.totalorder %s2552_s6, %s2283_s29  ;;  %p2292_p0 = scmp.lt.s32.totalorder %s2283_s29, %s2283_s29 }
  0x40   : > { %p2286_p7 = pnand %p2284_p5, %p2562_p13  ;;  %p2293_p1 = por %p2292_p0, %p2291_p12 }
  0x42   : > { %p2287_p9 = pneg %p2286_p7 }
  0x44   : > { %p2294_p4 = pnand %p2293_p1, %p2287_p9 }
  0x46   : > { %2297 = shalt.err (!%p2294_p4)
}
  0x47   : > { %s2452_s22 = smov 64   ;;  %s2453_s28 = smov 4  }
  0x48   : > { %1973 = dma.hbm_to_vmem [thread:$0]  (!%p2548_p11), %s3527_s2, 192, %s2552_s6, [#allocation9], %s2452_s22, %s2452_s22, %s2453_s28  }
  0x49   : > { %s2454_s8 = smov [#allocation11]   ;;  %s2298_s13 = scalar_lea.hbm %s3528_s3, 64 }
  0x4a   : > { %s203_s9 = sshll.u32 %s2454_s8, 4  ;;  %p2299_p6 = scmp.ne.s32.totalorder %s3528_s3, %s2298_s13  ;;  %s204_s9 = int_to_ptr.vmem [resolvable:$true] %s203_s9 }
  0x4b   : > { %p2305_p5 = scmp.lt.u32.totalorder %s2298_s13, %s3528_s3 }
  0x4c   : > { %p2301_p10 = pnand %p2299_p6, %p2562_p13 }
  0x4e   : > { %p2302_p3 = pneg %p2301_p10 }
  0x50   : > { %p2307_p7 = pnand %p2305_p5, %p2302_p3 }
  0x52   : > { %2310 = shalt.err (!%p2307_p7)
}
  0x53   : > { %s2311_s6 = scalar_lea.vmem %s204_s9, 64  ;;  %p2319_p1 = scmp.lt.s32.totalorder %s204_s9, %s204_s9 }
  0x54   : > { %p2312_p9 = scmp.ne.s32.totalorder %s204_s9, %s2311_s6  ;;  %p2320_p4 = scmp.lt.s32.totalorder %s2311_s6, %s2311_s6 }
  0x56   : > { %p2314_p12 = pnand %p2312_p9, %p2562_p13  ;;  %p2321_p8 = por %p2320_p4, %p2319_p1 }
  0x58   : > { %p2315_p0 = pneg %p2314_p12 }
  0x5a   : > { %p2322_p2 = pnand %p2321_p8, %p2315_p0 }
  0x5c   : > { %2325 = shalt.err (!%p2322_p2)
}
  0x5d   : > { %1976 = dma.hbm_to_vmem [thread:$0]  (!%p2548_p11), %s3528_s3, 64, %s204_s9, [#allocation12]  }
  0x5e   : > { %s34_s1 = sadd.s32 1, %s2442_s19  ;;  %s41_s12 = sadd.s32 1, %s2434_s17 }
  0x5f   : > { %p36_p8 = scmp.ge.s32.totalorder %s34_s1, 2  ;;  %p48_p2 = scmp.ne.s32.totalorder %s2434_s17, %s2430_s16 }
  0x60   : > { %p49_p13 = scmp.eq.s32.totalorder %s2446_s20, 0  ;;  %p3571_p10 = scmp.ne.s32.totalorder %s3563_s24, 0 }
  0x61   : > { %s3643_s1 = smov (%p36_p8, %s34_s1), 0  ;;  %p1988_p11 = scmp.lt.s32.totalorder %s2446_s20, 2 }
  0x62   : > { %p2631_p6 = por %p49_p13, %p48_p2  ;;  %p2637_p3 = por %p3571_p10, %p48_p2 }
  0x63   : > { %s38_s7 = ssub.s32 %s2442_s19, %s3643_s1  ;;  %s214_s8 = sand.u32 1, %s2434_s17  }
  0x64   : > { %p39_p5 = scmp.eq.s32.totalorder %s38_s7, 0  ;;  %s1819_s9 = sshll.u32 %s214_s8, 2 }
  0x65   : > { %s1885_s11 = sshll.u32 %s2442_s19, 6  ;;  %s218_s24 = scalar_lea.vmem [#allocation5], %s1819_s9 }
  0x66   : > { %s2646_s10 = scalar_select %p39_p5, %s2434_s17, %s41_s12  }
  0x67   : > { %s2652_s21 = scalar_lea.hbm %s3525_s0, %s1885_s11  ;;  %s226_s29 = sshll.u32 %s218_s24, 4  ;;  %s2654_s29 = int_to_ptr.vmem [resolvable:$true] %s226_s29 }
  0x68   : > { %p2658_p7 = pnand %p1988_p11, %p2631_p6  ;;  %s215_s22 = scalar_lea.sflag [#allocation6], %s214_s8 }
  0x69   : > { %s2326_s28 = scalar_lea.hbm %s2652_s21, 64  ;;  %s2331_s9 = scalar_lea.hbm %s3525_s0, 128 }
  0x6a   : > { %p2327_p9 = scmp.ne.s32.totalorder %s2652_s21, %s2326_s28  ;;  %p2328_p12 = pneg %p2658_p7 }
  0x6b   : > { %p2332_p4 = scmp.lt.u32.totalorder %s2652_s21, %s3525_s0  ;;  %p2333_p8 = scmp.lt.u32.totalorder %s2331_s9, %s2326_s28 }
  0x6c   : > { %p2329_p0 = pnand %p2328_p12, %p2327_p9  ;;  %p2335_p13 = scmp.lt.u32.totalorder %s2326_s28, %s2652_s21 }
  0x6d   : > { %p2334_p2 = por %p2333_p8, %p2332_p4 }
  0x6e   : > { %p2330_p1 = pneg %p2329_p0 }
  0x6f   : > { %p2336_p6 = por %p2335_p13, %p2334_p2 }
  0x71   : > { %p2337_p10 = pnand %p2336_p6, %p2330_p1 }
  0x73   : > { %2340 = shalt.err (!%p2337_p10)
}
  0x74   : > { %s2341_s8 = scalar_lea.vmem %s2654_s29, 64  ;;  %s2455_s13 = smov [#allocation5]  }
  0x75   : > { %p2342_p11 = scmp.ne.s32.totalorder %s2654_s29, %s2341_s8  ;;  %s2346_s14 = sshll.u32 %s2455_s13, 4  ;;  %s2347_s14 = int_to_ptr.vmem [resolvable:$false] %s2346_s14 }
  0x76   : > { %s2348_s24 = scalar_lea.vmem %s2347_s14, 128  ;;  %p2349_p0 = scmp.lt.s32.totalorder %s2654_s29, %s2347_s14 }
  0x77   : > { %p2344_p5 = pnand %p2342_p11, %p2328_p12  ;;  %p2350_p4 = scmp.lt.s32.totalorder %s2348_s24, %s2341_s8 }
  0x79   : > { %p2345_p9 = pneg %p2344_p5  ;;  %p2351_p8 = por %p2350_p4, %p2349_p0 }
  0x7b   : > { %p2352_p2 = pnand %p2351_p8, %p2345_p9 }
  0x7d   : > { %2355 = shalt.err (!%p2352_p2)
}
  0x7e   : > { %1980 = dma.hbm_to_vmem [thread:$0]  (!%p2658_p7), %s2652_s21, 64, %s2654_s29, %s215_s22  }
  0x7f   : > { %p3574_p1 = scmp.ne.s32.totalorder %s3566_s27, 0 }
  0x81   : > { %235 = sbr.rel (%p3574_p1) target bundleno = 1444 (0x5a4), region = 36 }
  0x88   : > { %s2690_s28 = sand.u32 1, %s2430_s16   ;;  %p3575_p12 = scmp.ne.s32.totalorder %s3564_s25, 0 }
  0x89   : > { %s1823_s12 = sshll.u32 %s2690_s28, 2  ;;  %s238_s7 = scalar_lea.sflag [#allocation6], %s2690_s28 }
  0x8a   : > { %s241_s9 = scalar_lea.vmem [#allocation5], %s1823_s12 }
  0x8b   : > { %2409 = dma.done.wait (%p3575_p12), %s238_s7, 64  }
  0x8c   : > { %2411 = vsyncadd (%p3575_p12), %s238_s7, 4294967232  ;;  %p3576_p13 = scmp.ne.s32.totalorder %s3562_s23, 0 }
  0x8e   : > { %2413 = dma.done.wait (%p3576_p13), [#allocation9], 288  }
  0x8f   : > { %2415 = vsyncadd (%p3576_p13), [#allocation9], 4294967008 }
  0x90   : > { %2417 = dma.done.wait (%p3576_p13), [#allocation12], 64  }
  0x91   : > { %2419 = vsyncadd (%p3576_p13), [#allocation12], 4294967232  ;;  %v2456_v0 = vmov 0   ;;  %vm306_vm0 = vcmask 1041408   ;;  %v287_v4 = vld [vmem:[#allocation10] sm:$0xf] }
  0x92   : > { %345 = vmatprep.mubr.bf16.mxu1 %v2456_v0  ;;  %2049 = vset.pattern.permute.xlu0 %v2456_v0  ;;  %v1828_v1 = vld.sshfl [vmem:[%s241_s9] sm:$0x33 pattern:$0x76325410]  ;;  %v371_v6 = vld [vmem:[#allocation10 + $0x4] sm:$0xf] }
  0x93   : > { %479 = vmatprep.mubr.bf16.mxu0 %v2456_v0  ;;  %v301_v2 = vcombine.high %v1828_v1, %v1828_v1  ;;  %v308_v3 = vsel %vm306_vm0, %v1828_v1, 0  ;;  %290 = vperm.xlu0 %2049, %v287_v4   ;;  %v1841_v5 = vld.sshfl [vmem:[#allocation11] sm:$0x33 pattern:$0x76325410]  ;;  %vm302_vm1 = vcmask 31744  }
  0x94   : > { %522 = vxpose.xlu1.c.b16.start.end [1/1] (short) %v1841_v5, 128  ;;  %v286_v7 = vld [vmem:[#allocation8] sm:$0x3]  ;;  %v369_v8 = vld [vmem:[#allocation8 + $0x2] sm:$0x3]  ;;  %v519_v9 = vcombine.high %v1841_v5, %v1841_v5  ;;  %v436_v10 = vld [vmem:[#allocation8 + $0x4] sm:$0x3] }
  0x95   : > { %1829 = vmatprep.subr.msk.bf16.mxu1 %vm306_vm0, %v301_v2  ;;  %1837 = vmatprep.subr.msk.bf16.mxu0 %vm306_vm0, %v301_v2  ;;  %s1827_s23 = sshll.u32 %s2690_s28, 3  ;;  %s1886_s25 = sshll.u32 %s2438_s18, 7 }
  0x96   : > { %314 = vmatpush1.bf16.msra.mxu1 %v308_v3  ;;  %448 = vmatpush1.bf16.msra.mxu0 %v308_v3  ;;  %s277_s27 = scalar_lea.vmem [#allocation13], %s1827_s23  ;;  %s3476_s22 = scalar_lea.hbm %s3529_s4, %s1886_s25 }
  0x97   : > { %1833 = vmatprep.subr.msk.bf16.mxu1 %vm306_vm0, %v301_v2  ;;  %374 = vperm.xlu0 %2049, %v371_v6   ;;  %s1698_s21 = sshll.u32 %s277_s27, 4  ;;  %s1682_s30 = scalar_lea.sflag [#allocation7], %s2690_s28  ;;  %s3478_s21 = int_to_ptr.vmem [resolvable:$true] %s1698_s21 }
  0x98   : > { %s2356_s18 = scalar_lea.vmem %s3478_s21, 128  ;;  %s2457_s11 = smov [#allocation13]  }
  0x99   : > { %1830 = vmatmul.mubr.msk.bf16.vlgmr.msra.gmra.mrb[0].mxu1 %vm302_vm1, %v286_v7  ;;  %1838 = vmatmul.mubr.msk.bf16.vlgmr.msra.gmra.mrb[0].mxu0 %vm302_vm1, %v436_v10  ;;  %p2357_p7 = scmp.ne.s32.totalorder %s3478_s21, %s2356_s18  ;;  %s2360_s8 = sshll.u32 %s2457_s11, 4  ;;  %s2361_s8 = int_to_ptr.vmem [resolvable:$false] %s2360_s8 }
  0x9a   : > { %381 = vmatpush1.bf16.msra.mxu1 %v308_v3  ;;  %412 = vmatprep.mubr.bf16.mxu1 %v2456_v0  ;;  %s2362_s13 = scalar_lea.vmem %s2361_s8, 256  ;;  %p2363_p11 = scmp.lt.s32.totalorder %s3478_s21, %s2361_s8 }
  0x9b   : > { %651 = vmatprep.mubr.bf16.mxu0 %v2456_v0  ;;  %p2358_p6 = pnand %p2357_p7, %p2637_p3  ;;  %p2364_p5 = scmp.lt.s32.totalorder %s2362_s13, %s2356_s18 }
  0x9d   : > { %p2359_p10 = pneg %p2358_p6  ;;  %p2365_p9 = por %p2364_p5, %p2363_p11 }
  0x9f   : > { %p2366_p0 = pnand %p2365_p9, %p2359_p10 }
  0xa1   : > { %1834 = vmatmul.mubr.msk.bf16.vlgmr.msra.gmra.mrb[4].mxu1 %vm302_vm1, %v369_v8 }
  0xa2   : > { %950 = vmatprep.mubr.bf16.mxu1 %v2456_v0 }
  0xb5   : > { %538 = vxpose.xlu0.c.b16.start.end [1/1] (short) %v519_v9, 128 }
  0xfa   : > { %v530_v30 = vpop.trf.xlu1 }
  0xfe   : > { %v531_v34 = vpop.trf.xlu1 }
 0x102   : > { %v532_v35 = vpop.trf.xlu1 }
 0x106   : > { %v533_v36 = vpop.trf.xlu1 }
 0x10a   : > { %v534_v37 = vpop.trf.xlu1 }
 0x10e   : > { %v535_v38 = vpop.trf.xlu1 }
 0x112   : > { %v291_v11 = vpop.permute.xlu0 %290  ;;  %v536_v39 = vpop.trf.xlu1 }
 0x116   : > { %v375_v19 = vpop.permute.xlu0 %374  ;;  %v537_v40 = vpop.trf.xlu1 }
 0x11b   : > { %v546_v41 = vpop.trf.xlu0 }
 0x11f   : > { %v547_v42 = vpop.trf.xlu0 }
 0x123   : > { %v548_v43 = vpop.trf.xlu0 }
 0x127   : > { %v549_v48 = vpop.trf.xlu0 }
 0x12b   : > { %v550_v49 = vpop.trf.xlu0 }
 0x12f   : > { %v551_v51 = vpop.trf.xlu0 }
 0x133   : > { %v552_v53 = vpop.trf.xlu0 }
 0x137   : > { %v553_v55 = vpop.trf.xlu0 }
 0x16c   : > { %v347_v12 = vpop.f32.mrb[0].mxu1  ;;  %v2744_v44 = vpop.f32.mrb[0].mxu0 }
 0x16d   : > { %v348_v13 = vadd.f32 %v347_v12, %v291_v11  ;;  %v349_v14 = vpop.f32.mrb[1].mxu1  ;;  %3577 = vst [vmem:[#allocation18_spill] sm:$0xff] %v2744_v44  ;;  %v2747_v45 = vpop.f32.mrb[1].mxu0 }
 0x16e   : > { %v350_v15 = vadd.f32 %v349_v14, %v291_v11  ;;  %v351_v16 = vpop.f32.mrb[2].mxu1  ;;  %3578 = vst [vmem:[#allocation19_spill] sm:$0xff] %v2747_v45  ;;  %v485_v46 = vpop.f32.mrb[2].mxu0 }
 0x16f   : > { %v352_v17 = vpop.f32.mrb[3].mxu1  ;;  %v486_v47 = vpop.f32.mrb[3].mxu0 }
 0x170   : > { %v1831_v18 = vpack.c.bf16 %v350_v15, %v348_v13 }
 0x172   : > { %1832 = vst.sshfl [vmem:[#allocation2] sm:$0x33 pattern:$0x76325410] %v1831_v18 }
 0x174   : > { %v414_v20 = vpop.f32.mrb[4].mxu1 }
 0x175   : > { %v415_v21 = vadd.f32 %v414_v20, %v375_v19  ;;  %v416_v22 = vpop.f32.mrb[5].mxu1 }
 0x176   : > { %v417_v23 = vadd.f32 %v416_v22, %v375_v19  ;;  %v418_v24 = vpop.f32.mrb[6].mxu1 }
 0x177   : > { %v419_v25 = vpop.f32.mrb[7].mxu1 }
 0x178   : > { %v1835_v26 = vpack.c.bf16 %v417_v23, %v415_v21 }
 0x179   : > { %v1860_v27 = vld.sshfl [vmem:[#allocation2] sm:$0x33 pattern:$0x76325410] }
 0x17a   : > { %1836 = vst.sshfl [vmem:[#allocation3] sm:$0x33 pattern:$0x76325410] %v1835_v26  ;;  %823 = vxpose.xlu1.c.b16.start.end [1/1] (short) %v1860_v27, 128  ;;  %v562_v28 = vcombine.high %v1860_v27, %v1860_v27  ;;  %v614_v29 = vsel %vm306_vm0, %v1860_v27, 0 }
 0x17c   : > { %1843 = vmatprep.subr.msk.bf16.mxu0 %vm306_vm0, %v562_v28 }
 0x17d   : > { %620 = vmatpush1.bf16.msra.mxu0 %v614_v29 }
 0x180   : > { %1844 = vmatmul.mubr.msk.bf16.vlgmr.msra.gmra.mrb[4].mxu0 %vm302_vm1, %v530_v30 }
 0x181   : > { %v1861_v31 = vld.sshfl [vmem:[#allocation3] sm:$0x33 pattern:$0x76325410]  ;;  %661 = vmatprep.mubr.bf16.mxu0 %v2456_v0 }
 0x182   : > { %v863_v32 = vcombine.high %v1861_v31, %v1861_v31  ;;  %v913_v33 = vsel %vm306_vm0, %v1861_v31, 0 }
 0x184   : > { %1862 = vmatprep.subr.msk.bf16.mxu1 %vm306_vm0, %v863_v32 }
 0x185   : > { %919 = vmatpush1.bf16.msra.mxu1 %v913_v33 }
 0x188   : > { %1845 = vmatmul.mubr.msk.bf16.gmra.mrb[8].mxu0 %vm302_vm1, %v531_v34 }
 0x189   : > { %671 = vmatprep.mubr.bf16.mxu0 %v2456_v0 }
 0x190   : > { %1846 = vmatmul.mubr.msk.bf16.gmra.mrb[12].mxu0 %vm302_vm1, %v532_v35 }
 0x191   : > { %681 = vmatprep.mubr.bf16.mxu0 %v2456_v0 }
 0x197   : > { %839 = vxpose.xlu1.c.b16.start.end [1/1] (short) %v562_v28, 128 }
 0x198   : > { %1847 = vmatmul.mubr.msk.bf16.gmra.mrb[16].mxu0 %vm302_vm1, %v533_v36 }
 0x199   : > { %691 = vmatprep.mubr.bf16.mxu0 %v2456_v0 }
 0x1a0   : > { %1848 = vmatmul.mubr.msk.bf16.gmra.mrb[20].mxu0 %vm302_vm1, %v534_v37 }
 0x1a1   : > { %701 = vmatprep.mubr.bf16.mxu0 %v2456_v0 }
 0x1a8   : > { %1849 = vmatmul.mubr.msk.bf16.gmra.mrb[24].mxu0 %vm302_vm1, %v535_v38 }
 0x1a9   : > { %711 = vmatprep.mubr.bf16.mxu0 %v2456_v0 }
 0x1b0   : > { %1850 = vmatmul.mubr.msk.bf16.gmra.mrb[28].mxu0 %vm302_vm1, %v536_v39 }
 0x1b1   : > { %721 = vmatprep.mubr.bf16.mxu0 %v2456_v0 }
 0x1b8   : > { %1851 = vmatmul.mubr.msk.bf16.gmra.mrb[32].mxu0 %vm302_vm1, %v537_v40 }
 0x1b9   : > { %731 = vmatprep.mubr.bf16.mxu0 %v2456_v0 }
 0x1c0   : > { %1852 = vmatmul.mubr.msk.bf16.gmra.mrb[36].mxu0 %vm302_vm1, %v546_v41 }
 0x1c1   : > { %741 = vmatprep.mubr.bf16.mxu0 %v2456_v0 }
 0x1c8   : > { %1853 = vmatmul.mubr.msk.bf16.gmra.mrb[40].mxu0 %vm302_vm1, %v547_v42 }
 0x1c9   : > { %751 = vmatprep.mubr.bf16.mxu0 %v2456_v0 }
 0x1d0   : > { %1854 = vmatmul.mubr.msk.bf16.gmra.mrb[44].mxu0 %vm302_vm1, %v548_v43 }
 0x1d1   : > { %761 = vmatprep.mubr.bf16.mxu0 %v2456_v0 }
 0x1d8   : > { %1855 = vmatmul.mubr.msk.bf16.gmra.mrb[48].mxu0 %vm302_vm1, %v549_v48 }
 0x1d9   : > { %771 = vmatprep.mubr.bf16.mxu0 %v2456_v0 }
 0x1e0   : > { %v831_v50 = vpop.trf.xlu1  ;;  %1856 = vmatmul.mubr.msk.bf16.gmra.mrb[52].mxu0 %vm302_vm1, %v550_v49 }
 0x1e1   : > { %1863 = vmatmul.mubr.msk.bf16.vlgmr.msra.gmra.mrb[8].mxu1 %vm302_vm1, %v831_v50  ;;  %781 = vmatprep.mubr.bf16.mxu0 %v2456_v0 }
 0x1e2   : > { %960 = vmatprep.mubr.bf16.mxu1 %v2456_v0 }
 0x1e4   : > { %v832_v52 = vpop.trf.xlu1 }
 0x1e8   : > { %1857 = vmatmul.mubr.msk.bf16.gmra.mrb[56].mxu0 %vm302_vm1, %v551_v51  ;;  %v833_v54 = vpop.trf.xlu1 }
 0x1e9   : > { %1864 = vmatmul.mubr.msk.bf16.gmra.mrb[12].mxu1 %vm302_vm1, %v832_v52  ;;  %791 = vmatprep.mubr.bf16.mxu0 %v2456_v0 }
 0x1ea   : > { %970 = vmatprep.mubr.bf16.mxu1 %v2456_v0 }
 0x1ec   : > { %v834_v56 = vpop.trf.xlu1 }
 0x1f0   : > { %1858 = vmatmul.mubr.msk.bf16.gmra.mrb[60].mxu0 %vm302_vm1, %v552_v53  ;;  %v835_v57 = vpop.trf.xlu1 }
 0x1f1   : > { %1865 = vmatmul.mubr.msk.bf16.gmra.mrb[16].mxu1 %vm302_vm1, %v833_v54  ;;  %801 = vmatprep.mubr.bf16.mxu0 %v2456_v0 }
 0x1f2   : > { %980 = vmatprep.mubr.bf16.mxu1 %v2456_v0 }
 0x1f4   : > { %v836_v58 = vpop.trf.xlu1 }
 0x1f8   : > { %1859 = vmatmul.mubr.msk.bf16.gmra.mrb[64].mxu0 %vm302_vm1, %v553_v55  ;;  %v837_v59 = vpop.trf.xlu1 }
 0x1f9   : > { %1866 = vmatmul.mubr.msk.bf16.gmra.mrb[20].mxu1 %vm302_vm1, %v834_v56 }
 0x1fa   : > { %990 = vmatprep.mubr.bf16.mxu1 %v2456_v0 }
 0x1fc   : > { %v838_v60 = vpop.trf.xlu1 }
 0x200   : > { %v847_v61 = vpop.trf.xlu1 }
 0x201   : > { %1867 = vmatmul.mubr.msk.bf16.gmra.mrb[24].mxu1 %vm302_vm1, %v835_v57 }
 0x202   : > { %1000 = vmatprep.mubr.bf16.mxu1 %v2456_v0 }
 0x204   : > { %v848_v62 = vpop.trf.xlu1 }
 0x208   : > { %v849_v63 = vpop.trf.xlu1 }
 0x209   : > { %1868 = vmatmul.mubr.msk.bf16.gmra.mrb[28].mxu1 %vm302_vm1, %v836_v58 }
 0x20a   : > { %1010 = vmatprep.mubr.bf16.mxu1 %v2456_v0 }
 0x20c   : > { %v850_v1 = vpop.trf.xlu1 }
 0x210   : > { %v851_v2 = vpop.trf.xlu1 }
 0x211   : > { %1869 = vmatmul.mubr.msk.bf16.gmra.mrb[32].mxu1 %vm302_vm1, %v837_v59 }
 0x212   : > { %1020 = vmatprep.mubr.bf16.mxu1 %v2456_v0 }
 0x214   : > { %v852_v3 = vpop.trf.xlu1 }
 0x218   : > { %v853_v4 = vpop.trf.xlu1 }
 0x219   : > { %1870 = vmatmul.mubr.msk.bf16.gmra.mrb[36].mxu1 %vm302_vm1, %v838_v60 }
 0x21a   : > { %1030 = vmatprep.mubr.bf16.mxu1 %v2456_v0 }
 0x21c   : > { %v854_v9 = vpop.trf.xlu1 }
 0x221   : > { %1871 = vmatmul.mubr.msk.bf16.gmra.mrb[40].mxu1 %vm302_vm1, %v847_v61 }
 0x222   : > { %1040 = vmatprep.mubr.bf16.mxu1 %v2456_v0 }
 0x229   : > { %1872 = vmatmul.mubr.msk.bf16.gmra.mrb[44].mxu1 %vm302_vm1, %v848_v62 }
 0x22a   : > { %1050 = vmatprep.mubr.bf16.mxu1 %v2456_v0 }
 0x231   : > { %1873 = vmatmul.mubr.msk.bf16.gmra.mrb[48].mxu1 %vm302_vm1, %v849_v63 }
 0x232   : > { %1060 = vmatprep.mubr.bf16.mxu1 %v2456_v0 }
 0x239   : > { %1874 = vmatmul.mubr.msk.bf16.gmra.mrb[52].mxu1 %vm302_vm1, %v850_v1 }
 0x23a   : > { %1070 = vmatprep.mubr.bf16.mxu1 %v2456_v0 }
 0x241   : > { %1875 = vmatmul.mubr.msk.bf16.gmra.mrb[56].mxu1 %vm302_vm1, %v851_v2 }
 0x242   : > { %1080 = vmatprep.mubr.bf16.mxu1 %v2456_v0 }
 0x249   : > { %1876 = vmatmul.mubr.msk.bf16.gmra.mrb[60].mxu1 %vm302_vm1, %v852_v3 }
 0x24a   : > { %1090 = vmatprep.mubr.bf16.mxu1 %v2456_v0 }
 0x251   : > { %1877 = vmatmul.mubr.msk.bf16.gmra.mrb[64].mxu1 %vm302_vm1, %v853_v4 }
 0x252   : > { %1100 = vmatprep.mubr.bf16.mxu1 %v2456_v0 }
 0x253   : > { %v653_v5 = vpop.f32.mrb[4].mxu0 }
 0x254   : > { %v655_v6 = vpop.f32.mrb[5].mxu0 }
 0x255   : > { %v657_v7 = vpop.f32.mrb[6].mxu0 }
 0x256   : > { %v659_v8 = vpop.f32.mrb[7].mxu0 }
 0x259   : > { %1878 = vmatmul.mubr.msk.bf16.gmra.mrb[68].mxu1 %vm302_vm1, %v854_v9 }
 0x25b   : > { %v663_v10 = vpop.f32.mrb[8].mxu0 }
 0x25c   : > { %v665_v11 = vpop.f32.mrb[9].mxu0 }
 0x25d   : > { %v667_v12 = vpop.f32.mrb[10].mxu0 }
 0x25e   : > { %v669_v13 = vpop.f32.mrb[11].mxu0 }
 0x263   : > { %v2789_v14 = vpop.f32.mrb[12].mxu0 }
 0x264   : > { %v2791_v15 = vpop.f32.mrb[13].mxu0 }
 0x265   : > { %v2793_v16 = vpop.f32.mrb[14].mxu0 }
 0x266   : > { %v2795_v17 = vpop.f32.mrb[15].mxu0 }
 0x26b   : > { %v2797_v0 = vpop.f32.mrb[16].mxu0 }
 0x26c   : > { %v2799_v18 = vpop.f32.mrb[17].mxu0 }
 0x26d   : > { %v2801_v19 = vpop.f32.mrb[18].mxu0 }
 0x26e   : > { %v2803_v20 = vpop.f32.mrb[19].mxu0 }
 0x273   : > { %v2805_v21 = vpop.f32.mrb[20].mxu0 }
 0x274   : > { %v2807_v22 = vpop.f32.mrb[21].mxu0 }
 0x275   : > { %v2809_v23 = vpop.f32.mrb[22].mxu0 }
 0x276   : > { %v2811_v24 = vpop.f32.mrb[23].mxu0 }
 0x27b   : > { %v2813_v25 = vpop.f32.mrb[24].mxu0 }
 0x27c   : > { %v2815_v26 = vpop.f32.mrb[25].mxu0 }
 0x27d   : > { %v2817_v27 = vpop.f32.mrb[26].mxu0 }
 0x27e   : > { %v2819_v28 = vpop.f32.mrb[27].mxu0 }
 0x283   : > { %v2821_v29 = vpop.f32.mrb[28].mxu0 }
 0x284   : > { %v2823_v30 = vpop.f32.mrb[29].mxu0 }
 0x285   : > { %v2825_v31 = vpop.f32.mrb[30].mxu0 }
 0x286   : > { %v2827_v32 = vpop.f32.mrb[31].mxu0 }
 0x28b   : > { %v2829_v33 = vpop.f32.mrb[32].mxu0 }
 0x28c   : > { %v2831_v34 = vpop.f32.mrb[33].mxu0 }
 0x28d   : > { %v2833_v35 = vpop.f32.mrb[34].mxu0 }
 0x28e   : > { %v2835_v36 = vpop.f32.mrb[35].mxu0 }
 0x293   : > { %v2837_v37 = vpop.f32.mrb[36].mxu0 }
 0x294   : > { %v2839_v38 = vpop.f32.mrb[37].mxu0 }
 0x295   : > { %v2841_v39 = vpop.f32.mrb[38].mxu0 }
 0x296   : > { %v2843_v40 = vpop.f32.mrb[39].mxu0 }
 0x29b   : > { %v2845_v41 = vpop.f32.mrb[40].mxu0 }
 0x29c   : > { %v2847_v42 = vpop.f32.mrb[41].mxu0 }
 0x29d   : > { %v2849_v43 = vpop.f32.mrb[42].mxu0 }
 0x29e   : > { %v2851_v46 = vpop.f32.mrb[43].mxu0 }
 0x2a3   : > { %v2853_v47 = vpop.f32.mrb[44].mxu0 }
 0x2a4   : > { %v2855_v48 = vpop.f32.mrb[45].mxu0 }
 0x2a5   : > { %v2857_v49 = vpop.f32.mrb[46].mxu0 }
 0x2a6   : > { %v2859_v50 = vpop.f32.mrb[47].mxu0 }
 0x2ab   : > { %v2861_v51 = vpop.f32.mrb[48].mxu0 }
 0x2ac   : > { %v2863_v52 = vpop.f32.mrb[49].mxu0 }
 0x2ad   : > { %v2865_v53 = vpop.f32.mrb[50].mxu0 }
 0x2ae   : > { %v2867_v54 = vpop.f32.mrb[51].mxu0 }
 0x2b4   : > { %v952_v55 = vpop.f32.mrb[8].mxu1 }
 0x2b5   : > { %v2869_v56 = vadd.f32 %v952_v55, %v653_v5  ;;  %v954_v57 = vpop.f32.mrb[9].mxu1 }
 0x2b6   : > { %v2871_v58 = vadd.f32 %v954_v57, %v655_v6  ;;  %v956_v59 = vpop.f32.mrb[10].mxu1 }
 0x2b7   : > { %v2873_v60 = vadd.f32 %v956_v59, %v657_v7  ;;  %v958_v61 = vpop.f32.mrb[11].mxu1 }
 0x2b8   : > { %v2875_v62 = vadd.f32 %v958_v61, %v659_v8  ;;  %v1111_v63 = vmax.f32 %v2869_v56, %v2871_v58 }
 0x2ba   : > { %1112 = vmax.xlane.f32.xlu0 %v1111_v63  ;;  %v1114_v1 = vmax.f32 %v2873_v60, %v2875_v62 }
 0x2bc   : > { %v962_v2 = vpop.f32.mrb[12].mxu1  ;;  %1115 = vmax.xlane.f32.xlu1 %v1114_v1 }
 0x2bd   : > { %v2881_v3 = vadd.f32 %v962_v2, %v663_v10  ;;  %v964_v4 = vpop.f32.mrb[13].mxu1 }
 0x2be   : > { %v2883_v5 = vadd.f32 %v964_v4, %v665_v11  ;;  %v966_v6 = vpop.f32.mrb[14].mxu1 }
 0x2bf   : > { %v2885_v7 = vadd.f32 %v966_v6, %v667_v12  ;;  %v968_v9 = vpop.f32.mrb[15].mxu1 }
 0x2c0   : > { %v2887_v8 = vadd.f32 %v968_v9, %v669_v13  ;;  %v1117_v55 = vmax.f32 %v2881_v3, %v2883_v5 }
 0x2c2   : > { %1118 = vmax.xlane.f32.xlu0 %v1117_v55  ;;  %v1120_v59 = vmax.f32 %v2885_v7, %v2887_v8 }
 0x2c4   : > { %v972_v57 = vpop.f32.mrb[16].mxu1 }
 0x2c5   : > { %v2894_v10 = vadd.f32 %v972_v57, %v2789_v14  ;;  %v974_v61 = vpop.f32.mrb[17].mxu1 }
 0x2c6   : > { %v2897_v11 = vadd.f32 %v974_v61, %v2791_v15  ;;  %v976_v12 = vpop.f32.mrb[18].mxu1  ;;  %1121 = vmax.xlane.f32.xlu0 %v1120_v59 }
 0x2c7   : > { %v2900_v13 = vadd.f32 %v976_v12, %v2793_v16  ;;  %v978_v63 = vpop.f32.mrb[19].mxu1 }
 0x2c8   : > { %v2903_v1 = vadd.f32 %v978_v63, %v2795_v17  ;;  %v1123_v2 = vmax.f32 %v2894_v10, %v2897_v11 }
 0x2ca   : > { %1124 = vmax.xlane.f32.xlu0 %v1123_v2  ;;  %v1126_v14 = vmax.f32 %v2900_v13, %v2903_v1 }
 0x2cc   : > { %v982_v4 = vpop.f32.mrb[20].mxu1 }
 0x2cd   : > { %v2910_v15 = vadd.f32 %v982_v4, %v2797_v0  ;;  %v984_v6 = vpop.f32.mrb[21].mxu1  ;;  %v2934_v4 = vpop.f32.mrb[52].mxu0 }
 0x2ce   : > { %v2913_v9 = vadd.f32 %v984_v6, %v2799_v18  ;;  %v986_v16 = vpop.f32.mrb[22].mxu1  ;;  %1127 = vmax.xlane.f32.xlu0 %v1126_v14 }
 0x2cf   : > { %v2916_v17 = vadd.f32 %v986_v16, %v2801_v19  ;;  %v988_v55 = vpop.f32.mrb[23].mxu1 }
 0x2d0   : > { %v2919_v57 = vadd.f32 %v988_v55, %v2803_v20  ;;  %v1129_v59 = vmax.f32 %v2910_v15, %v2913_v9 }
 0x2d2   : > { %1130 = vmax.xlane.f32.xlu0 %v1129_v59  ;;  %v1132_v0 = vmax.f32 %v2916_v17, %v2919_v57 }
 0x2d4   : > { %v992_v61 = vpop.f32.mrb[24].mxu1 }
 0x2d5   : > { %v2926_v18 = vadd.f32 %v992_v61, %v2805_v21  ;;  %v994_v12 = vpop.f32.mrb[25].mxu1  ;;  %v2941_v21 = vpop.f32.mrb[53].mxu0 }
 0x2d6   : > { %v2929_v63 = vadd.f32 %v994_v12, %v2807_v22  ;;  %v996_v19 = vpop.f32.mrb[26].mxu1  ;;  %1133 = vmax.xlane.f32.xlu0 %v1132_v0  ;;  %v2943_v16 = vpop.f32.mrb[54].mxu0 }
 0x2d7   : > { %v2932_v20 = vadd.f32 %v996_v19, %v2809_v23  ;;  %v998_v2 = vpop.f32.mrb[27].mxu1  ;;  %v2947_v55 = vpop.f32.mrb[55].mxu0 }
 0x2d8   : > { %v2937_v14 = vadd.f32 %v998_v2, %v2811_v24  ;;  %v1135_v6 = vmax.f32 %v2926_v18, %v2929_v63  ;;  %v2958_v2 = vpop.f32.mrb[56].mxu0 }
 0x2d9   : > { %v2965_v45 = vpop.f32.mrb[57].mxu0 }
 0x2da   : > { %1136 = vmax.xlane.f32.xlu0 %v1135_v6  ;;  %v1138_v22 = vmax.f32 %v2932_v20, %v2937_v14 }
 0x2dc   : > { %v1002_v23 = vpop.f32.mrb[28].mxu1  ;;  %1139 = vmax.xlane.f32.xlu1 %v1138_v22 }
 0x2dd   : > { %v2950_v59 = vadd.f32 %v1002_v23, %v2813_v25  ;;  %v1004_v24 = vpop.f32.mrb[29].mxu1  ;;  %v2967_v25 = vpop.f32.mrb[58].mxu0 }
 0x2de   : > { %v2953_v61 = vadd.f32 %v1004_v24, %v2815_v26  ;;  %v1006_v0 = vpop.f32.mrb[30].mxu1  ;;  %v2971_v23 = vpop.f32.mrb[59].mxu0 }
 0x2df   : > { %v2956_v12 = vadd.f32 %v1006_v0, %v2817_v27  ;;  %v1008_v19 = vpop.f32.mrb[31].mxu1 }
 0x2e0   : > { %3579 = vst [vmem:[#allocation20_spill] sm:$0xff] %v2953_v61  ;;  %v2961_v6 = vadd.f32 %v1008_v19, %v2819_v28  ;;  %v1141_v22 = vmax.f32 %v2950_v59, %v2953_v61 }
 0x2e1   : > { %3580 = vst [vmem:[#allocation21_spill] sm:$0xff] %v2956_v12 }
 0x2e2   : > { %3581 = vst [vmem:[#allocation22_spill] sm:$0xff] %v2961_v6  ;;  %1142 = vmax.xlane.f32.xlu0 %v1141_v22  ;;  %v1144_v26 = vmax.f32 %v2956_v12, %v2961_v6  ;;  %v2982_v22 = vpop.f32.mrb[60].mxu0 }
 0x2e3   : > { %v2989_v12 = vpop.f32.mrb[61].mxu0 }
 0x2e4   : > { %v1012_v27 = vpop.f32.mrb[32].mxu1  ;;  %1145 = vmax.xlane.f32.xlu1 %v1144_v26 }
 0x2e5   : > { %v2974_v24 = vadd.f32 %v1012_v27, %v2821_v29  ;;  %v1014_v28 = vpop.f32.mrb[33].mxu1  ;;  %v2991_v29 = vpop.f32.mrb[62].mxu0 }
 0x2e6   : > { %v2977_v0 = vadd.f32 %v1014_v28, %v2823_v30  ;;  %v1016_v19 = vpop.f32.mrb[34].mxu1  ;;  %v2995_v27 = vpop.f32.mrb[63].mxu0 }
 0x2e7   : > { %3582 = vst [vmem:[#allocation23_spill] sm:$0xff] %v2974_v24  ;;  %v2980_v44 = vadd.f32 %v1016_v19, %v2825_v31  ;;  %v1018_v61 = vpop.f32.mrb[35].mxu1 }
 0x2e8   : > { %3583 = vst [vmem:[#allocation24_spill] sm:$0xff] %v2977_v0  ;;  %v2985_v6 = vadd.f32 %v1018_v61, %v2827_v32  ;;  %v1147_v26 = vmax.f32 %v2974_v24, %v2977_v0 }
 0x2e9   : > { %3584 = vst [vmem:[#allocation25_spill] sm:$0xff] %v2980_v44 }
 0x2ea   : > { %3585 = vst [vmem:[#allocation26_spill] sm:$0xff] %v2985_v6  ;;  %1148 = vmax.xlane.f32.xlu0 %v1147_v26  ;;  %v1150_v30 = vmax.f32 %v2980_v44, %v2985_v6  ;;  %v3006_v26 = vpop.f32.mrb[64].mxu0 }
 0x2eb   : > { %v3013_v44 = vpop.f32.mrb[65].mxu0 }
 0x2ec   : > { %v1022_v31 = vpop.f32.mrb[36].mxu1  ;;  %1151 = vmax.xlane.f32.xlu1 %v1150_v30 }
 0x2ed   : > { %v2998_v28 = vadd.f32 %v1022_v31, %v2829_v33  ;;  %v1024_v32 = vpop.f32.mrb[37].mxu1  ;;  %v3015_v33 = vpop.f32.mrb[66].mxu0 }
 0x2ee   : > { %v3001_v61 = vadd.f32 %v1024_v32, %v2831_v34  ;;  %v1026_v19 = vpop.f32.mrb[38].mxu1  ;;  %v3019_v31 = vpop.f32.mrb[67].mxu0 }
 0x2ef   : > { %3586 = vst [vmem:[#allocation27_spill] sm:$0xff] %v2998_v28  ;;  %v3004_v0 = vadd.f32 %v1026_v19, %v2833_v35  ;;  %v1028_v24 = vpop.f32.mrb[39].mxu1 }
 0x2f0   : > { %3587 = vst [vmem:[#allocation28_spill] sm:$0xff] %v3001_v61  ;;  %v3009_v6 = vadd.f32 %v1028_v24, %v2835_v36  ;;  %v1153_v30 = vmax.f32 %v2998_v28, %v3001_v61 }
 0x2f2   : > { %3588 = vst [vmem:[#allocation29_spill] sm:$0xff] %v3009_v6  ;;  %1154 = vmax.xlane.f32.xlu0 %v1153_v30  ;;  %v1156_v34 = vmax.f32 %v3004_v0, %v3009_v6 }
 0x2f4   : > { %v1032_v35 = vpop.f32.mrb[40].mxu1  ;;  %1157 = vmax.xlane.f32.xlu1 %v1156_v34 }
 0x2f5   : > { %v3022_v32 = vadd.f32 %v1032_v35, %v2837_v37  ;;  %v1034_v36 = vpop.f32.mrb[41].mxu1 }
 0x2f6   : > { %v3025_v24 = vadd.f32 %v1034_v36, %v2839_v38  ;;  %v1036_v19 = vpop.f32.mrb[42].mxu1 }
 0x2f7   : > { %v3028_v61 = vadd.f32 %v1036_v19, %v2841_v39  ;;  %v1038_v28 = vpop.f32.mrb[43].mxu1 }
 0x2f8   : > { %v3031_v30 = vadd.f32 %v1038_v28, %v2843_v40  ;;  %v1159_v6 = vmax.f32 %v3022_v32, %v3025_v24 }
 0x2fa   : > { %1160 = vmax.xlane.f32.xlu0 %v1159_v6  ;;  %v1162_v37 = vmax.f32 %v3028_v61, %v3031_v30 }
 0x2fc   : > { %v1042_v34 = vpop.f32.mrb[44].mxu1  ;;  %1163 = vmax.xlane.f32.xlu1 %v1162_v37 }
 0x2fd   : > { %v3038_v38 = vadd.f32 %v1042_v34, %v2845_v41  ;;  %v1044_v35 = vpop.f32.mrb[45].mxu1 }
 0x2fe   : > { %v3041_v39 = vadd.f32 %v1044_v35, %v2847_v42  ;;  %v1046_v36 = vpop.f32.mrb[46].mxu1 }
 0x2ff   : > { %v3044_v40 = vadd.f32 %v1046_v36, %v2849_v43  ;;  %v1048_v28 = vpop.f32.mrb[47].mxu1 }
 0x300   : > { %v3047_v19 = vadd.f32 %v1048_v28, %v2851_v46  ;;  %v1165_v6 = vmax.f32 %v3038_v38, %v3041_v39 }
 0x302   : > { %1166 = vmax.xlane.f32.xlu0 %v1165_v6  ;;  %v1168_v41 = vmax.f32 %v3044_v40, %v3047_v19 }
 0x304   : > { %v1052_v37 = vpop.f32.mrb[48].mxu1  ;;  %1169 = vmax.xlane.f32.xlu1 %v1168_v41 }
 0x305   : > { %v3054_v42 = vadd.f32 %v1052_v37, %v2853_v47  ;;  %v1054_v34 = vpop.f32.mrb[49].mxu1 }
 0x306   : > { %v3057_v43 = vadd.f32 %v1054_v34, %v2855_v48  ;;  %v1056_v35 = vpop.f32.mrb[50].mxu1 }
 0x307   : > { %v3060_v46 = vadd.f32 %v1056_v35, %v2857_v49  ;;  %v1058_v36 = vpop.f32.mrb[51].mxu1 }
 0x308   : > { %v3063_v28 = vadd.f32 %v1058_v36, %v2859_v50  ;;  %v1171_v6 = vmax.f32 %v3054_v42, %v3057_v43 }
 0x30a   : > { %1172 = vmax.xlane.f32.xlu0 %v1171_v6  ;;  %v1174_v47 = vmax.f32 %v3060_v46, %v3063_v28 }
 0x30c   : > { %v1062_v41 = vpop.f32.mrb[52].mxu1  ;;  %1175 = vmax.xlane.f32.xlu1 %v1174_v47 }
 0x30d   : > { %v3070_v48 = vadd.f32 %v1062_v41, %v2861_v51  ;;  %v1064_v37 = vpop.f32.mrb[53].mxu1 }
 0x30e   : > { %v3073_v49 = vadd.f32 %v1064_v37, %v2863_v52  ;;  %v1066_v34 = vpop.f32.mrb[54].mxu1 }
 0x30f   : > { %v3076_v50 = vadd.f32 %v1066_v34, %v2865_v53  ;;  %v1068_v35 = vpop.f32.mrb[55].mxu1 }
 0x310   : > { %3589 = vst [vmem:[#allocation30_spill] sm:$0xff] %v3073_v49  ;;  %v3079_v36 = vadd.f32 %v1068_v35, %v2867_v54  ;;  %v1177_v6 = vmax.f32 %v3070_v48, %v3073_v49 }
 0x311   : > { %3590 = vst [vmem:[#allocation31_spill] sm:$0xff] %v3076_v50 }
 0x312   : > { %3591 = vst [vmem:[#allocation32_spill] sm:$0xff] %v3079_v36  ;;  %1178 = vmax.xlane.f32.xlu0 %v1177_v6  ;;  %v1180_v51 = vmax.f32 %v3076_v50, %v3079_v36 }
 0x314   : > { %1181 = vmax.xlane.f32.xlu1 %v1180_v51  ;;  %v1072_v47 = vpop.f32.mrb[56].mxu1 }
 0x315   : > { %v3086_v52 = vadd.f32 %v1072_v47, %v2934_v4  ;;  %v1074_v41 = vpop.f32.mrb[57].mxu1 }
 0x316   : > { %v3089_v53 = vadd.f32 %v1074_v41, %v2941_v21  ;;  %v1076_v37 = vpop.f32.mrb[58].mxu1 }
 0x317   : > { %v3092_v54 = vadd.f32 %v1076_v37, %v2943_v16  ;;  %v1078_v34 = vpop.f32.mrb[59].mxu1 }
 0x318   : > { %v3095_v35 = vadd.f32 %v1078_v34, %v2947_v55 }
 0x31c   : > { %v1082_v6 = vpop.f32.mrb[60].mxu1 }
 0x31d   : > { %v3098_v36 = vadd.f32 %v1082_v6, %v2958_v2  ;;  %v1084_v51 = vpop.f32.mrb[61].mxu1 }
 0x31e   : > { %v3101_v4 = vadd.f32 %v1084_v51, %v2965_v45  ;;  %v1086_v47 = vpop.f32.mrb[62].mxu1 }
 0x31f   : > { %v3104_v21 = vadd.f32 %v1086_v47, %v2967_v25  ;;  %v1088_v41 = vpop.f32.mrb[63].mxu1 }
 0x320   : > { %v3107_v16 = vadd.f32 %v1088_v41, %v2971_v23 }
 0x324   : > { %v1092_v37 = vpop.f32.mrb[64].mxu1 }
 0x325   : > { %v3110_v55 = vadd.f32 %v1092_v37, %v2982_v22  ;;  %v1094_v34 = vpop.f32.mrb[65].mxu1 }
 0x326   : > { %v3113_v2 = vadd.f32 %v1094_v34, %v2989_v12  ;;  %v1096_v6 = vpop.f32.mrb[66].mxu1 }
 0x327   : > { %v3116_v45 = vadd.f32 %v1096_v6, %v2991_v29  ;;  %v1098_v51 = vpop.f32.mrb[67].mxu1 }
 0x328   : > { %v3119_v25 = vadd.f32 %v1098_v51, %v2995_v27 }
 0x32c   : > { %v1102_v47 = vpop.f32.mrb[68].mxu1 }
 0x32d   : > { %v3122_v23 = vadd.f32 %v1102_v47, %v3006_v26  ;;  %v1104_v41 = vpop.f32.mrb[69].mxu1 }
 0x32e   : > { %v3125_v22 = vadd.f32 %v1104_v41, %v3013_v44  ;;  %v1106_v37 = vpop.f32.mrb[70].mxu1 }
 0x32f   : > { %v3128_v12 = vadd.f32 %v1106_v37, %v3015_v33  ;;  %v1108_v34 = vpop.f32.mrb[71].mxu1 }
 0x330   : > { %v3131_v29 = vadd.f32 %v1108_v34, %v3019_v31 }
 0x347   : > { %v1113_v6 = vpop.xlane.xlu0 %1112 }
 0x348   : > { %v1207_v27 = vsub.f32 %v2869_v56, %v1113_v6  ;;  %v1208_v51 = vsub.f32 %v2871_v58, %v1113_v6 }
 0x349   : > { %v1116_v50 = vpop.xlane.xlu1 %1115 }
 0x34a   : > { %v1271_v26 = vmul.f32 1.442695, %v1207_v27  ;;  %v1273_v47 = vmul.f32 1.442695, %v1208_v51  ;;  %v1209_v49 = vsub.f32 %v2873_v60, %v1116_v50  ;;  %v1210_v44 = vsub.f32 %v2875_v62, %v1116_v50 }
 0x34c   : > { %2050 = vpow2.f32 %v1271_v26  ;;  %v1275_v41 = vmul.f32 1.442695, %v1209_v49  ;;  %v1277_v33 = vmul.f32 1.442695, %v1210_v44 }
 0x34d   : > { %2052 = vpow2.f32 %v1273_v47 }
 0x34e   : > { %2054 = vpow2.f32 %v1275_v41 }
 0x34f   : > { %2056 = vpow2.f32 %v1277_v33  ;;  %v1119_v31 = vpop.xlane.xlu0 %1118 }
 0x350   : > { %v1211_v37 = vsub.f32 %v2881_v3, %v1119_v31  ;;  %v1212_v56 = vsub.f32 %v2883_v5, %v1119_v31  ;;  %v1183_v31 = vmax.f32 %v3086_v52, %v3089_v53 }
 0x352   : > { %v1279_v34 = vmul.f32 1.442695, %v1211_v37  ;;  %v1281_v58 = vmul.f32 1.442695, %v1212_v56  ;;  %v1186_v56 = vmax.f32 %v3092_v54, %v3095_v35 }
 0x353   : > { %v1122_v6 = vpop.xlane.xlu0 %1121 }
 0x354   : > { %2058 = vpow2.f32 %v1279_v34  ;;  %v1213_v27 = vsub.f32 %v2885_v7, %v1122_v6  ;;  %v1214_v60 = vsub.f32 %v2887_v8, %v1122_v6 }
 0x355   : > { %2060 = vpow2.f32 %v1281_v58 }
 0x356   : > { %v3141_v62 = vpop.eup %2050  ;;  %v1283_v49 = vmul.f32 1.442695, %v1213_v27  ;;  %v1285_v50 = vmul.f32 1.442695, %v1214_v60 }
 0x357   : > { %v3143_v51 = vpop.eup %2052  ;;  %v1125_v26 = vpop.xlane.xlu0 %1124 }
 0x358   : > { %v3145_v47 = vpop.eup %2054  ;;  %2062 = vpow2.f32 %v1283_v49  ;;  %v1215_v3 = vsub.f32 %v2894_v10, %v1125_v26  ;;  %v1216_v5 = vsub.f32 %v2897_v11, %v1125_v26  ;;  %v1399_v7 = vadd.f32 %v3143_v51, %v3141_v62 }
 0x359   : > { %v3151_v44 = vpop.eup %2056  ;;  %2064 = vpow2.f32 %v1285_v50 }
 0x35a   : > { %v1287_v8 = vmul.f32 1.442695, %v1215_v3  ;;  %v1289_v41 = vmul.f32 1.442695, %v1216_v5  ;;  %1400 = vadd.xlane.f32.xlu0 %v1399_v7  ;;  %v1402_v33 = vadd.f32 %v3151_v44, %v3145_v47  ;;  %v1189_v5 = vmax.f32 %v3098_v36, %v3101_v4 }
 0x35b   : > { %v1128_v37 = vpop.xlane.xlu0 %1127 }
 0x35c   : > { %2066 = vpow2.f32 %v1287_v8  ;;  %v1217_v10 = vsub.f32 %v2900_v13, %v1128_v37  ;;  %v1218_v11 = vsub.f32 %v2903_v1, %v1128_v37  ;;  %1403 = vadd.xlane.f32.xlu1 %v1402_v33 }
 0x35d   : > { %2068 = vpow2.f32 %v1289_v41 }
 0x35e   : > { %v3161_v34 = vpop.eup %2058  ;;  %v1291_v58 = vmul.f32 1.442695, %v1217_v10  ;;  %v1293_v6 = vmul.f32 1.442695, %v1218_v11  ;;  %1184 = vmax.xlane.f32.xlu0 %v1183_v31 }
 0x35f   : > { %v3163_v27 = vpop.eup %2060  ;;  %v1131_v60 = vpop.xlane.xlu0 %1130 }
 0x360   : > { %2070 = vpow2.f32 %v1291_v58  ;;  %v1219_v49 = vsub.f32 %v2910_v15, %v1131_v60  ;;  %v1220_v13 = vsub.f32 %v2913_v9, %v1131_v60  ;;  %1187 = vmax.xlane.f32.xlu1 %v1186_v56  ;;  %v1405_v1 = vadd.f32 %v3163_v27, %v3161_v34 }
 0x361   : > { %2072 = vpow2.f32 %v1293_v6  ;;  %v1192_v56 = vmax.f32 %v3104_v21, %v3107_v16  ;;  %v1195_v60 = vmax.f32 %v3110_v55, %v3113_v2 }
 0x362   : > { %v3169_v50 = vpop.eup %2062  ;;  %v1295_v26 = vmul.f32 1.442695, %v1219_v49  ;;  %v1297_v3 = vmul.f32 1.442695, %v1220_v13  ;;  %1406 = vadd.xlane.f32.xlu0 %v1405_v1 }
 0x363   : > { %v3173_v7 = vpop.eup %2064  ;;  %v1134_v8 = vpop.xlane.xlu0 %1133 }
 0x364   : > { %2074 = vpow2.f32 %v1295_v26  ;;  %v1221_v15 = vsub.f32 %v2916_v17, %v1134_v8  ;;  %v1222_v9 = vsub.f32 %v2919_v57, %v1134_v8  ;;  %v1408_v41 = vadd.f32 %v3173_v7, %v3169_v50 }
 0x365   : > { %2076 = vpow2.f32 %v1297_v3 }
 0x366   : > { %v3179_v33 = vpop.eup %2066  ;;  %v1299_v31 = vmul.f32 1.442695, %v1221_v15  ;;  %v1301_v37 = vmul.f32 1.442695, %v1222_v9  ;;  %1409 = vadd.xlane.f32.xlu1 %v1408_v41  ;;  %1190 = vmax.xlane.f32.xlu0 %v1189_v5  ;;  %v3592_v41 = vld [vmem:[#allocation20_spill] sm:$0xff] }
 0x367   : > { %v3181_v10 = vpop.eup %2068  ;;  %v1137_v11 = vpop.xlane.xlu0 %1136 }
 0x368   : > { %2078 = vpow2.f32 %v1299_v31  ;;  %v1223_v17 = vsub.f32 %v2926_v18, %v1137_v11  ;;  %v1224_v57 = vsub.f32 %v2929_v63, %v1137_v11  ;;  %v1411_v58 = vadd.f32 %v3181_v10, %v3179_v33 }
 0x369   : > { %2080 = vpow2.f32 %v1301_v37  ;;  %v1140_v6 = vpop.xlane.xlu1 %1139  ;;  %v1198_v11 = vmax.f32 %v3116_v45, %v3119_v25 }
 0x36a   : > { %v3191_v49 = vpop.eup %2070  ;;  %v1303_v13 = vmul.f32 1.442695, %v1223_v17  ;;  %v1305_v1 = vmul.f32 1.442695, %v1224_v57  ;;  %v1225_v26 = vsub.f32 %v2932_v20, %v1140_v6  ;;  %v1226_v3 = vsub.f32 %v2937_v14, %v1140_v6  ;;  %1412 = vadd.xlane.f32.xlu0 %v1411_v58  ;;  %1193 = vmax.xlane.f32.xlu1 %v1192_v56 }
 0x36b   : > { %v3195_v18 = vpop.eup %2072  ;;  %v1201_v17 = vmax.f32 %v3122_v23, %v3125_v22 }
 0x36c   : > { %2082 = vpow2.f32 %v1303_v13  ;;  %v1307_v63 = vmul.f32 1.442695, %v1225_v26  ;;  %v1309_v5 = vmul.f32 1.442695, %v1226_v3  ;;  %v1414_v8 = vadd.f32 %v3195_v18, %v3191_v49 }
 0x36d   : > { %2084 = vpow2.f32 %v1305_v1  ;;  %v3594_v1 = vld [vmem:[#allocation22_spill] sm:$0xff] }
 0x36e   : > { %v3199_v15 = vpop.eup %2074  ;;  %2086 = vpow2.f32 %v1307_v63  ;;  %1415 = vadd.xlane.f32.xlu1 %v1414_v8  ;;  %1196 = vmax.xlane.f32.xlu0 %v1195_v60  ;;  %v3593_v60 = vld [vmem:[#allocation21_spill] sm:$0xff] }
 0x36f   : > { %v3201_v9 = vpop.eup %2076  ;;  %2088 = vpow2.f32 %v1309_v5  ;;  %v1143_v20 = vpop.xlane.xlu0 %1142 }
 0x370   : > { %v1227_v14 = vsub.f32 %v2950_v59, %v1143_v20  ;;  %v1228_v31 = vsub.f32 %v3592_v41, %v1143_v20  ;;  %v1417_v37 = vadd.f32 %v3201_v9, %v3199_v15 }
 0x371   : > { %v1146_v56 = vpop.xlane.xlu1 %1145 }
 0x372   : > { %v3211_v57 = vpop.eup %2078  ;;  %v1311_v58 = vmul.f32 1.442695, %v1227_v14  ;;  %v1313_v6 = vmul.f32 1.442695, %v1228_v31  ;;  %v1229_v13 = vsub.f32 %v3593_v60, %v1146_v56  ;;  %v1230_v59 = vsub.f32 %v3594_v1, %v1146_v56  ;;  %1418 = vadd.xlane.f32.xlu0 %v1417_v37  ;;  %1199 = vmax.xlane.f32.xlu1 %v1198_v11  ;;  %v3598_v31 = vld [vmem:[#allocation23_spill] sm:$0xff]  ;;  %v3599_v11 = vld [vmem:[#allocation24_spill] sm:$0xff] }
 0x373   : > { %v3215_v26 = vpop.eup %2080 }
 0x374   : > { %2090 = vpow2.f32 %v1311_v58  ;;  %v1315_v3 = vmul.f32 1.442695, %v1229_v13  ;;  %v1317_v63 = vmul.f32 1.442695, %v1230_v59  ;;  %v1420_v5 = vadd.f32 %v3215_v26, %v3211_v57  ;;  %v3601_v59 = vld [vmem:[#allocation25_spill] sm:$0xff] }
 0x375   : > { %2092 = vpow2.f32 %v1313_v6  ;;  %v1204_v6 = vmax.f32 %v3128_v12, %v3131_v29 }
 0x376   : > { %v3219_v8 = vpop.eup %2082  ;;  %2094 = vpow2.f32 %v1315_v3  ;;  %1421 = vadd.xlane.f32.xlu1 %v1420_v5  ;;  %1202 = vmax.xlane.f32.xlu0 %v1201_v17 }
 0x377   : > { %3595 = vst [vmem:[#allocation20_spill] sm:$0xff] %v3219_v8  ;;  %v3221_v20 = vpop.eup %2084  ;;  %2096 = vpow2.f32 %v1317_v63  ;;  %v1149_v14 = vpop.xlane.xlu0 %1148  ;;  %v3602_v63 = vld [vmem:[#allocation26_spill] sm:$0xff] }
 0x378   : > { %3596 = vst [vmem:[#allocation21_spill] sm:$0xff] %v3221_v20  ;;  %v3223_v41 = vpop.eup %2086  ;;  %v1231_v37 = vsub.f32 %v3598_v31, %v1149_v14  ;;  %v1232_v56 = vsub.f32 %v3599_v11, %v1149_v14  ;;  %v1423_v58 = vadd.f32 %v3221_v20, %v3219_v8 }
 0x379   : > { %3597 = vst [vmem:[#allocation22_spill] sm:$0xff] %v3223_v41  ;;  %v3231_v60 = vpop.eup %2088  ;;  %v1152_v13 = vpop.xlane.xlu1 %1151 }
 0x37a   : > { %3600 = vst [vmem:[#allocation23_spill] sm:$0xff] %v3231_v60  ;;  %v1319_v17 = vmul.f32 1.442695, %v1231_v37  ;;  %v1321_v1 = vmul.f32 1.442695, %v1232_v56  ;;  %v1233_v3 = vsub.f32 %v3601_v59, %v1152_v13  ;;  %v1234_v5 = vsub.f32 %v3602_v63, %v1152_v13  ;;  %1424 = vadd.xlane.f32.xlu0 %v1423_v58  ;;  %1205 = vmax.xlane.f32.xlu1 %v1204_v6  ;;  %v3603_v13 = vld [vmem:[#allocation27_spill] sm:$0xff] }
 0x37b   : > { %v1426_v11 = vadd.f32 %v3231_v60, %v3223_v41  ;;  %v3604_v6 = vld [vmem:[#allocation28_spill] sm:$0xff] }
 0x37c   : > { %2098 = vpow2.f32 %v1319_v17  ;;  %v1323_v31 = vmul.f32 1.442695, %v1233_v3  ;;  %v1325_v14 = vmul.f32 1.442695, %v1234_v5 }
 0x37d   : > { %2100 = vpow2.f32 %v1321_v1 }
 0x37e   : > { %v3237_v8 = vpop.eup %2090  ;;  %2102 = vpow2.f32 %v1323_v31  ;;  %1427 = vadd.xlane.f32.xlu1 %v1426_v11  ;;  %v3605_v11 = vld [vmem:[#allocation29_spill] sm:$0xff] }
 0x37f   : > { %v3239_v20 = vpop.eup %2092  ;;  %2104 = vpow2.f32 %v1325_v14  ;;  %v1155_v37 = vpop.xlane.xlu0 %1154 }
 0x380   : > { %v3241_v56 = vpop.eup %2094  ;;  %v1235_v58 = vsub.f32 %v3603_v13, %v1155_v37  ;;  %v1236_v17 = vsub.f32 %v3604_v6, %v1155_v37  ;;  %v1429_v59 = vadd.f32 %v3239_v20, %v3237_v8 }
 0x381   : > { %v3247_v3 = vpop.eup %2096  ;;  %v1158_v1 = vpop.xlane.xlu1 %1157 }
 0x382   : > { %v1327_v63 = vmul.f32 1.442695, %v1235_v58  ;;  %v1329_v5 = vmul.f32 1.442695, %v1236_v17  ;;  %v1237_v31 = vsub.f32 %v3004_v0, %v1158_v1  ;;  %v1238_v41 = vsub.f32 %v3605_v11, %v1158_v1  ;;  %1430 = vadd.xlane.f32.xlu0 %v1429_v59 }
 0x383   : > { %v1432_v14 = vadd.f32 %v3247_v3, %v3241_v56 }
 0x384   : > { %2106 = vpow2.f32 %v1327_v63  ;;  %v1331_v13 = vmul.f32 1.442695, %v1237_v31  ;;  %v1333_v60 = vmul.f32 1.442695, %v1238_v41 }
 0x385   : > { %2108 = vpow2.f32 %v1329_v5  ;;  %1433 = vadd.xlane.f32.xlu1 %v1432_v14 }
 0x386   : > { %v3253_v37 = vpop.eup %2098  ;;  %2110 = vpow2.f32 %v1331_v13 }
 0x387   : > { %v3255_v6 = vpop.eup %2100  ;;  %2112 = vpow2.f32 %v1333_v60  ;;  %v1161_v58 = vpop.xlane.xlu0 %1160 }
 0x388   : > { %v3257_v17 = vpop.eup %2102  ;;  %v1239_v0 = vsub.f32 %v3022_v32, %v1161_v58  ;;  %v1240_v59 = vsub.f32 %v3025_v24, %v1161_v58  ;;  %v1435_v1 = vadd.f32 %v3255_v6, %v3253_v37 }
 0x389   : > { %v3263_v63 = vpop.eup %2104  ;;  %v1164_v41 = vpop.xlane.xlu1 %1163 }
 0x38a   : > { %v1335_v5 = vmul.f32 1.442695, %v1239_v0  ;;  %v1337_v31 = vmul.f32 1.442695, %v1240_v59  ;;  %v1241_v11 = vsub.f32 %v3028_v61, %v1164_v41  ;;  %v1242_v14 = vsub.f32 %v3031_v30, %v1164_v41  ;;  %1436 = vadd.xlane.f32.xlu0 %v1435_v1 }
 0x38b   : > { %v1438_v60 = vadd.f32 %v3263_v63, %v3257_v17 }
 0x38c   : > { %2114 = vpow2.f32 %v1335_v5  ;;  %v1339_v32 = vmul.f32 1.442695, %v1241_v11  ;;  %v1341_v13 = vmul.f32 1.442695, %v1242_v14 }
 0x38d   : > { %2116 = vpow2.f32 %v1337_v31  ;;  %1439 = vadd.xlane.f32.xlu1 %v1438_v60 }
 0x38e   : > { %v3269_v24 = vpop.eup %2106  ;;  %2118 = vpow2.f32 %v1339_v32 }
 0x38f   : > { %v3271_v58 = vpop.eup %2108  ;;  %2120 = vpow2.f32 %v1341_v13  ;;  %v1167_v0 = vpop.xlane.xlu0 %1166 }
 0x390   : > { %v3273_v59 = vpop.eup %2110  ;;  %v1243_v61 = vsub.f32 %v3038_v38, %v1167_v0  ;;  %v1244_v30 = vsub.f32 %v3041_v39, %v1167_v0  ;;  %v1441_v1 = vadd.f32 %v3271_v58, %v3269_v24 }
 0x391   : > { %v3279_v41 = vpop.eup %2112  ;;  %v1170_v5 = vpop.xlane.xlu1 %1169 }
 0x392   : > { %v1343_v31 = vmul.f32 1.442695, %v1243_v61  ;;  %v1345_v11 = vmul.f32 1.442695, %v1244_v30  ;;  %v1245_v14 = vsub.f32 %v3044_v40, %v1170_v5  ;;  %v1246_v60 = vsub.f32 %v3047_v19, %v1170_v5  ;;  %1442 = vadd.xlane.f32.xlu0 %v1441_v1 }
 0x393   : > { %v1444_v32 = vadd.f32 %v3279_v41, %v3273_v59 }
 0x394   : > { %2122 = vpow2.f32 %v1343_v31  ;;  %v1347_v38 = vmul.f32 1.442695, %v1245_v14  ;;  %v1349_v13 = vmul.f32 1.442695, %v1246_v60 }
 0x395   : > { %2124 = vpow2.f32 %v1345_v11  ;;  %1445 = vadd.xlane.f32.xlu1 %v1444_v32 }
 0x396   : > { %v3285_v39 = vpop.eup %2114  ;;  %2126 = vpow2.f32 %v1347_v38 }
 0x397   : > { %3606 = vst [vmem:[#allocation24_spill] sm:$0xff] %v3285_v39  ;;  %v3287_v0 = vpop.eup %2116  ;;  %2128 = vpow2.f32 %v1349_v13  ;;  %v1173_v61 = vpop.xlane.xlu0 %1172 }
 0x398   : > { %v3289_v30 = vpop.eup %2118  ;;  %v1247_v40 = vsub.f32 %v3054_v42, %v1173_v61  ;;  %v1248_v19 = vsub.f32 %v3057_v43, %v1173_v61  ;;  %v1447_v1 = vadd.f32 %v3287_v0, %v3285_v39  ;;  %v3611_v39 = vld [vmem:[#allocation32_spill] sm:$0xff] }
 0x399   : > { %3607 = vst [vmem:[#allocation25_spill] sm:$0xff] %v3289_v30  ;;  %v3295_v5 = vpop.eup %2120  ;;  %v1176_v31 = vpop.xlane.xlu1 %1175 }
 0x39a   : > { %3608 = vst [vmem:[#allocation26_spill] sm:$0xff] %v3295_v5  ;;  %v1351_v11 = vmul.f32 1.442695, %v1247_v40  ;;  %v1353_v14 = vmul.f32 1.442695, %v1248_v19  ;;  %v1249_v60 = vsub.f32 %v3060_v46, %v1176_v31  ;;  %v1250_v32 = vsub.f32 %v3063_v28, %v1176_v31  ;;  %1448 = vadd.xlane.f32.xlu0 %v1447_v1  ;;  %v3609_v28 = vld [vmem:[#allocation30_spill] sm:$0xff] }
 0x39b   : > { %v1450_v38 = vadd.f32 %v3295_v5, %v3289_v30 }
 0x39c   : > { %2130 = vpow2.f32 %v1351_v11  ;;  %v1355_v42 = vmul.f32 1.442695, %v1249_v60  ;;  %v1357_v13 = vmul.f32 1.442695, %v1250_v32 }
 0x39d   : > { %2132 = vpow2.f32 %v1353_v14  ;;  %1451 = vadd.xlane.f32.xlu1 %v1450_v38  ;;  %v3610_v38 = vld [vmem:[#allocation31_spill] sm:$0xff] }
 0x39e   : > { %v3301_v43 = vpop.eup %2122  ;;  %2134 = vpow2.f32 %v1355_v42 }
 0x39f   : > { %v3303_v61 = vpop.eup %2124  ;;  %2136 = vpow2.f32 %v1357_v13  ;;  %v1179_v40 = vpop.xlane.xlu0 %1178 }
 0x3a0   : > { %v3305_v19 = vpop.eup %2126  ;;  %v1251_v46 = vsub.f32 %v3070_v48, %v1179_v40  ;;  %v1252_v1 = vsub.f32 %v3609_v28, %v1179_v40  ;;  %v1453_v31 = vadd.f32 %v3303_v61, %v3301_v43 }
 0x3a1   : > { %v3311_v11 = vpop.eup %2128  ;;  %v1182_v14 = vpop.xlane.xlu1 %1181 }
 0x3a2   : > { %v1359_v60 = vmul.f32 1.442695, %v1251_v46  ;;  %v1361_v32 = vmul.f32 1.442695, %v1252_v1  ;;  %v1253_v42 = vsub.f32 %v3610_v38, %v1182_v14  ;;  %v1254_v30 = vsub.f32 %v3611_v39, %v1182_v14  ;;  %1454 = vadd.xlane.f32.xlu0 %v1453_v31 }
 0x3a3   : > { %v1456_v13 = vadd.f32 %v3311_v11, %v3305_v19 }
 0x3a4   : > { %2138 = vpow2.f32 %v1359_v60  ;;  %v1363_v48 = vmul.f32 1.442695, %v1253_v42  ;;  %v1365_v5 = vmul.f32 1.442695, %v1254_v30 }
 0x3a5   : > { %2140 = vpow2.f32 %v1361_v32  ;;  %1457 = vadd.xlane.f32.xlu1 %v1456_v13 }
 0x3a6   : > { %v3317_v40 = vpop.eup %2130  ;;  %2142 = vpow2.f32 %v1363_v48 }
 0x3a7   : > { %3612 = vst [vmem:[#allocation27_spill] sm:$0xff] %v3317_v40  ;;  %v3319_v28 = vpop.eup %2132  ;;  %2144 = vpow2.f32 %v1365_v5 }
 0x3a8   : > { %v3321_v46 = vpop.eup %2134  ;;  %v1459_v39 = vadd.f32 %v3319_v28, %v3317_v40 }
 0x3a9   : > { %3613 = vst [vmem:[#allocation28_spill] sm:$0xff] %v3321_v46  ;;  %v3325_v1 = vpop.eup %2136 }
 0x3aa   : > { %3614 = vst [vmem:[#allocation29_spill] sm:$0xff] %v3325_v1  ;;  %1460 = vadd.xlane.f32.xlu0 %v1459_v39  ;;  %v1462_v31 = vadd.f32 %v3325_v1, %v3321_v46 }
 0x3ac   : > { %1463 = vadd.xlane.f32.xlu1 %v1462_v31 }
 0x3ae   : > { %v3329_v30 = vpop.eup %2138 }
 0x3af   : > { %3615 = vst [vmem:[#allocation30_spill] sm:$0xff] %v3329_v30  ;;  %v3331_v14 = vpop.eup %2140 }
 0x3b0   : > { %3616 = vst [vmem:[#allocation31_spill] sm:$0xff] %v3331_v14  ;;  %v3333_v60 = vpop.eup %2142  ;;  %v1465_v5 = vadd.f32 %v3331_v14, %v3329_v30 }
 0x3b1   : > { %3617 = vst [vmem:[#allocation32_spill] sm:$0xff] %v3333_v60  ;;  %v3337_v32 = vpop.eup %2144 }
 0x3b2   : > { %3618 = vst [vmem:[#allocation33_spill] sm:$0xff] %v3337_v32  ;;  %1466 = vadd.xlane.f32.xlu0 %v1465_v5  ;;  %v1468_v38 = vadd.f32 %v3337_v32, %v3333_v60 }
 0x3b4   : > { %1469 = vadd.xlane.f32.xlu1 %v1468_v38 }
 0x3e7   : > { %v1401_v42 = vpop.xlane.xlu0 %1400 }
 0x3e8   : > { %2146 = vrcp.f32 %v1401_v42 }
 0x3e9   : > { %v1404_v13 = vpop.xlane.xlu1 %1403 }
 0x3ea   : > { %2148 = vrcp.f32 %v1404_v13 }
 0x3eb   : > { %v1185_v48 = vpop.xlane.xlu0 %1184 }
 0x3ec   : > { %v1255_v39 = vsub.f32 %v3086_v52, %v1185_v48  ;;  %v1256_v31 = vsub.f32 %v3089_v53, %v1185_v48 }
 0x3ed   : > { %v1188_v40 = vpop.xlane.xlu1 %1187 }
 0x3ee   : > { %v1367_v46 = vmul.f32 1.442695, %v1255_v39  ;;  %v1369_v1 = vmul.f32 1.442695, %v1256_v31  ;;  %v1257_v30 = vsub.f32 %v3092_v54, %v1188_v40  ;;  %v1258_v5 = vsub.f32 %v3095_v35, %v1188_v40 }
 0x3ef   : > { %v1407_v14 = vpop.xlane.xlu0 %1406 }
 0x3f0   : > { %2150 = vpow2.f32 %v1367_v46  ;;  %v1371_v60 = vmul.f32 1.442695, %v1257_v30  ;;  %v1373_v38 = vmul.f32 1.442695, %v1258_v5 }
 0x3f1   : > { %2152 = vpow2.f32 %v1369_v1 }
 0x3f2   : > { %v2147_v42 = vpop.eup %2146  ;;  %2154 = vpow2.f32 %v1371_v60 }
 0x3f3   : > { %2156 = vpow2.f32 %v1373_v38  ;;  %v1410_v13 = vpop.xlane.xlu1 %1409  ;;  %v1191_v32 = vpop.xlane.xlu0 %1190  ;;  %v1528_v54 = vmul.f32 %v2147_v42, %v3143_v51  ;;  %v1527_v40 = vmul.f32 %v2147_v42, %v3141_v62 }
 0x3f4   : > { %v2149_v52 = vpop.eup %2148  ;;  %2158 = vrcp.f32 %v1407_v14  ;;  %v1259_v53 = vsub.f32 %v3098_v36, %v1191_v32  ;;  %v1260_v48 = vsub.f32 %v3101_v4, %v1191_v32 }
 0x3f5   : > { %2160 = vrcp.f32 %v1410_v13  ;;  %v1530_v35 = vmul.f32 %v2149_v52, %v3151_v44  ;;  %v1529_v46 = vmul.f32 %v2149_v52, %v3145_v47 }
 0x3f6   : > { %v1375_v1 = vmul.f32 1.442695, %v1259_v53  ;;  %v1377_v30 = vmul.f32 1.442695, %v1260_v48 }
 0x3f7   : > { %v1413_v60 = vpop.xlane.xlu0 %1412  ;;  %v1194_v39 = vpop.xlane.xlu1 %1193  ;;  %v1592_v31 = vpack.c.bf16 %v1530_v35, %v1528_v54  ;;  %v1591_v5 = vpack.c.bf16 %v1529_v46, %v1527_v40 }
 0x3f8   : > { %2162 = vpow2.f32 %v1375_v1  ;;  %v1261_v36 = vsub.f32 %v3104_v21, %v1194_v39  ;;  %v1262_v4 = vsub.f32 %v3107_v16, %v1194_v39 }
 0x3f9   : > { %2164 = vpow2.f32 %v1377_v30  ;;  %1635 = vmatprep.subr.bf16.mxu0 %v1592_v31 }
 0x3fa   : > { %v3353_v51 = vpop.eup %2150  ;;  %2166 = vrcp.f32 %v1413_v60  ;;  %v1379_v44 = vmul.f32 1.442695, %v1261_v36  ;;  %v1381_v62 = vmul.f32 1.442695, %v1262_v4  ;;  %1636 = vmatpush1.bf16.xpose.msra.mxu0 %v1591_v5 }
 0x3fb   : > { %v3355_v47 = vpop.eup %2152  ;;  %v1416_v14 = vpop.xlane.xlu1 %1415 }
 0x3fc   : > { %v1197_v32 = vpop.xlane.xlu0 %1196  ;;  %v3357_v38 = vpop.eup %2154  ;;  %2168 = vpow2.f32 %v1379_v44  ;;  %v1471_v16 = vadd.f32 %v3355_v47, %v3353_v51 }
 0x3fd   : > { %v1263_v42 = vsub.f32 %v3110_v55, %v1197_v32  ;;  %v1264_v21 = vsub.f32 %v3113_v2, %v1197_v32  ;;  %v3363_v13 = vpop.eup %2156  ;;  %2170 = vpow2.f32 %v1381_v62 }
 0x3fe   : > { %v2159_v52 = vpop.eup %2158  ;;  %2172 = vrcp.f32 %v1416_v14  ;;  %1472 = vadd.xlane.f32.xlu0 %v1471_v16  ;;  %v1474_v54 = vadd.f32 %v3363_v13, %v3357_v38 }
 0x3ff   : > { %v1383_v53 = vmul.f32 1.442695, %v1263_v42  ;;  %v1385_v48 = vmul.f32 1.442695, %v1264_v21  ;;  %v2161_v35 = vpop.eup %2160  ;;  %v1200_v46 = vpop.xlane.xlu1 %1199  ;;  %v1532_v55 = vmul.f32 %v2159_v52, %v3163_v27  ;;  %v1531_v60 = vmul.f32 %v2159_v52, %v3161_v34 }
 0x400   : > { %v1419_v40 = vpop.xlane.xlu0 %1418  ;;  %v1265_v2 = vsub.f32 %v3116_v45, %v1200_v46  ;;  %v1266_v1 = vsub.f32 %v3119_v25, %v1200_v46  ;;  %1475 = vadd.xlane.f32.xlu1 %v1474_v54  ;;  %v1534_v30 = vmul.f32 %v2161_v35, %v3173_v7  ;;  %v1533_v39 = vmul.f32 %v2161_v35, %v3169_v50 }
 0x401   : > { %2174 = vpow2.f32 %v1383_v53 }
 0x402   : > { %2176 = vpow2.f32 %v1385_v48  ;;  %v3373_v31 = vpop.eup %2162  ;;  %v1387_v5 = vmul.f32 1.442695, %v1265_v2  ;;  %v1389_v36 = vmul.f32 1.442695, %v1266_v1  ;;  %v1594_v4 = vpack.c.bf16 %v1534_v30, %v1532_v55 }
 0x403   : > { %v3375_v44 = vpop.eup %2164  ;;  %2178 = vrcp.f32 %v1419_v40  ;;  %v1422_v27 = vpop.xlane.xlu1 %1421  ;;  %v1593_v62 = vpack.c.bf16 %v1533_v39, %v1531_v60 }
 0x404   : > { %v1203_v45 = vpop.xlane.xlu0 %1202  ;;  %v2167_v25 = vpop.eup %2166  ;;  %2180 = vpow2.f32 %v1387_v5  ;;  %1637 = vmatprep.subr.bf16.mxu0 %v1594_v4  ;;  %v1477_v50 = vadd.f32 %v3375_v44, %v3373_v31 }
 0x405   : > { %v1267_v7 = vsub.f32 %v3122_v23, %v1203_v45  ;;  %v1268_v34 = vsub.f32 %v3125_v22, %v1203_v45  ;;  %2182 = vpow2.f32 %v1389_v36  ;;  %1638 = vmatpush1.bf16.xpose.msra.mxu0 %v1593_v62  ;;  %v1536_v52 = vmul.f32 %v2167_v25, %v3181_v10 }
 0x406   : > { %v3381_v14 = vpop.eup %2168  ;;  %2184 = vrcp.f32 %v1422_v27  ;;  %1478 = vadd.xlane.f32.xlu0 %v1477_v50  ;;  %v1535_v40 = vmul.f32 %v2167_v25, %v3179_v33 }
 0x407   : > { %v1391_v32 = vmul.f32 1.442695, %v1267_v7  ;;  %v1393_v42 = vmul.f32 1.442695, %v1268_v34  ;;  %v3383_v21 = vpop.eup %2170  ;;  %v1206_v16 = vpop.xlane.xlu1 %1205 }
 0x408   : > { %v2173_v53 = vpop.eup %2172  ;;  %v1425_v23 = vpop.xlane.xlu0 %1424  ;;  %v1269_v22 = vsub.f32 %v3128_v12, %v1206_v16  ;;  %v1270_v48 = vsub.f32 %v3131_v29, %v1206_v16  ;;  %v1480_v54 = vadd.f32 %v3383_v21, %v3381_v14 }
 0x409   : > { %2186 = vpow2.f32 %v1391_v32  ;;  %v1538_v35 = vmul.f32 %v2173_v53, %v3195_v18  ;;  %v1537_v46 = vmul.f32 %v2173_v53, %v3191_v49  ;;  %v3619_v53 = vld [vmem:[#allocation21_spill] sm:$0xff] }
 0x40a   : > { %2188 = vpow2.f32 %v1393_v42  ;;  %v1395_v10 = vmul.f32 1.442695, %v1269_v22  ;;  %v1397_v2 = vmul.f32 1.442695, %v1270_v48  ;;  %1481 = vadd.xlane.f32.xlu1 %v1480_v54  ;;  %v3620_v22 = vld [vmem:[#allocation23_spill] sm:$0xff]  ;;  %v3621_v54 = vld [vmem:[#allocation20_spill] sm:$0xff] }
 0x40b   : > { %v3393_v55 = vpop.eup %2174  ;;  %2190 = vrcp.f32 %v1425_v23  ;;  %v1596_v12 = vpack.c.bf16 %v1538_v35, %v1536_v52  ;;  %v1428_v29 = vpop.xlane.xlu1 %1427  ;;  %v1595_v30 = vpack.c.bf16 %v1537_v46, %v1535_v40  ;;  %v3622_v40 = vld [vmem:[#allocation22_spill] sm:$0xff] }
 0x40c   : > { %v3395_v1 = vpop.eup %2176  ;;  %2192 = vpow2.f32 %v1395_v10 }
 0x40d   : > { %v1483_v60 = vadd.f32 %v3395_v1, %v3393_v55  ;;  %v2179_v18 = vpop.eup %2178  ;;  %2194 = vpow2.f32 %v1397_v2  ;;  %1639 = vmatprep.subr.bf16.mxu0 %v1596_v12 }
 0x40e   : > { %v3399_v33 = vpop.eup %2180  ;;  %2196 = vrcp.f32 %v1428_v29  ;;  %1640 = vmatpush1.bf16.xpose.msra.mxu0 %v1595_v30  ;;  %v1540_v4 = vmul.f32 %v2179_v18, %v3201_v9  ;;  %v1539_v45 = vmul.f32 %v2179_v18, %v3199_v15 }
 0x40f   : > { %1484 = vadd.xlane.f32.xlu0 %v1483_v60  ;;  %v3401_v49 = vpop.eup %2182  ;;  %v1431_v39 = vpop.xlane.xlu0 %1430 }
 0x410   : > { %v2185_v5 = vpop.eup %2184  ;;  %v1486_v36 = vadd.f32 %v3401_v49, %v3399_v33  ;;  %2198 = vrcp.f32 %v1431_v39 }
 0x411   : > { %v1542_v27 = vmul.f32 %v2185_v5, %v3215_v26  ;;  %v1541_v62 = vmul.f32 %v2185_v5, %v3211_v57 }
 0x412   : > { %1487 = vadd.xlane.f32.xlu1 %v1486_v36  ;;  %v1434_v7 = vpop.xlane.xlu1 %1433 }
 0x413   : > { %v3409_v25 = vpop.eup %2186  ;;  %2200 = vrcp.f32 %v1434_v7  ;;  %v1598_v50 = vpack.c.bf16 %v1542_v27, %v1540_v4  ;;  %v1597_v32 = vpack.c.bf16 %v1541_v62, %v1539_v45 }
 0x414   : > { %v3411_v34 = vpop.eup %2188 }
 0x415   : > { %v1489_v42 = vadd.f32 %v3411_v34, %v3409_v25  ;;  %v2191_v9 = vpop.eup %2190  ;;  %1641 = vmatprep.subr.bf16.mxu0 %v1598_v50 }
 0x416   : > { %v3415_v16 = vpop.eup %2192  ;;  %1642 = vmatpush1.bf16.xpose.msra.mxu0 %v1597_v32  ;;  %v1544_v23 = vmul.f32 %v2191_v9, %v3619_v53  ;;  %v1543_v35 = vmul.f32 %v2191_v9, %v3621_v54 }
 0x417   : > { %1490 = vadd.xlane.f32.xlu0 %v1489_v42  ;;  %v3417_v15 = vpop.eup %2194  ;;  %v1437_v57 = vpop.xlane.xlu0 %1436 }
 0x418   : > { %v2197_v26 = vpop.eup %2196  ;;  %v1492_v52 = vadd.f32 %v3417_v15, %v3415_v16  ;;  %2202 = vrcp.f32 %v1437_v57 }
 0x419   : > { %v1546_v48 = vmul.f32 %v2197_v26, %v3620_v22  ;;  %v1545_v46 = vmul.f32 %v2197_v26, %v3622_v40 }
 0x41a   : > { %1493 = vadd.xlane.f32.xlu1 %v1492_v52  ;;  %v1440_v10 = vpop.xlane.xlu1 %1439  ;;  %v2199_v2 = vpop.eup %2198 }
 0x41b   : > { %2204 = vrcp.f32 %v1440_v10  ;;  %v1600_v12 = vpack.c.bf16 %v1546_v48, %v1544_v23  ;;  %v1599_v29 = vpack.c.bf16 %v1545_v46, %v1543_v35  ;;  %v1548_v60 = vmul.f32 %v2199_v2, %v3239_v20  ;;  %v3623_v46 = vld [vmem:[#allocation26_spill] sm:$0xff] }
 0x41c   : > { %v1547_v27 = vmul.f32 %v2199_v2, %v3237_v8  ;;  %v3624_v2 = vld [vmem:[#allocation25_spill] sm:$0xff] }
 0x41d   : > { %v2201_v30 = vpop.eup %2200  ;;  %1643 = vmatprep.subr.bf16.mxu0 %v1600_v12 }
 0x41e   : > { %1644 = vmatpush1.bf16.xpose.msra.mxu0 %v1599_v29  ;;  %v1550_v18 = vmul.f32 %v2201_v30, %v3247_v3  ;;  %v1549_v36 = vmul.f32 %v2201_v30, %v3241_v56  ;;  %v438_v56 = vld [vmem:[#allocation10 + $0x8] sm:$0xf]  ;;  %v3625_v29 = vld [vmem:[#allocation24_spill] sm:$0xff] }
 0x41f   : > { %v1443_v39 = vpop.xlane.xlu0 %1442 }
 0x420   : > { %v1602_v5 = vpack.c.bf16 %v1550_v18, %v1548_v60  ;;  %2206 = vrcp.f32 %v1443_v39  ;;  %v1601_v62 = vpack.c.bf16 %v1549_v36, %v1547_v27 }
 0x422   : > { %1645 = vmatprep.subr.bf16.mxu0 %v1602_v5  ;;  %v1446_v4 = vpop.xlane.xlu1 %1445  ;;  %v2203_v45 = vpop.eup %2202 }
 0x423   : > { %2208 = vrcp.f32 %v1446_v4  ;;  %v1552_v50 = vmul.f32 %v2203_v45, %v3255_v6  ;;  %v1551_v57 = vmul.f32 %v2203_v45, %v3253_v37 }
 0x425   : > { %v2205_v7 = vpop.eup %2204 }
 0x426   : > { %1646 = vmatpush1.bf16.xpose.msra.mxu0 %v1601_v62  ;;  %v1554_v20 = vmul.f32 %v2205_v7, %v3263_v63  ;;  %v1553_v42 = vmul.f32 %v2205_v7, %v3257_v17 }
 0x427   : > { %v1449_v32 = vpop.xlane.xlu0 %1448 }
 0x428   : > { %v1604_v3 = vpack.c.bf16 %v1554_v20, %v1552_v50  ;;  %2210 = vrcp.f32 %v1449_v32  ;;  %v1603_v26 = vpack.c.bf16 %v1553_v42, %v1551_v57  ;;  %v3626_v32 = vld [vmem:[#allocation29_spill] sm:$0xff] }
 0x42a   : > { %1647 = vmatprep.subr.bf16.mxu0 %v1604_v3  ;;  %v1452_v9 = vpop.xlane.xlu1 %1451  ;;  %v2207_v8 = vpop.eup %2206 }
 0x42b   : > { %2212 = vrcp.f32 %v1452_v9  ;;  %v1556_v6 = vmul.f32 %v2207_v8, %v3271_v58  ;;  %v1555_v48 = vmul.f32 %v2207_v8, %v3269_v24  ;;  %v3628_v9 = vld [vmem:[#allocation27_spill] sm:$0xff] }
 0x42d   : > { %441 = vperm.xlu0 %2049, %v438_v56   ;;  %v2209_v52 = vpop.eup %2208 }
 0x42e   : > { %1648 = vmatpush1.bf16.xpose.msra.mxu0 %v1603_v26  ;;  %v1558_v63 = vmul.f32 %v2209_v52, %v3279_v41  ;;  %v1557_v17 = vmul.f32 %v2209_v52, %v3273_v59  ;;  %v3629_v26 = vld [vmem:[#allocation31_spill] sm:$0xff] }
 0x42f   : > { %v1455_v53 = vpop.xlane.xlu0 %1454 }
 0x430   : > { %v1606_v23 = vpack.c.bf16 %v1558_v63, %v1556_v6  ;;  %2214 = vrcp.f32 %v1455_v53  ;;  %v1605_v54 = vpack.c.bf16 %v1557_v17, %v1555_v48  ;;  %v3630_v6 = vld [vmem:[#allocation33_spill] sm:$0xff]  ;;  %v3631_v53 = vld [vmem:[#allocation32_spill] sm:$0xff] }
 0x432   : > { %1649 = vmatprep.subr.bf16.mxu0 %v1606_v23  ;;  %v1458_v22 = vpop.xlane.xlu1 %1457  ;;  %v2211_v37 = vpop.eup %2210  ;;  %v3632_v23 = vld [vmem:[#allocation30_spill] sm:$0xff] }
 0x433   : > { %2216 = vrcp.f32 %v1458_v22  ;;  %v1560_v40 = vmul.f32 %v2211_v37, %v3287_v0  ;;  %v1559_v30 = vmul.f32 %v2211_v37, %v3625_v29 }
 0x435   : > { %v2213_v35 = vpop.eup %2212 }
 0x436   : > { %1650 = vmatpush1.bf16.xpose.msra.mxu0 %v1605_v54  ;;  %v1562_v58 = vmul.f32 %v2213_v35, %v3623_v46  ;;  %v1561_v12 = vmul.f32 %v2213_v35, %v3624_v2 }
 0x437   : > { %v1461_v10 = vpop.xlane.xlu0 %1460 }
 0x438   : > { %2218 = vrcp.f32 %v1461_v10  ;;  %v1608_v41 = vpack.c.bf16 %v1562_v58, %v1560_v40  ;;  %v1607_v60 = vpack.c.bf16 %v1561_v12, %v1559_v30 }
 0x439   : > { %v1464_v59 = vpop.xlane.xlu1 %1463 }
 0x43a   : > { %1651 = vmatprep.subr.bf16.mxu0 %v1608_v41  ;;  %2220 = vrcp.f32 %v1464_v59  ;;  %v2215_v24 = vpop.eup %2214 }
 0x43b   : > { %v1564_v39 = vmul.f32 %v2215_v24, %v3303_v61  ;;  %v1563_v62 = vmul.f32 %v2215_v24, %v3301_v43 }
 0x43d   : > { %v2217_v18 = vpop.eup %2216 }
 0x43e   : > { %1652 = vmatpush1.bf16.xpose.msra.mxu0 %v1607_v60  ;;  %v1566_v0 = vmul.f32 %v2217_v18, %v3311_v11  ;;  %v1565_v4 = vmul.f32 %v2217_v18, %v3305_v19  ;;  %v3627_v11 = vld [vmem:[#allocation28_spill] sm:$0xff] }
 0x43f   : > { %v1467_v5 = vpop.xlane.xlu0 %1466 }
 0x440   : > { %2222 = vrcp.f32 %v1467_v5  ;;  %v1610_v36 = vpack.c.bf16 %v1566_v0, %v1564_v39  ;;  %v1609_v50 = vpack.c.bf16 %v1565_v4, %v1563_v62  ;;  %v3633_v62 = vld [vmem:[#allocation18_spill] sm:$0xff] }
 0x441   : > { %v1470_v27 = vpop.xlane.xlu1 %1469 }
 0x442   : > { %v2219_v45 = vpop.eup %2218  ;;  %1653 = vmatprep.subr.bf16.mxu0 %v1610_v36  ;;  %2224 = vrcp.f32 %v1470_v27 }
 0x443   : > { %v1568_v20 = vmul.f32 %v2219_v45, %v3319_v28  ;;  %v1567_v19 = vmul.f32 %v2219_v45, %v3628_v9 }
 0x444   : > { %v2221_v7 = vpop.eup %2220 }
 0x445   : > { %v1570_v3 = vmul.f32 %v2221_v7, %v3626_v32  ;;  %v1569_v42 = vmul.f32 %v2221_v7, %v3627_v11  ;;  %v3634_v7 = vld [vmem:[#allocation19_spill] sm:$0xff] }
 0x446   : > { %1654 = vmatpush1.bf16.xpose.msra.mxu0 %v1609_v50 }
 0x447   : > { %v1612_v61 = vpack.c.bf16 %v1570_v3, %v1568_v20  ;;  %v1611_v8 = vpack.c.bf16 %v1569_v42, %v1567_v19 }
 0x449   : > { %1655 = vmatprep.subr.bf16.mxu0 %v1612_v61 }
 0x44a   : > { %v2223_v56 = vpop.eup %2222 }
 0x44b   : > { %v1572_v52 = vmul.f32 %v2223_v56, %v3629_v26  ;;  %v1571_v17 = vmul.f32 %v2223_v56, %v3632_v23 }
 0x44c   : > { %v2225_v57 = vpop.eup %2224 }
 0x44d   : > { %v1574_v43 = vmul.f32 %v2225_v57, %v3630_v6  ;;  %v1573_v28 = vmul.f32 %v2225_v57, %v3631_v53 }
 0x44e   : > { %1656 = vmatpush1.bf16.xpose.msra.mxu0 %v1611_v8 }
 0x44f   : > { %v1614_v63 = vpack.c.bf16 %v1574_v43, %v1572_v52  ;;  %v1613_v22 = vpack.c.bf16 %v1573_v28, %v1571_v17 }
 0x451   : > { %1657 = vmatprep.subr.bf16.mxu0 %v1614_v63 }
 0x456   : > { %1658 = vmatpush1.bf16.xpose.msra.mxu0 %v1613_v22 }
 0x48b   : > { %v1473_v48 = vpop.xlane.xlu0 %1472 }
 0x48c   : > { %2226 = vrcp.f32 %v1473_v48 }
 0x48d   : > { %v1476_v37 = vpop.xlane.xlu1 %1475 }
 0x48e   : > { %2228 = vrcp.f32 %v1476_v37 }
 0x493   : > { %v1479_v54 = vpop.xlane.xlu0 %1478 }
 0x494   : > { %2230 = vrcp.f32 %v1479_v54 }
 0x496   : > { %v2227_v35 = vpop.eup %2226 }
 0x497   : > { %v1482_v40 = vpop.xlane.xlu1 %1481  ;;  %v1576_v58 = vmul.f32 %v2227_v35, %v3355_v47  ;;  %v1575_v41 = vmul.f32 %v2227_v35, %v3353_v51 }
 0x498   : > { %v2229_v46 = vpop.eup %2228  ;;  %2232 = vrcp.f32 %v1482_v40 }
 0x499   : > { %v1578_v10 = vmul.f32 %v2229_v46, %v3363_v13  ;;  %v1577_v2 = vmul.f32 %v2229_v46, %v3357_v38 }
 0x49b   : > { %v1616_v59 = vpack.c.bf16 %v1578_v10, %v1576_v58  ;;  %v1615_v29 = vpack.c.bf16 %v1577_v2, %v1575_v41 }
 0x49c   : > { %v1485_v12 = vpop.xlane.xlu0 %1484 }
 0x49d   : > { %1659 = vmatprep.subr.bf16.mxu0 %v1616_v59  ;;  %2234 = vrcp.f32 %v1485_v12 }
 0x49e   : > { %1660 = vmatpush1.bf16.xpose.msra.mxu0 %v1615_v29  ;;  %v2231_v24 = vpop.eup %2230 }
 0x49f   : > { %v1488_v30 = vpop.xlane.xlu1 %1487  ;;  %v1580_v39 = vmul.f32 %v2231_v24, %v3375_v44  ;;  %v1579_v13 = vmul.f32 %v2231_v24, %v3373_v31 }
 0x4a0   : > { %2236 = vrcp.f32 %v1488_v30 }
 0x4a2   : > { %v2233_v60 = vpop.eup %2232 }
 0x4a3   : > { %v1582_v47 = vmul.f32 %v2233_v60, %v3383_v21  ;;  %v1581_v51 = vmul.f32 %v2233_v60, %v3381_v14 }
 0x4a4   : > { %v1491_v18 = vpop.xlane.xlu0 %1490 }
 0x4a5   : > { %v1618_v38 = vpack.c.bf16 %v1582_v47, %v1580_v39  ;;  %v1617_v0 = vpack.c.bf16 %v1581_v51, %v1579_v13  ;;  %2238 = vrcp.f32 %v1491_v18 }
 0x4a7   : > { %1661 = vmatprep.subr.bf16.mxu0 %v1618_v38  ;;  %v1494_v5 = vpop.xlane.xlu1 %1493  ;;  %v2235_v36 = vpop.eup %2234 }
 0x4a8   : > { %2240 = vrcp.f32 %v1494_v5  ;;  %1662 = vmatpush1.bf16.xpose.msra.mxu0 %v1617_v0  ;;  %v1584_v45 = vmul.f32 %v2235_v36, %v3395_v1  ;;  %v1583_v21 = vmul.f32 %v2235_v36, %v3393_v55 }
 0x4aa   : > { %v2237_v4 = vpop.eup %2236 }
 0x4ab   : > { %v1586_v44 = vmul.f32 %v2237_v4, %v3401_v49  ;;  %v1585_v31 = vmul.f32 %v2237_v4, %v3399_v33 }
 0x4ac   : > { %v442_v27 = vpop.permute.xlu0 %441 }
 0x4ad   : > { %v482_v14 = vadd.f32 %v3633_v62, %v442_v27  ;;  %v484_v50 = vadd.f32 %v3634_v7, %v442_v27  ;;  %v1620_v20 = vpack.c.bf16 %v1586_v44, %v1584_v45  ;;  %v1619_v32 = vpack.c.bf16 %v1585_v31, %v1583_v21 }
 0x4af   : > { %v1839_v3 = vpack.c.bf16 %v484_v50, %v482_v14  ;;  %1663 = vmatprep.subr.bf16.mxu0 %v1620_v20  ;;  %v2239_v61 = vpop.eup %2238 }
 0x4b0   : > { %1664 = vmatpush1.bf16.xpose.msra.mxu0 %v1619_v32  ;;  %v1588_v49 = vmul.f32 %v2239_v61, %v3411_v34  ;;  %v1587_v33 = vmul.f32 %v2239_v61, %v3409_v25 }
 0x4b1   : > { %1840 = vst.sshfl [vmem:[#allocation4] sm:$0x33 pattern:$0x76325410] %v1839_v3 }
 0x4b2   : > { %v2241_v1 = vpop.eup %2240 }
 0x4b3   : > { %v1590_v55 = vmul.f32 %v2241_v1, %v3417_v15  ;;  %v1589_v11 = vmul.f32 %v2241_v1, %v3415_v16 }
 0x4b5   : > { %v1622_v42 = vpack.c.bf16 %v1590_v55, %v1588_v49  ;;  %v1621_v56 = vpack.c.bf16 %v1589_v11, %v1587_v33 }
 0x4b7   : > { %1665 = vmatprep.subr.bf16.mxu0 %v1622_v42 }
 0x4b8   : > { %v1879_v9 = vld.sshfl [vmem:[#allocation4] sm:$0x33 pattern:$0x76325410]  ;;  %1666 = vmatpush1.bf16.xpose.msra.mxu0 %v1621_v56 }
 0x4b9   : > { %v1632_v19 = vcombine.high %v1879_v9, %v1879_v9 }
 0x4bb   : > { %1667 = vmatprep.mubr.bf16.mxu0 %v1632_v19 }
 0x4bf   : > { %1668 = vmatmul.mubr.bf16.vlgmr.msra.gmra.mrb[68].mxu0 %v1879_v9 }
 0x592   : > { %v1669_v34 = vpop.f32.mrb[68].mxu0 }
 0x593   : > { %v1671_v15 = vpop.f32.mrb[69].mxu0 }
 0x594   : > { %v1678_v57 = vcombine.low %v1669_v34, %v1671_v15  ;;  %v1673_v25 = vpop.f32.mrb[70].mxu0 }
 0x595   : > { %v1674_v16 = vpop.f32.mrb[71].mxu0 }
 0x596   : > { %1680 = vst [vmem:[%s277_s27] sm:$0xff] %v1678_v57 }
 0x597   : > { %2369 = shalt.err (!%p2366_p0)
}
 0x598   : > { %s2370_s14 = scalar_lea.hbm %s3476_s22, 128  ;;  %s2374_s12 = scalar_lea.hbm %s3529_s4, 256 }
 0x599   : > { %p2371_p4 = scmp.ne.s32.totalorder %s3476_s22, %s2370_s14  ;;  %p2375_p1 = scmp.lt.u32.totalorder %s3476_s22, %s3529_s4 }
 0x59a   : > { %p2376_p12 = scmp.lt.u32.totalorder %s2374_s12, %s2370_s14  ;;  %p2378_p7 = scmp.lt.u32.totalorder %s2370_s14, %s3476_s22 }
 0x59b   : > { %p2372_p8 = pnand %p2371_p4, %p2637_p3 }
 0x59c   : > { %p2377_p13 = por %p2376_p12, %p2375_p1 }
 0x59d   : > { %p2373_p2 = pneg %p2372_p8 }
 0x59e   : > { %p2379_p6 = por %p2378_p7, %p2377_p13 }
 0x5a0   : > { %p2380_p10 = pnand %p2379_p6, %p2373_p2 }
 0x5a2   : > { %2383 = shalt.err (!%p2380_p10)
}
 0x5a3   : > { %1965 = dma.vmem_to_hbm [thread:$0]  (%p2637_p3), %s3478_s21, 128, %s3476_s22, %s1682_s30  }
 0x5a4 PF: > { %s1710_s23 = sand.u32 1, %s2426_s15   ;;  %p3635_p11 = scmp.ne.s32.totalorder %s3565_s26, 0 }
 0x5a5   : > { %p3636_p5 = scmp.ge.s32.totalorder %s2446_s20, 2  ;;  %s1711_s25 = scalar_lea.sflag [#allocation7], %s1710_s23 }
 0x5a7   : > { %p1982_p9 = pnand %p3636_p5, %p3635_p11 }
 0x5a9   : > { %2421 = dma.done.wait (!%p1982_p9), %s1711_s25, 128  }
 0x5aa   : > { %2423 = vsyncadd (!%p1982_p9), %s1711_s25, 4294967168  ;;  %s22_s20 = sadd.s32 1, %s2446_s20   ;;  %s3637_s15 = smov %s2430_s16 }
 0x5ab   : > { %p19_p0 = scmp.ge.s32.totalorder %s22_s20, 4   ;;  %s3638_s16 = smov %s2434_s17 }
 0x5ac   : > { %s3639_s17 = smov %s2646_s10  ;;  %s3640_s18 = smov %s2442_s19 }
 0x5ad   : > { %s3641_s19 = smov %s3643_s1  ;;  %21 = sbr.rel (!%p19_p0) target bundleno = 10 (0xa), region = 103 }
 0x5b4   :  { %1716 = vsyncpa [#allocation6], 1 }
 0x5b5   :  { %1718 = vsyncpa [#allocation6 + $0x1], 1 }
 0x5b6   :  { %1719 = vsyncpa [#allocation9], 1 }
 0x5b7   :  { %1720 = vsyncpa [#allocation12], 1 }
 0x5b8   :  { %1721 = vsyncpa [#allocation7], 1 }
 0x5b9   :  { %1723 = vsyncpa [#allocation7 + $0x1], 1 }

// kernel: tpu_custom_call.1
= control target key start
LH: loop header
LB: loop body
LE: loop exit
PB: predicated region body
PF: predicated region fallthrough
CT: control target
= control target key end

     0   :  { %s3525_s0 = inlined_call_operand.hbm [shape: bf16[2,4,256], index: 0, kind: input, shape index: {}]   ;;  %s3526_s1 = inlined_call_operand.hbm [shape: bf16[3,4,4], index: 1, kind: input, shape index: {}]   ;;  %s3527_s2 = inlined_call_operand.hbm [shape: f32[3,4,1], index: 2, kind: input, shape index: {}]   ;;  %s3528_s3 = inlined_call_operand.hbm [shape: bf16[4,256], index: 3, kind: input, shape index: {}]   ;;  %s3529_s4 = inlined_call_operand.hbm [shape: f32[2,4,256], index: 4, kind: output, shape index: {}]  }
   0x1   :  { %3561 = sst [smem:[#allocation34_spill]] %s3526_s1 }
   0x2   :  { %9 = vsyncpa [#allocation6], 0 }
   0x3   :  { %11 = vsyncpa [#allocation6 + $0x1], 0 }
   0x4   :  { %12 = vsyncpa [#allocation9], 0 }
   0x5   :  { %13 = vsyncpa [#allocation12], 0 }
   0x6   :  { %14 = vsyncpa [#allocation7], 0 }
   0x7   :  { %16 = vsyncpa [#allocation7 + $0x1], 0  ;;  %s2483_s15 = smov 0   ;;  %s2485_s16 = smov 0  }
   0x8   :  { %s2487_s17 = smov 0   ;;  %s2489_s18 = smov 0  }
   0x9   :  { %s2491_s19 = smov 0   ;;  %s2493_s20 = smov 0  }
   0xa LB: > { %s1812_s21 = sadd.s32 4294967295, %s2446_s20   ;;  %s1813_s22 = sadd.s32 4294967294, %s2446_s20   ;;  %s2446_s20 = sphi %s2493_s20, %s22_s20   ;;  %s2442_s19 = sphi %s2491_s19, %s3641_s19   ;;  %s2438_s18 = sphi %s2489_s18, %s3640_s18   ;;  %s2434_s17 = sphi %s2487_s17, %s3639_s17   ;;  %s2430_s16 = sphi %s2485_s16, %s3638_s16   ;;  %s2426_s15 = sphi %s2483_s15, %s3637_s15  }
   0xb   : > { %p54_p0 = scmp.ne.s32.totalorder %s2430_s16, %s2426_s15  ;;  %p2517_p1 = scmp.eq.s32.totalorder %s1812_s21, 0 }
   0xc   : > { %p2521_p2 = scmp.eq.s32.totalorder %s1812_s21, 1  ;;  %p154_p3 = scmp.eq.s32.totalorder %s1813_s22, 1 }
   0xd   : > { %s3562_s23 = scalar_select %p2517_p1, 1, 0 }
   0xe   : > { %s3563_s24 = scalar_select %p2521_p2, 1, 0 }
   0xf   : > { %p2527_p4 = por %p2517_p1, %p54_p0  ;;  %p1814_p5 = scmp.ge.s32.totalorder %s2446_s20, 1 }
  0x10   : > { %p2532_p6 = por %p154_p3, %p54_p0  ;;  %p161_p7 = scmp.lt.s32.totalorder %s2446_s20, 3 }
  0x11   : > { %s3564_s25 = scalar_select %p2527_p4, 1, 0 }
  0x12   : > { %s3565_s26 = scalar_select %p2532_p6, 1, 0 }
  0x13   : > { %p2537_p8 = pnand %p1814_p5, %p161_p7  ;;  %s2448_s28 = smov [#allocation8]  }
  0x14   : > { %s173_s29 = sshll.u32 %s2448_s28, 4  ;;  %s2449_s5 = smov [#allocation10]   ;;  %s2541_s29 = int_to_ptr.vmem [resolvable:$true] %s173_s29 }
  0x15   : > { %s3566_s27 = scalar_select %p2537_p8, 1, 0 }
  0x16   : > { %p1967_p9 = pneg %p2537_p8  ;;  %s186_s6 = sshll.u32 %s2449_s5, 4  ;;  %s2552_s6 = int_to_ptr.vmem [resolvable:$true] %s186_s6 }
  0x17   : > { %s3568_s1 = sld [smem:[#allocation34_spill]] }
  0x18   : > { %p2548_p11 = pnand %p1967_p9, %p2517_p1 }
  0x1a   : > { %p2562_p13 = pneg %p2548_p11 }
  0x1d   : > { %s2242_s9 = scalar_lea.hbm %s3568_s1, 96 }
  0x1e   : > { %p2243_p12 = scmp.ne.s32.totalorder %s3568_s1, %s2242_s9  ;;  %p2249_p5 = scmp.lt.u32.totalorder %s2242_s9, %s3568_s1 }
  0x20   : > { %p2245_p0 = pnand %p2562_p13, %p2243_p12 }
  0x22   : > { %p2246_p3 = pneg %p2245_p0 }
  0x24   : > { %p2251_p7 = pnand %p2249_p5, %p2246_p3 }
  0x26   : > { %2254 = shalt.err (!%p2251_p7)
}
  0x27   : > { %s2255_s21 = scalar_lea.vmem %s2541_s29, 96  ;;  %p2263_p1 = scmp.lt.s32.totalorder %s2541_s29, %s2541_s29 }
  0x28   : > { %p2256_p9 = scmp.ne.s32.totalorder %s2541_s29, %s2255_s21  ;;  %p2264_p4 = scmp.lt.s32.totalorder %s2255_s21, %s2255_s21 }
  0x2a   : > { %p2258_p10 = pnand %p2256_p9, %p2562_p13  ;;  %p2265_p12 = por %p2264_p4, %p2263_p1 }
  0x2c   : > { %p2259_p6 = pneg %p2258_p10 }
  0x2e   : > { %p2266_p0 = pnand %p2265_p12, %p2259_p6 }
  0x30   : > { %2269 = shalt.err (!%p2266_p0)
}
  0x31   : > { %s2450_s22 = smov 32   ;;  %s2451_s28 = smov 2  }
  0x32   : > { %1970 = dma.hbm_to_vmem [thread:$0]  (!%p2548_p11), %s3568_s1, 96, %s2541_s29, [#allocation9], %s2450_s22, %s2450_s22, %s2451_s28  }
  0x33   : > { %s2270_s10 = scalar_lea.hbm %s3527_s2, 192 }
  0x34   : > { %p2271_p1 = scmp.ne.s32.totalorder %s3527_s2, %s2270_s10  ;;  %p2277_p10 = scmp.lt.u32.totalorder %s2270_s10, %s3527_s2 }
  0x36   : > { %p2273_p4 = pnand %p2271_p1, %p2562_p13 }
  0x38   : > { %p2274_p6 = pneg %p2273_p4 }
  0x3a   : > { %p2279_p3 = pnand %p2277_p10, %p2274_p6 }
  0x3c   : > { %2282 = shalt.err (!%p2279_p3)
}
  0x3d   : > { %s2283_s29 = scalar_lea.vmem %s2552_s6, 192  ;;  %p2291_p12 = scmp.lt.s32.totalorder %s2552_s6, %s2552_s6 }
  0x3e   : > { %p2284_p5 = scmp.ne.s32.totalorder %s2552_s6, %s2283_s29  ;;  %p2292_p0 = scmp.lt.s32.totalorder %s2283_s29, %s2283_s29 }
  0x40   : > { %p2286_p7 = pnand %p2284_p5, %p2562_p13  ;;  %p2293_p1 = por %p2292_p0, %p2291_p12 }
  0x42   : > { %p2287_p9 = pneg %p2286_p7 }
  0x44   : > { %p2294_p4 = pnand %p2293_p1, %p2287_p9 }
  0x46   : > { %2297 = shalt.err (!%p2294_p4)
}
  0x47   : > { %s2452_s22 = smov 64   ;;  %s2453_s28 = smov 4  }
  0x48   : > { %1973 = dma.hbm_to_vmem [thread:$0]  (!%p2548_p11), %s3527_s2, 192, %s2552_s6, [#allocation9], %s2452_s22, %s2452_s22, %s2453_s28  }
  0x49   : > { %s2454_s8 = smov [#allocation11]   ;;  %s2298_s13 = scalar_lea.hbm %s3528_s3, 64 }
  0x4a   : > { %s203_s9 = sshll.u32 %s2454_s8, 4  ;;  %p2299_p6 = scmp.ne.s32.totalorder %s3528_s3, %s2298_s13  ;;  %s204_s9 = int_to_ptr.vmem [resolvable:$true] %s203_s9 }
  0x4b   : > { %p2305_p5 = scmp.lt.u32.totalorder %s2298_s13, %s3528_s3 }
  0x4c   : > { %p2301_p10 = pnand %p2299_p6, %p2562_p13 }
  0x4e   : > { %p2302_p3 = pneg %p2301_p10 }
  0x50   : > { %p2307_p7 = pnand %p2305_p5, %p2302_p3 }
  0x52   : > { %2310 = shalt.err (!%p2307_p7)
}
  0x53   : > { %s2311_s6 = scalar_lea.vmem %s204_s9, 64  ;;  %p2319_p1 = scmp.lt.s32.totalorder %s204_s9, %s204_s9 }
  0x54   : > { %p2312_p9 = scmp.ne.s32.totalorder %s204_s9, %s2311_s6  ;;  %p2320_p4 = scmp.lt.s32.totalorder %s2311_s6, %s2311_s6 }
  0x56   : > { %p2314_p12 = pnand %p2312_p9, %p2562_p13  ;;  %p2321_p8 = por %p2320_p4, %p2319_p1 }
  0x58   : > { %p2315_p0 = pneg %p2314_p12 }
  0x5a   : > { %p2322_p2 = pnand %p2321_p8, %p2315_p0 }
  0x5c   : > { %2325 = shalt.err (!%p2322_p2)
}
  0x5d   : > { %1976 = dma.hbm_to_vmem [thread:$0]  (!%p2548_p11), %s3528_s3, 64, %s204_s9, [#allocation12]  }
  0x5e   : > { %s34_s1 = sadd.s32 1, %s2442_s19  ;;  %s41_s12 = sadd.s32 1, %s2434_s17 }
  0x5f   : > { %p36_p8 = scmp.ge.s32.totalorder %s34_s1, 2  ;;  %p48_p2 = scmp.ne.s32.totalorder %s2434_s17, %s2430_s16 }
  0x60   : > { %p49_p13 = scmp.eq.s32.totalorder %s2446_s20, 0  ;;  %p3571_p10 = scmp.ne.s32.totalorder %s3563_s24, 0 }
  0x61   : > { %s3643_s1 = smov (%p36_p8, %s34_s1), 0  ;;  %p1988_p11 = scmp.lt.s32.totalorder %s2446_s20, 2 }
  0x62   : > { %p2631_p6 = por %p49_p13, %p48_p2  ;;  %p2637_p3 = por %p3571_p10, %p48_p2 }
  0x63   : > { %s38_s7 = ssub.s32 %s2442_s19, %s3643_s1  ;;  %s214_s8 = sand.u32 1, %s2434_s17  }
  0x64   : > { %p39_p5 = scmp.eq.s32.totalorder %s38_s7, 0  ;;  %s1819_s9 = sshll.u32 %s214_s8, 2 }
  0x65   : > { %s1885_s11 = sshll.u32 %s2442_s19, 6  ;;  %s218_s24 = scalar_lea.vmem [#allocation5], %s1819_s9 }
  0x66   : > { %s2646_s10 = scalar_select %p39_p5, %s2434_s17, %s41_s12  }
  0x67   : > { %s2652_s21 = scalar_lea.hbm %s3525_s0, %s1885_s11  ;;  %s226_s29 = sshll.u32 %s218_s24, 4  ;;  %s2654_s29 = int_to_ptr.vmem [resolvable:$true] %s226_s29 }
  0x68   : > { %p2658_p7 = pnand %p1988_p11, %p2631_p6  ;;  %s215_s22 = scalar_lea.sflag [#allocation6], %s214_s8 }
  0x69   : > { %s2326_s28 = scalar_lea.hbm %s2652_s21, 64  ;;  %s2331_s9 = scalar_lea.hbm %s3525_s0, 128 }
  0x6a   : > { %p2327_p9 = scmp.ne.s32.totalorder %s2652_s21, %s2326_s28  ;;  %p2328_p12 = pneg %p2658_p7 }
  0x6b   : > { %p2332_p4 = scmp.lt.u32.totalorder %s2652_s21, %s3525_s0  ;;  %p2333_p8 = scmp.lt.u32.totalorder %s2331_s9, %s2326_s28 }
  0x6c   : > { %p2329_p0 = pnand %p2328_p12, %p2327_p9  ;;  %p2335_p13 = scmp.lt.u32.totalorder %s2326_s28, %s2652_s21 }
  0x6d   : > { %p2334_p2 = por %p2333_p8, %p2332_p4 }
  0x6e   : > { %p2330_p1 = pneg %p2329_p0 }
  0x6f   : > { %p2336_p6 = por %p2335_p13, %p2334_p2 }
  0x71   : > { %p2337_p10 = pnand %p2336_p6, %p2330_p1 }
  0x73   : > { %2340 = shalt.err (!%p2337_p10)
}
  0x74   : > { %s2341_s8 = scalar_lea.vmem %s2654_s29, 64  ;;  %s2455_s13 = smov [#allocation5]  }
  0x75   : > { %p2342_p11 = scmp.ne.s32.totalorder %s2654_s29, %s2341_s8  ;;  %s2346_s14 = sshll.u32 %s2455_s13, 4  ;;  %s2347_s14 = int_to_ptr.vmem [resolvable:$false] %s2346_s14 }
  0x76   : > { %s2348_s24 = scalar_lea.vmem %s2347_s14, 128  ;;  %p2349_p0 = scmp.lt.s32.totalorder %s2654_s29, %s2347_s14 }
  0x77   : > { %p2344_p5 = pnand %p2342_p11, %p2328_p12  ;;  %p2350_p4 = scmp.lt.s32.totalorder %s2348_s24, %s2341_s8 }
  0x79   : > { %p2345_p9 = pneg %p2344_p5  ;;  %p2351_p8 = por %p2350_p4, %p2349_p0 }
  0x7b   : > { %p2352_p2 = pnand %p2351_p8, %p2345_p9 }
  0x7d   : > { %2355 = shalt.err (!%p2352_p2)
}
  0x7e   : > { %1980 = dma.hbm_to_vmem [thread:$0]  (!%p2658_p7), %s2652_s21, 64, %s2654_s29, %s215_s22  }
  0x7f   : > { %p3574_p1 = scmp.ne.s32.totalorder %s3566_s27, 0 }
  0x81   : > { %235 = sbr.rel (%p3574_p1) target bundleno = 1444 (0x5a4), region = 36 }
  0x88   : > { %s2690_s28 = sand.u32 1, %s2430_s16   ;;  %p3575_p12 = scmp.ne.s32.totalorder %s3564_s25, 0 }
  0x89   : > { %s1823_s12 = sshll.u32 %s2690_s28, 2  ;;  %s238_s7 = scalar_lea.sflag [#allocation6], %s2690_s28 }
  0x8a   : > { %s241_s9 = scalar_lea.vmem [#allocation5], %s1823_s12 }
  0x8b   : > { %2409 = dma.done.wait (%p3575_p12), %s238_s7, 64  }
  0x8c   : > { %2411 = vsyncadd (%p3575_p12), %s238_s7, 4294967232  ;;  %p3576_p13 = scmp.ne.s32.totalorder %s3562_s23, 0 }
  0x8e   : > { %2413 = dma.done.wait (%p3576_p13), [#allocation9], 288  }
  0x8f   : > { %2415 = vsyncadd (%p3576_p13), [#allocation9], 4294967008 }
  0x90   : > { %2417 = dma.done.wait (%p3576_p13), [#allocation12], 64  }
  0x91   : > { %2419 = vsyncadd (%p3576_p13), [#allocation12], 4294967232  ;;  %v2456_v0 = vmov 0   ;;  %vm306_vm0 = vcmask 1041408   ;;  %v287_v4 = vld [vmem:[#allocation10] sm:$0xf] }
  0x92   : > { %345 = vmatprep.mubr.bf16.mxu1 %v2456_v0  ;;  %2049 = vset.pattern.permute.xlu0 %v2456_v0  ;;  %v1828_v1 = vld.sshfl [vmem:[%s241_s9] sm:$0x33 pattern:$0x76325410]  ;;  %v371_v6 = vld [vmem:[#allocation10 + $0x4] sm:$0xf] }
  0x93   : > { %479 = vmatprep.mubr.bf16.mxu0 %v2456_v0  ;;  %v301_v2 = vcombine.high %v1828_v1, %v1828_v1  ;;  %v308_v3 = vsel %vm306_vm0, %v1828_v1, 0  ;;  %290 = vperm.xlu0 %2049, %v287_v4   ;;  %v1841_v5 = vld.sshfl [vmem:[#allocation11] sm:$0x33 pattern:$0x76325410]  ;;  %vm302_vm1 = vcmask 31744  }
  0x94   : > { %522 = vxpose.xlu1.c.b16.start.end [1/1] (short) %v1841_v5, 128  ;;  %v286_v7 = vld [vmem:[#allocation8] sm:$0x3]  ;;  %v369_v8 = vld [vmem:[#allocation8 + $0x2] sm:$0x3]  ;;  %v519_v9 = vcombine.high %v1841_v5, %v1841_v5  ;;  %v436_v10 = vld [vmem:[#allocation8 + $0x4] sm:$0x3] }
  0x95   : > { %1829 = vmatprep.subr.msk.bf16.mxu1 %vm306_vm0, %v301_v2  ;;  %1837 = vmatprep.subr.msk.bf16.mxu0 %vm306_vm0, %v301_v2  ;;  %s1827_s23 = sshll.u32 %s2690_s28, 3  ;;  %s1886_s25 = sshll.u32 %s2438_s18, 7 }
  0x96   : > { %314 = vmatpush1.bf16.msra.mxu1 %v308_v3  ;;  %448 = vmatpush1.bf16.msra.mxu0 %v308_v3  ;;  %s277_s27 = scalar_lea.vmem [#allocation13], %s1827_s23  ;;  %s3476_s22 = scalar_lea.hbm %s3529_s4, %s1886_s25 }
  0x97   : > { %1833 = vmatprep.subr.msk.bf16.mxu1 %vm306_vm0, %v301_v2  ;;  %374 = vperm.xlu0 %2049, %v371_v6   ;;  %s1698_s21 = sshll.u32 %s277_s27, 4  ;;  %s1682_s30 = scalar_lea.sflag [#allocation7], %s2690_s28  ;;  %s3478_s21 = int_to_ptr.vmem [resolvable:$true] %s1698_s21 }
  0x98   : > { %s2356_s18 = scalar_lea.vmem %s3478_s21, 128  ;;  %s2457_s11 = smov [#allocation13]  }
  0x99   : > { %1830 = vmatmul.mubr.msk.bf16.vlgmr.msra.gmra.mrb[0].mxu1 %vm302_vm1, %v286_v7  ;;  %1838 = vmatmul.mubr.msk.bf16.vlgmr.msra.gmra.mrb[0].mxu0 %vm302_vm1, %v436_v10  ;;  %p2357_p7 = scmp.ne.s32.totalorder %s3478_s21, %s2356_s18  ;;  %s2360_s8 = sshll.u32 %s2457_s11, 4  ;;  %s2361_s8 = int_to_ptr.vmem [resolvable:$false] %s2360_s8 }
  0x9a   : > { %381 = vmatpush1.bf16.msra.mxu1 %v308_v3  ;;  %412 = vmatprep.mubr.bf16.mxu1 %v2456_v0  ;;  %s2362_s13 = scalar_lea.vmem %s2361_s8, 256  ;;  %p2363_p11 = scmp.lt.s32.totalorder %s3478_s21, %s2361_s8 }
  0x9b   : > { %651 = vmatprep.mubr.bf16.mxu0 %v2456_v0  ;;  %p2358_p6 = pnand %p2357_p7, %p2637_p3  ;;  %p2364_p5 = scmp.lt.s32.totalorder %s2362_s13, %s2356_s18 }
  0x9d   : > { %p2359_p10 = pneg %p2358_p6  ;;  %p2365_p9 = por %p2364_p5, %p2363_p11 }
  0x9f   : > { %p2366_p0 = pnand %p2365_p9, %p2359_p10 }
  0xa1   : > { %1834 = vmatmul.mubr.msk.bf16.vlgmr.msra.gmra.mrb[4].mxu1 %vm302_vm1, %v369_v8 }
  0xa2   : > { %950 = vmatprep.mubr.bf16.mxu1 %v2456_v0 }
  0xb5   : > { %538 = vxpose.xlu0.c.b16.start.end [1/1] (short) %v519_v9, 128 }
  0xfa   : > { %v530_v30 = vpop.trf.xlu1 }
  0xfe   : > { %v531_v34 = vpop.trf.xlu1 }
 0x102   : > { %v532_v35 = vpop.trf.xlu1 }
 0x106   : > { %v533_v36 = vpop.trf.xlu1 }
 0x10a   : > { %v534_v37 = vpop.trf.xlu1 }
 0x10e   : > { %v535_v38 = vpop.trf.xlu1 }
 0x112   : > { %v291_v11 = vpop.permute.xlu0 %290  ;;  %v536_v39 = vpop.trf.xlu1 }
 0x116   : > { %v375_v19 = vpop.permute.xlu0 %374  ;;  %v537_v40 = vpop.trf.xlu1 }
 0x11b   : > { %v546_v41 = vpop.trf.xlu0 }
 0x11f   : > { %v547_v42 = vpop.trf.xlu0 }
 0x123   : > { %v548_v43 = vpop.trf.xlu0 }
 0x127   : > { %v549_v48 = vpop.trf.xlu0 }
 0x12b   : > { %v550_v49 = vpop.trf.xlu0 }
 0x12f   : > { %v551_v51 = vpop.trf.xlu0 }
 0x133   : > { %v552_v53 = vpop.trf.xlu0 }
 0x137   : > { %v553_v55 = vpop.trf.xlu0 }
 0x16c   : > { %v347_v12 = vpop.f32.mrb[0].mxu1  ;;  %v2744_v44 = vpop.f32.mrb[0].mxu0 }
 0x16d   : > { %v348_v13 = vadd.f32 %v347_v12, %v291_v11  ;;  %v349_v14 = vpop.f32.mrb[1].mxu1  ;;  %3577 = vst [vmem:[#allocation18_spill] sm:$0xff] %v2744_v44  ;;  %v2747_v45 = vpop.f32.mrb[1].mxu0 }
 0x16e   : > { %v350_v15 = vadd.f32 %v349_v14, %v291_v11  ;;  %v351_v16 = vpop.f32.mrb[2].mxu1  ;;  %3578 = vst [vmem:[#allocation19_spill] sm:$0xff] %v2747_v45  ;;  %v485_v46 = vpop.f32.mrb[2].mxu0 }
 0x16f   : > { %v352_v17 = vpop.f32.mrb[3].mxu1  ;;  %v486_v47 = vpop.f32.mrb[3].mxu0 }
 0x170   : > { %v1831_v18 = vpack.c.bf16 %v350_v15, %v348_v13 }
 0x172   : > { %1832 = vst.sshfl [vmem:[#allocation2] sm:$0x33 pattern:$0x76325410] %v1831_v18 }
 0x174   : > { %v414_v20 = vpop.f32.mrb[4].mxu1 }
 0x175   : > { %v415_v21 = vadd.f32 %v414_v20, %v375_v19  ;;  %v416_v22 = vpop.f32.mrb[5].mxu1 }
 0x176   : > { %v417_v23 = vadd.f32 %v416_v22, %v375_v19  ;;  %v418_v24 = vpop.f32.mrb[6].mxu1 }
 0x177   : > { %v419_v25 = vpop.f32.mrb[7].mxu1 }
 0x178   : > { %v1835_v26 = vpack.c.bf16 %v417_v23, %v415_v21 }
 0x179   : > { %v1860_v27 = vld.sshfl [vmem:[#allocation2] sm:$0x33 pattern:$0x76325410] }
 0x17a   : > { %1836 = vst.sshfl [vmem:[#allocation3] sm:$0x33 pattern:$0x76325410] %v1835_v26  ;;  %823 = vxpose.xlu1.c.b16.start.end [1/1] (short) %v1860_v27, 128  ;;  %v562_v28 = vcombine.high %v1860_v27, %v1860_v27  ;;  %v614_v29 = vsel %vm306_vm0, %v1860_v27, 0 }
 0x17c   : > { %1843 = vmatprep.subr.msk.bf16.mxu0 %vm306_vm0, %v562_v28 }
 0x17d   : > { %620 = vmatpush1.bf16.msra.mxu0 %v614_v29 }
 0x180   : > { %1844 = vmatmul.mubr.msk.bf16.vlgmr.msra.gmra.mrb[4].mxu0 %vm302_vm1, %v530_v30 }
 0x181   : > { %v1861_v31 = vld.sshfl [vmem:[#allocation3] sm:$0x33 pattern:$0x76325410]  ;;  %661 = vmatprep.mubr.bf16.mxu0 %v2456_v0 }
 0x182   : > { %v863_v32 = vcombine.high %v1861_v31, %v1861_v31  ;;  %v913_v33 = vsel %vm306_vm0, %v1861_v31, 0 }
 0x184   : > { %1862 = vmatprep.subr.msk.bf16.mxu1 %vm306_vm0, %v863_v32 }
 0x185   : > { %919 = vmatpush1.bf16.msra.mxu1 %v913_v33 }
 0x188   : > { %1845 = vmatmul.mubr.msk.bf16.gmra.mrb[8].mxu0 %vm302_vm1, %v531_v34 }
 0x189   : > { %671 = vmatprep.mubr.bf16.mxu0 %v2456_v0 }
 0x190   : > { %1846 = vmatmul.mubr.msk.bf16.gmra.mrb[12].mxu0 %vm302_vm1, %v532_v35 }
 0x191   : > { %681 = vmatprep.mubr.bf16.mxu0 %v2456_v0 }
 0x197   : > { %839 = vxpose.xlu1.c.b16.start.end [1/1] (short) %v562_v28, 128 }
 0x198   : > { %1847 = vmatmul.mubr.msk.bf16.gmra.mrb[16].mxu0 %vm302_vm1, %v533_v36 }
 0x199   : > { %691 = vmatprep.mubr.bf16.mxu0 %v2456_v0 }
 0x1a0   : > { %1848 = vmatmul.mubr.msk.bf16.gmra.mrb[20].mxu0 %vm302_vm1, %v534_v37 }
 0x1a1   : > { %701 = vmatprep.mubr.bf16.mxu0 %v2456_v0 }
 0x1a8   : > { %1849 = vmatmul.mubr.msk.bf16.gmra.mrb[24].mxu0 %vm302_vm1, %v535_v38 }
 0x1a9   : > { %711 = vmatprep.mubr.bf16.mxu0 %v2456_v0 }
 0x1b0   : > { %1850 = vmatmul.mubr.msk.bf16.gmra.mrb[28].mxu0 %vm302_vm1, %v536_v39 }
 0x1b1   : > { %721 = vmatprep.mubr.bf16.mxu0 %v2456_v0 }
 0x1b8   : > { %1851 = vmatmul.mubr.msk.bf16.gmra.mrb[32].mxu0 %vm302_vm1, %v537_v40 }
 0x1b9   : > { %731 = vmatprep.mubr.bf16.mxu0 %v2456_v0 }
 0x1c0   : > { %1852 = vmatmul.mubr.msk.bf16.gmra.mrb[36].mxu0 %vm302_vm1, %v546_v41 }
 0x1c1   : > { %741 = vmatprep.mubr.bf16.mxu0 %v2456_v0 }
 0x1c8   : > { %1853 = vmatmul.mubr.msk.bf16.gmra.mrb[40].mxu0 %vm302_vm1, %v547_v42 }
 0x1c9   : > { %751 = vmatprep.mubr.bf16.mxu0 %v2456_v0 }
 0x1d0   : > { %1854 = vmatmul.mubr.msk.bf16.gmra.mrb[44].mxu0 %vm302_vm1, %v548_v43 }
 0x1d1   : > { %761 = vmatprep.mubr.bf16.mxu0 %v2456_v0 }
 0x1d8   : > { %1855 = vmatmul.mubr.msk.bf16.gmra.mrb[48].mxu0 %vm302_vm1, %v549_v48 }
 0x1d9   : > { %771 = vmatprep.mubr.bf16.mxu0 %v2456_v0 }
 0x1e0   : > { %v831_v50 = vpop.trf.xlu1  ;;  %1856 = vmatmul.mubr.msk.bf16.gmra.mrb[52].mxu0 %vm302_vm1, %v550_v49 }
 0x1e1   : > { %1863 = vmatmul.mubr.msk.bf16.vlgmr.msra.gmra.mrb[8].mxu1 %vm302_vm1, %v831_v50  ;;  %781 = vmatprep.mubr.bf16.mxu0 %v2456_v0 }
 0x1e2   : > { %960 = vmatprep.mubr.bf16.mxu1 %v2456_v0 }
 0x1e4   : > { %v832_v52 = vpop.trf.xlu1 }
 0x1e8   : > { %1857 = vmatmul.mubr.msk.bf16.gmra.mrb[56].mxu0 %vm302_vm1, %v551_v51  ;;  %v833_v54 = vpop.trf.xlu1 }
 0x1e9   : > { %1864 = vmatmul.mubr.msk.bf16.gmra.mrb[12].mxu1 %vm302_vm1, %v832_v52  ;;  %791 = vmatprep.mubr.bf16.mxu0 %v2456_v0 }
 0x1ea   : > { %970 = vmatprep.mubr.bf16.mxu1 %v2456_v0 }
 0x1ec   : > { %v834_v56 = vpop.trf.xlu1 }
 0x1f0   : > { %1858 = vmatmul.mubr.msk.bf16.gmra.mrb[60].mxu0 %vm302_vm1, %v552_v53  ;;  %v835_v57 = vpop.trf.xlu1 }
 0x1f1   : > { %1865 = vmatmul.mubr.msk.bf16.gmra.mrb[16].mxu1 %vm302_vm1, %v833_v54  ;;  %801 = vmatprep.mubr.bf16.mxu0 %v2456_v0 }
 0x1f2   : > { %980 = vmatprep.mubr.bf16.mxu1 %v2456_v0 }
 0x1f4   : > { %v836_v58 = vpop.trf.xlu1 }
 0x1f8   : > { %1859 = vmatmul.mubr.msk.bf16.gmra.mrb[64].mxu0 %vm302_vm1, %v553_v55  ;;  %v837_v59 = vpop.trf.xlu1 }
 0x1f9   : > { %1866 = vmatmul.mubr.msk.bf16.gmra.mrb[20].mxu1 %vm302_vm1, %v834_v56 }
 0x1fa   : > { %990 = vmatprep.mubr.bf16.mxu1 %v2456_v0 }
 0x1fc   : > { %v838_v60 = vpop.trf.xlu1 }
 0x200   : > { %v847_v61 = vpop.trf.xlu1 }
 0x201   : > { %1867 = vmatmul.mubr.msk.bf16.gmra.mrb[24].mxu1 %vm302_vm1, %v835_v57 }
 0x202   : > { %1000 = vmatprep.mubr.bf16.mxu1 %v2456_v0 }
 0x204   : > { %v848_v62 = vpop.trf.xlu1 }
 0x208   : > { %v849_v63 = vpop.trf.xlu1 }
 0x209   : > { %1868 = vmatmul.mubr.msk.bf16.gmra.mrb[28].mxu1 %vm302_vm1, %v836_v58 }
 0x20a   : > { %1010 = vmatprep.mubr.bf16.mxu1 %v2456_v0 }
 0x20c   : > { %v850_v1 = vpop.trf.xlu1 }
 0x210   : > { %v851_v2 = vpop.trf.xlu1 }
 0x211   : > { %1869 = vmatmul.mubr.msk.bf16.gmra.mrb[32].mxu1 %vm302_vm1, %v837_v59 }
 0x212   : > { %1020 = vmatprep.mubr.bf16.mxu1 %v2456_v0 }
 0x214   : > { %v852_v3 = vpop.trf.xlu1 }
 0x218   : > { %v853_v4 = vpop.trf.xlu1 }
 0x219   : > { %1870 = vmatmul.mubr.msk.bf16.gmra.mrb[36].mxu1 %vm302_vm1, %v838_v60 }
 0x21a   : > { %1030 = vmatprep.mubr.bf16.mxu1 %v2456_v0 }
 0x21c   : > { %v854_v9 = vpop.trf.xlu1 }
 0x221   : > { %1871 = vmatmul.mubr.msk.bf16.gmra.mrb[40].mxu1 %vm302_vm1, %v847_v61 }
 0x222   : > { %1040 = vmatprep.mubr.bf16.mxu1 %v2456_v0 }
 0x229   : > { %1872 = vmatmul.mubr.msk.bf16.gmra.mrb[44].mxu1 %vm302_vm1, %v848_v62 }
 0x22a   : > { %1050 = vmatprep.mubr.bf16.mxu1 %v2456_v0 }
 0x231   : > { %1873 = vmatmul.mubr.msk.bf16.gmra.mrb[48].mxu1 %vm302_vm1, %v849_v63 }
 0x232   : > { %1060 = vmatprep.mubr.bf16.mxu1 %v2456_v0 }
 0x239   : > { %1874 = vmatmul.mubr.msk.bf16.gmra.mrb[52].mxu1 %vm302_vm1, %v850_v1 }
 0x23a   : > { %1070 = vmatprep.mubr.bf16.mxu1 %v2456_v0 }
 0x241   : > { %1875 = vmatmul.mubr.msk.bf16.gmra.mrb[56].mxu1 %vm302_vm1, %v851_v2 }
 0x242   : > { %1080 = vmatprep.mubr.bf16.mxu1 %v2456_v0 }
 0x249   : > { %1876 = vmatmul.mubr.msk.bf16.gmra.mrb[60].mxu1 %vm302_vm1, %v852_v3 }
 0x24a   : > { %1090 = vmatprep.mubr.bf16.mxu1 %v2456_v0 }
 0x251   : > { %1877 = vmatmul.mubr.msk.bf16.gmra.mrb[64].mxu1 %vm302_vm1, %v853_v4 }
 0x252   : > { %1100 = vmatprep.mubr.bf16.mxu1 %v2456_v0 }
 0x253   : > { %v653_v5 = vpop.f32.mrb[4].mxu0 }
 0x254   : > { %v655_v6 = vpop.f32.mrb[5].mxu0 }
 0x255   : > { %v657_v7 = vpop.f32.mrb[6].mxu0 }
 0x256   : > { %v659_v8 = vpop.f32.mrb[7].mxu0 }
 0x259   : > { %1878 = vmatmul.mubr.msk.bf16.gmra.mrb[68].mxu1 %vm302_vm1, %v854_v9 }
 0x25b   : > { %v663_v10 = vpop.f32.mrb[8].mxu0 }
 0x25c   : > { %v665_v11 = vpop.f32.mrb[9].mxu0 }
 0x25d   : > { %v667_v12 = vpop.f32.mrb[10].mxu0 }
 0x25e   : > { %v669_v13 = vpop.f32.mrb[11].mxu0 }
 0x263   : > { %v2789_v14 = vpop.f32.mrb[12].mxu0 }
 0x264   : > { %v2791_v15 = vpop.f32.mrb[13].mxu0 }
 0x265   : > { %v2793_v16 = vpop.f32.mrb[14].mxu0 }
 0x266   : > { %v2795_v17 = vpop.f32.mrb[15].mxu0 }
 0x26b   : > { %v2797_v0 = vpop.f32.mrb[16].mxu0 }
 0x26c   : > { %v2799_v18 = vpop.f32.mrb[17].mxu0 }
 0x26d   : > { %v2801_v19 = vpop.f32.mrb[18].mxu0 }
 0x26e   : > { %v2803_v20 = vpop.f32.mrb[19].mxu0 }
 0x273   : > { %v2805_v21 = vpop.f32.mrb[20].mxu0 }
 0x274   : > { %v2807_v22 = vpop.f32.mrb[21].mxu0 }
 0x275   : > { %v2809_v23 = vpop.f32.mrb[22].mxu0 }
 0x276   : > { %v2811_v24 = vpop.f32.mrb[23].mxu0 }
 0x27b   : > { %v2813_v25 = vpop.f32.mrb[24].mxu0 }
 0x27c   : > { %v2815_v26 = vpop.f32.mrb[25].mxu0 }
 0x27d   : > { %v2817_v27 = vpop.f32.mrb[26].mxu0 }
 0x27e   : > { %v2819_v28 = vpop.f32.mrb[27].mxu0 }
 0x283   : > { %v2821_v29 = vpop.f32.mrb[28].mxu0 }
 0x284   : > { %v2823_v30 = vpop.f32.mrb[29].mxu0 }
 0x285   : > { %v2825_v31 = vpop.f32.mrb[30].mxu0 }
 0x286   : > { %v2827_v32 = vpop.f32.mrb[31].mxu0 }
 0x28b   : > { %v2829_v33 = vpop.f32.mrb[32].mxu0 }
 0x28c   : > { %v2831_v34 = vpop.f32.mrb[33].mxu0 }
 0x28d   : > { %v2833_v35 = vpop.f32.mrb[34].mxu0 }
 0x28e   : > { %v2835_v36 = vpop.f32.mrb[35].mxu0 }
 0x293   : > { %v2837_v37 = vpop.f32.mrb[36].mxu0 }
 0x294   : > { %v2839_v38 = vpop.f32.mrb[37].mxu0 }
 0x295   : > { %v2841_v39 = vpop.f32.mrb[38].mxu0 }
 0x296   : > { %v2843_v40 = vpop.f32.mrb[39].mxu0 }
 0x29b   : > { %v2845_v41 = vpop.f32.mrb[40].mxu0 }
 0x29c   : > { %v2847_v42 = vpop.f32.mrb[41].mxu0 }
 0x29d   : > { %v2849_v43 = vpop.f32.mrb[42].mxu0 }
 0x29e   : > { %v2851_v46 = vpop.f32.mrb[43].mxu0 }
 0x2a3   : > { %v2853_v47 = vpop.f32.mrb[44].mxu0 }
 0x2a4   : > { %v2855_v48 = vpop.f32.mrb[45].mxu0 }
 0x2a5   : > { %v2857_v49 = vpop.f32.mrb[46].mxu0 }
 0x2a6   : > { %v2859_v50 = vpop.f32.mrb[47].mxu0 }
 0x2ab   : > { %v2861_v51 = vpop.f32.mrb[48].mxu0 }
 0x2ac   : > { %v2863_v52 = vpop.f32.mrb[49].mxu0 }
 0x2ad   : > { %v2865_v53 = vpop.f32.mrb[50].mxu0 }
 0x2ae   : > { %v2867_v54 = vpop.f32.mrb[51].mxu0 }
 0x2b4   : > { %v952_v55 = vpop.f32.mrb[8].mxu1 }
 0x2b5   : > { %v2869_v56 = vadd.f32 %v952_v55, %v653_v5  ;;  %v954_v57 = vpop.f32.mrb[9].mxu1 }
 0x2b6   : > { %v2871_v58 = vadd.f32 %v954_v57, %v655_v6  ;;  %v956_v59 = vpop.f32.mrb[10].mxu1 }
 0x2b7   : > { %v2873_v60 = vadd.f32 %v956_v59, %v657_v7  ;;  %v958_v61 = vpop.f32.mrb[11].mxu1 }
 0x2b8   : > { %v2875_v62 = vadd.f32 %v958_v61, %v659_v8  ;;  %v1111_v63 = vmax.f32 %v2869_v56, %v2871_v58 }
 0x2ba   : > { %1112 = vmax.xlane.f32.xlu0 %v1111_v63  ;;  %v1114_v1 = vmax.f32 %v2873_v60, %v2875_v62 }
 0x2bc   : > { %v962_v2 = vpop.f32.mrb[12].mxu1  ;;  %1115 = vmax.xlane.f32.xlu1 %v1114_v1 }
 0x2bd   : > { %v2881_v3 = vadd.f32 %v962_v2, %v663_v10  ;;  %v964_v4 = vpop.f32.mrb[13].mxu1 }
 0x2be   : > { %v2883_v5 = vadd.f32 %v964_v4, %v665_v11  ;;  %v966_v6 = vpop.f32.mrb[14].mxu1 }
 0x2bf   : > { %v2885_v7 = vadd.f32 %v966_v6, %v667_v12  ;;  %v968_v9 = vpop.f32.mrb[15].mxu1 }
 0x2c0   : > { %v2887_v8 = vadd.f32 %v968_v9, %v669_v13  ;;  %v1117_v55 = vmax.f32 %v2881_v3, %v2883_v5 }
 0x2c2   : > { %1118 = vmax.xlane.f32.xlu0 %v1117_v55  ;;  %v1120_v59 = vmax.f32 %v2885_v7, %v2887_v8 }
 0x2c4   : > { %v972_v57 = vpop.f32.mrb[16].mxu1 }
 0x2c5   : > { %v2894_v10 = vadd.f32 %v972_v57, %v2789_v14  ;;  %v974_v61 = vpop.f32.mrb[17].mxu1 }
 0x2c6   : > { %v2897_v11 = vadd.f32 %v974_v61, %v2791_v15  ;;  %v976_v12 = vpop.f32.mrb[18].mxu1  ;;  %1121 = vmax.xlane.f32.xlu0 %v1120_v59 }
 0x2c7   : > { %v2900_v13 = vadd.f32 %v976_v12, %v2793_v16  ;;  %v978_v63 = vpop.f32.mrb[19].mxu1 }
 0x2c8   : > { %v2903_v1 = vadd.f32 %v978_v63, %v2795_v17  ;;  %v1123_v2 = vmax.f32 %v2894_v10, %v2897_v11 }
 0x2ca   : > { %1124 = vmax.xlane.f32.xlu0 %v1123_v2  ;;  %v1126_v14 = vmax.f32 %v2900_v13, %v2903_v1 }
 0x2cc   : > { %v982_v4 = vpop.f32.mrb[20].mxu1 }
 0x2cd   : > { %v2910_v15 = vadd.f32 %v982_v4, %v2797_v0  ;;  %v984_v6 = vpop.f32.mrb[21].mxu1  ;;  %v2934_v4 = vpop.f32.mrb[52].mxu0 }
 0x2ce   : > { %v2913_v9 = vadd.f32 %v984_v6, %v2799_v18  ;;  %v986_v16 = vpop.f32.mrb[22].mxu1  ;;  %1127 = vmax.xlane.f32.xlu0 %v1126_v14 }
 0x2cf   : > { %v2916_v17 = vadd.f32 %v986_v16, %v2801_v19  ;;  %v988_v55 = vpop.f32.mrb[23].mxu1 }
 0x2d0   : > { %v2919_v57 = vadd.f32 %v988_v55, %v2803_v20  ;;  %v1129_v59 = vmax.f32 %v2910_v15, %v2913_v9 }
 0x2d2   : > { %1130 = vmax.xlane.f32.xlu0 %v1129_v59  ;;  %v1132_v0 = vmax.f32 %v2916_v17, %v2919_v57 }
 0x2d4   : > { %v992_v61 = vpop.f32.mrb[24].mxu1 }
 0x2d5   : > { %v2926_v18 = vadd.f32 %v992_v61, %v2805_v21  ;;  %v994_v12 = vpop.f32.mrb[25].mxu1  ;;  %v2941_v21 = vpop.f32.mrb[53].mxu0 }
 0x2d6   : > { %v2929_v63 = vadd.f32 %v994_v12, %v2807_v22  ;;  %v996_v19 = vpop.f32.mrb[26].mxu1  ;;  %1133 = vmax.xlane.f32.xlu0 %v1132_v0  ;;  %v2943_v16 = vpop.f32.mrb[54].mxu0 }
 0x2d7   : > { %v2932_v20 = vadd.f32 %v996_v19, %v2809_v23  ;;  %v998_v2 = vpop.f32.mrb[27].mxu1  ;;  %v2947_v55 = vpop.f32.mrb[55].mxu0 }
 0x2d8   : > { %v2937_v14 = vadd.f32 %v998_v2, %v2811_v24  ;;  %v1135_v6 = vmax.f32 %v2926_v18, %v2929_v63  ;;  %v2958_v2 = vpop.f32.mrb[56].mxu0 }
 0x2d9   : > { %v2965_v45 = vpop.f32.mrb[57].mxu0 }
 0x2da   : > { %1136 = vmax.xlane.f32.xlu0 %v1135_v6  ;;  %v1138_v22 = vmax.f32 %v2932_v20, %v2937_v14 }
 0x2dc   : > { %v1002_v23 = vpop.f32.mrb[28].mxu1  ;;  %1139 = vmax.xlane.f32.xlu1 %v1138_v22 }
 0x2dd   : > { %v2950_v59 = vadd.f32 %v1002_v23, %v2813_v25  ;;  %v1004_v24 = vpop.f32.mrb[29].mxu1  ;;  %v2967_v25 = vpop.f32.mrb[58].mxu0 }
 0x2de   : > { %v2953_v61 = vadd.f32 %v1004_v24, %v2815_v26  ;;  %v1006_v0 = vpop.f32.mrb[30].mxu1  ;;  %v2971_v23 = vpop.f32.mrb[59].mxu0 }
 0x2df   : > { %v2956_v12 = vadd.f32 %v1006_v0, %v2817_v27  ;;  %v1008_v19 = vpop.f32.mrb[31].mxu1 }
 0x2e0   : > { %3579 = vst [vmem:[#allocation20_spill] sm:$0xff] %v2953_v61  ;;  %v2961_v6 = vadd.f32 %v1008_v19, %v2819_v28  ;;  %v1141_v22 = vmax.f32 %v2950_v59, %v2953_v61 }
 0x2e1   : > { %3580 = vst [vmem:[#allocation21_spill] sm:$0xff] %v2956_v12 }
 0x2e2   : > { %3581 = vst [vmem:[#allocation22_spill] sm:$0xff] %v2961_v6  ;;  %1142 = vmax.xlane.f32.xlu0 %v1141_v22  ;;  %v1144_v26 = vmax.f32 %v2956_v12, %v2961_v6  ;;  %v2982_v22 = vpop.f32.mrb[60].mxu0 }
 0x2e3   : > { %v2989_v12 = vpop.f32.mrb[61].mxu0 }
 0x2e4   : > { %v1012_v27 = vpop.f32.mrb[32].mxu1  ;;  %1145 = vmax.xlane.f32.xlu1 %v1144_v26 }
 0x2e5   : > { %v2974_v24 = vadd.f32 %v1012_v27, %v2821_v29  ;;  %v1014_v28 = vpop.f32.mrb[33].mxu1  ;;  %v2991_v29 = vpop.f32.mrb[62].mxu0 }
 0x2e6   : > { %v2977_v0 = vadd.f32 %v1014_v28, %v2823_v30  ;;  %v1016_v19 = vpop.f32.mrb[34].mxu1  ;;  %v2995_v27 = vpop.f32.mrb[63].mxu0 }
 0x2e7   : > { %3582 = vst [vmem:[#allocation23_spill] sm:$0xff] %v2974_v24  ;;  %v2980_v44 = vadd.f32 %v1016_v19, %v2825_v31  ;;  %v1018_v61 = vpop.f32.mrb[35].mxu1 }
 0x2e8   : > { %3583 = vst [vmem:[#allocation24_spill] sm:$0xff] %v2977_v0  ;;  %v2985_v6 = vadd.f32 %v1018_v61, %v2827_v32  ;;  %v1147_v26 = vmax.f32 %v2974_v24, %v2977_v0 }
 0x2e9   : > { %3584 = vst [vmem:[#allocation25_spill] sm:$0xff] %v2980_v44 }
 0x2ea   : > { %3585 = vst [vmem:[#allocation26_spill] sm:$0xff] %v2985_v6  ;;  %1148 = vmax.xlane.f32.xlu0 %v1147_v26  ;;  %v1150_v30 = vmax.f32 %v2980_v44, %v2985_v6  ;;  %v3006_v26 = vpop.f32.mrb[64].mxu0 }
 0x2eb   : > { %v3013_v44 = vpop.f32.mrb[65].mxu0 }
 0x2ec   : > { %v1022_v31 = vpop.f32.mrb[36].mxu1  ;;  %1151 = vmax.xlane.f32.xlu1 %v1150_v30 }
 0x2ed   : > { %v2998_v28 = vadd.f32 %v1022_v31, %v2829_v33  ;;  %v1024_v32 = vpop.f32.mrb[37].mxu1  ;;  %v3015_v33 = vpop.f32.mrb[66].mxu0 }
 0x2ee   : > { %v3001_v61 = vadd.f32 %v1024_v32, %v2831_v34  ;;  %v1026_v19 = vpop.f32.mrb[38].mxu1  ;;  %v3019_v31 = vpop.f32.mrb[67].mxu0 }
 0x2ef   : > { %3586 = vst [vmem:[#allocation27_spill] sm:$0xff] %v2998_v28  ;;  %v3004_v0 = vadd.f32 %v1026_v19, %v2833_v35  ;;  %v1028_v24 = vpop.f32.mrb[39].mxu1 }
 0x2f0   : > { %3587 = vst [vmem:[#allocation28_spill] sm:$0xff] %v3001_v61  ;;  %v3009_v6 = vadd.f32 %v1028_v24, %v2835_v36  ;;  %v1153_v30 = vmax.f32 %v2998_v28, %v3001_v61 }
 0x2f2   : > { %3588 = vst [vmem:[#allocation29_spill] sm:$0xff] %v3009_v6  ;;  %1154 = vmax.xlane.f32.xlu0 %v1153_v30  ;;  %v1156_v34 = vmax.f32 %v3004_v0, %v3009_v6 }
 0x2f4   : > { %v1032_v35 = vpop.f32.mrb[40].mxu1  ;;  %1157 = vmax.xlane.f32.xlu1 %v1156_v34 }
 0x2f5   : > { %v3022_v32 = vadd.f32 %v1032_v35, %v2837_v37  ;;  %v1034_v36 = vpop.f32.mrb[41].mxu1 }
 0x2f6   : > { %v3025_v24 = vadd.f32 %v1034_v36, %v2839_v38  ;;  %v1036_v19 = vpop.f32.mrb[42].mxu1 }
 0x2f7   : > { %v3028_v61 = vadd.f32 %v1036_v19, %v2841_v39  ;;  %v1038_v28 = vpop.f32.mrb[43].mxu1 }
 0x2f8   : > { %v3031_v30 = vadd.f32 %v1038_v28, %v2843_v40  ;;  %v1159_v6 = vmax.f32 %v3022_v32, %v3025_v24 }
 0x2fa   : > { %1160 = vmax.xlane.f32.xlu0 %v1159_v6  ;;  %v1162_v37 = vmax.f32 %v3028_v61, %v3031_v30 }
 0x2fc   : > { %v1042_v34 = vpop.f32.mrb[44].mxu1  ;;  %1163 = vmax.xlane.f32.xlu1 %v1162_v37 }
 0x2fd   : > { %v3038_v38 = vadd.f32 %v1042_v34, %v2845_v41  ;;  %v1044_v35 = vpop.f32.mrb[45].mxu1 }
 0x2fe   : > { %v3041_v39 = vadd.f32 %v1044_v35, %v2847_v42  ;;  %v1046_v36 = vpop.f32.mrb[46].mxu1 }
 0x2ff   : > { %v3044_v40 = vadd.f32 %v1046_v36, %v2849_v43  ;;  %v1048_v28 = vpop.f32.mrb[47].mxu1 }
 0x300   : > { %v3047_v19 = vadd.f32 %v1048_v28, %v2851_v46  ;;  %v1165_v6 = vmax.f32 %v3038_v38, %v3041_v39 }
 0x302   : > { %1166 = vmax.xlane.f32.xlu0 %v1165_v6  ;;  %v1168_v41 = vmax.f32 %v3044_v40, %v3047_v19 }
 0x304   : > { %v1052_v37 = vpop.f32.mrb[48].mxu1  ;;  %1169 = vmax.xlane.f32.xlu1 %v1168_v41 }
 0x305   : > { %v3054_v42 = vadd.f32 %v1052_v37, %v2853_v47  ;;  %v1054_v34 = vpop.f32.mrb[49].mxu1 }
 0x306   : > { %v3057_v43 = vadd.f32 %v1054_v34, %v2855_v48  ;;  %v1056_v35 = vpop.f32.mrb[50].mxu1 }
 0x307   : > { %v3060_v46 = vadd.f32 %v1056_v35, %v2857_v49  ;;  %v1058_v36 = vpop.f32.mrb[51].mxu1 }
 0x308   : > { %v3063_v28 = vadd.f32 %v1058_v36, %v2859_v50  ;;  %v1171_v6 = vmax.f32 %v3054_v42, %v3057_v43 }
 0x30a   : > { %1172 = vmax.xlane.f32.xlu0 %v1171_v6  ;;  %v1174_v47 = vmax.f32 %v3060_v46, %v3063_v28 }
 0x30c   : > { %v1062_v41 = vpop.f32.mrb[52].mxu1  ;;  %1175 = vmax.xlane.f32.xlu1 %v1174_v47 }
 0x30d   : > { %v3070_v48 = vadd.f32 %v1062_v41, %v2861_v51  ;;  %v1064_v37 = vpop.f32.mrb[53].mxu1 }
 0x30e   : > { %v3073_v49 = vadd.f32 %v1064_v37, %v2863_v52  ;;  %v1066_v34 = vpop.f32.mrb[54].mxu1 }
 0x30f   : > { %v3076_v50 = vadd.f32 %v1066_v34, %v2865_v53  ;;  %v1068_v35 = vpop.f32.mrb[55].mxu1 }
 0x310   : > { %3589 = vst [vmem:[#allocation30_spill] sm:$0xff] %v3073_v49  ;;  %v3079_v36 = vadd.f32 %v1068_v35, %v2867_v54  ;;  %v1177_v6 = vmax.f32 %v3070_v48, %v3073_v49 }
 0x311   : > { %3590 = vst [vmem:[#allocation31_spill] sm:$0xff] %v3076_v50 }
 0x312   : > { %3591 = vst [vmem:[#allocation32_spill] sm:$0xff] %v3079_v36  ;;  %1178 = vmax.xlane.f32.xlu0 %v1177_v6  ;;  %v1180_v51 = vmax.f32 %v3076_v50, %v3079_v36 }
 0x314   : > { %1181 = vmax.xlane.f32.xlu1 %v1180_v51  ;;  %v1072_v47 = vpop.f32.mrb[56].mxu1 }
 0x315   : > { %v3086_v52 = vadd.f32 %v1072_v47, %v2934_v4  ;;  %v1074_v41 = vpop.f32.mrb[57].mxu1 }
 0x316   : > { %v3089_v53 = vadd.f32 %v1074_v41, %v2941_v21  ;;  %v1076_v37 = vpop.f32.mrb[58].mxu1 }
 0x317   : > { %v3092_v54 = vadd.f32 %v1076_v37, %v2943_v16  ;;  %v1078_v34 = vpop.f32.mrb[59].mxu1 }
 0x318   : > { %v3095_v35 = vadd.f32 %v1078_v34, %v2947_v55 }
 0x31c   : > { %v1082_v6 = vpop.f32.mrb[60].mxu1 }
 0x31d   : > { %v3098_v36 = vadd.f32 %v1082_v6, %v2958_v2  ;;  %v1084_v51 = vpop.f32.mrb[61].mxu1 }
 0x31e   : > { %v3101_v4 = vadd.f32 %v1084_v51, %v2965_v45  ;;  %v1086_v47 = vpop.f32.mrb[62].mxu1 }
 0x31f   : > { %v3104_v21 = vadd.f32 %v1086_v47, %v2967_v25  ;;  %v1088_v41 = vpop.f32.mrb[63].mxu1 }
 0x320   : > { %v3107_v16 = vadd.f32 %v1088_v41, %v2971_v23 }
 0x324   : > { %v1092_v37 = vpop.f32.mrb[64].mxu1 }
 0x325   : > { %v3110_v55 = vadd.f32 %v1092_v37, %v2982_v22  ;;  %v1094_v34 = vpop.f32.mrb[65].mxu1 }
 0x326   : > { %v3113_v2 = vadd.f32 %v1094_v34, %v2989_v12  ;;  %v1096_v6 = vpop.f32.mrb[66].mxu1 }
 0x327   : > { %v3116_v45 = vadd.f32 %v1096_v6, %v2991_v29  ;;  %v1098_v51 = vpop.f32.mrb[67].mxu1 }
 0x328   : > { %v3119_v25 = vadd.f32 %v1098_v51, %v2995_v27 }
 0x32c   : > { %v1102_v47 = vpop.f32.mrb[68].mxu1 }
 0x32d   : > { %v3122_v23 = vadd.f32 %v1102_v47, %v3006_v26  ;;  %v1104_v41 = vpop.f32.mrb[69].mxu1 }
 0x32e   : > { %v3125_v22 = vadd.f32 %v1104_v41, %v3013_v44  ;;  %v1106_v37 = vpop.f32.mrb[70].mxu1 }
 0x32f   : > { %v3128_v12 = vadd.f32 %v1106_v37, %v3015_v33  ;;  %v1108_v34 = vpop.f32.mrb[71].mxu1 }
 0x330   : > { %v3131_v29 = vadd.f32 %v1108_v34, %v3019_v31 }
 0x347   : > { %v1113_v6 = vpop.xlane.xlu0 %1112 }
 0x348   : > { %v1207_v27 = vsub.f32 %v2869_v56, %v1113_v6  ;;  %v1208_v51 = vsub.f32 %v2871_v58, %v1113_v6 }
 0x349   : > { %v1116_v50 = vpop.xlane.xlu1 %1115 }
 0x34a   : > { %v1271_v26 = vmul.f32 1.442695, %v1207_v27  ;;  %v1273_v47 = vmul.f32 1.442695, %v1208_v51  ;;  %v1209_v49 = vsub.f32 %v2873_v60, %v1116_v50  ;;  %v1210_v44 = vsub.f32 %v2875_v62, %v1116_v50 }
 0x34c   : > { %2050 = vpow2.f32 %v1271_v26  ;;  %v1275_v41 = vmul.f32 1.442695, %v1209_v49  ;;  %v1277_v33 = vmul.f32 1.442695, %v1210_v44 }
 0x34d   : > { %2052 = vpow2.f32 %v1273_v47 }
 0x34e   : > { %2054 = vpow2.f32 %v1275_v41 }
 0x34f   : > { %2056 = vpow2.f32 %v1277_v33  ;;  %v1119_v31 = vpop.xlane.xlu0 %1118 }
 0x350   : > { %v1211_v37 = vsub.f32 %v2881_v3, %v1119_v31  ;;  %v1212_v56 = vsub.f32 %v2883_v5, %v1119_v31  ;;  %v1183_v31 = vmax.f32 %v3086_v52, %v3089_v53 }
 0x352   : > { %v1279_v34 = vmul.f32 1.442695, %v1211_v37  ;;  %v1281_v58 = vmul.f32 1.442695, %v1212_v56  ;;  %v1186_v56 = vmax.f32 %v3092_v54, %v3095_v35 }
 0x353   : > { %v1122_v6 = vpop.xlane.xlu0 %1121 }
 0x354   : > { %2058 = vpow2.f32 %v1279_v34  ;;  %v1213_v27 = vsub.f32 %v2885_v7, %v1122_v6  ;;  %v1214_v60 = vsub.f32 %v2887_v8, %v1122_v6 }
 0x355   : > { %2060 = vpow2.f32 %v1281_v58 }
 0x356   : > { %v3141_v62 = vpop.eup %2050  ;;  %v1283_v49 = vmul.f32 1.442695, %v1213_v27  ;;  %v1285_v50 = vmul.f32 1.442695, %v1214_v60 }
 0x357   : > { %v3143_v51 = vpop.eup %2052  ;;  %v1125_v26 = vpop.xlane.xlu0 %1124 }
 0x358   : > { %v3145_v47 = vpop.eup %2054  ;;  %2062 = vpow2.f32 %v1283_v49  ;;  %v1215_v3 = vsub.f32 %v2894_v10, %v1125_v26  ;;  %v1216_v5 = vsub.f32 %v2897_v11, %v1125_v26  ;;  %v1399_v7 = vadd.f32 %v3143_v51, %v3141_v62 }
 0x359   : > { %v3151_v44 = vpop.eup %2056  ;;  %2064 = vpow2.f32 %v1285_v50 }
 0x35a   : > { %v1287_v8 = vmul.f32 1.442695, %v1215_v3  ;;  %v1289_v41 = vmul.f32 1.442695, %v1216_v5  ;;  %1400 = vadd.xlane.f32.xlu0 %v1399_v7  ;;  %v1402_v33 = vadd.f32 %v3151_v44, %v3145_v47  ;;  %v1189_v5 = vmax.f32 %v3098_v36, %v3101_v4 }
 0x35b   : > { %v1128_v37 = vpop.xlane.xlu0 %1127 }
 0x35c   : > { %2066 = vpow2.f32 %v1287_v8  ;;  %v1217_v10 = vsub.f32 %v2900_v13, %v1128_v37  ;;  %v1218_v11 = vsub.f32 %v2903_v1, %v1128_v37  ;;  %1403 = vadd.xlane.f32.xlu1 %v1402_v33 }
 0x35d   : > { %2068 = vpow2.f32 %v1289_v41 }
 0x35e   : > { %v3161_v34 = vpop.eup %2058  ;;  %v1291_v58 = vmul.f32 1.442695, %v1217_v10  ;;  %v1293_v6 = vmul.f32 1.442695, %v1218_v11  ;;  %1184 = vmax.xlane.f32.xlu0 %v1183_v31 }
 0x35f   : > { %v3163_v27 = vpop.eup %2060  ;;  %v1131_v60 = vpop.xlane.xlu0 %1130 }
 0x360   : > { %2070 = vpow2.f32 %v1291_v58  ;;  %v1219_v49 = vsub.f32 %v2910_v15, %v1131_v60  ;;  %v1220_v13 = vsub.f32 %v2913_v9, %v1131_v60  ;;  %1187 = vmax.xlane.f32.xlu1 %v1186_v56  ;;  %v1405_v1 = vadd.f32 %v3163_v27, %v3161_v34 }
 0x361   : > { %2072 = vpow2.f32 %v1293_v6  ;;  %v1192_v56 = vmax.f32 %v3104_v21, %v3107_v16  ;;  %v1195_v60 = vmax.f32 %v3110_v55, %v3113_v2 }
 0x362   : > { %v3169_v50 = vpop.eup %2062  ;;  %v1295_v26 = vmul.f32 1.442695, %v1219_v49  ;;  %v1297_v3 = vmul.f32 1.442695, %v1220_v13  ;;  %1406 = vadd.xlane.f32.xlu0 %v1405_v1 }
 0x363   : > { %v3173_v7 = vpop.eup %2064  ;;  %v1134_v8 = vpop.xlane.xlu0 %1133 }
 0x364   : > { %2074 = vpow2.f32 %v1295_v26  ;;  %v1221_v15 = vsub.f32 %v2916_v17, %v1134_v8  ;;  %v1222_v9 = vsub.f32 %v2919_v57, %v1134_v8  ;;  %v1408_v41 = vadd.f32 %v3173_v7, %v3169_v50 }
 0x365   : > { %2076 = vpow2.f32 %v1297_v3 }
 0x366   : > { %v3179_v33 = vpop.eup %2066  ;;  %v1299_v31 = vmul.f32 1.442695, %v1221_v15  ;;  %v1301_v37 = vmul.f32 1.442695, %v1222_v9  ;;  %1409 = vadd.xlane.f32.xlu1 %v1408_v41  ;;  %1190 = vmax.xlane.f32.xlu0 %v1189_v5  ;;  %v3592_v41 = vld [vmem:[#allocation20_spill] sm:$0xff] }
 0x367   : > { %v3181_v10 = vpop.eup %2068  ;;  %v1137_v11 = vpop.xlane.xlu0 %1136 }
 0x368   : > { %2078 = vpow2.f32 %v1299_v31  ;;  %v1223_v17 = vsub.f32 %v2926_v18, %v1137_v11  ;;  %v1224_v57 = vsub.f32 %v2929_v63, %v1137_v11  ;;  %v1411_v58 = vadd.f32 %v3181_v10, %v3179_v33 }
 0x369   : > { %2080 = vpow2.f32 %v1301_v37  ;;  %v1140_v6 = vpop.xlane.xlu1 %1139  ;;  %v1198_v11 = vmax.f32 %v3116_v45, %v3119_v25 }
 0x36a   : > { %v3191_v49 = vpop.eup %2070  ;;  %v1303_v13 = vmul.f32 1.442695, %v1223_v17  ;;  %v1305_v1 = vmul.f32 1.442695, %v1224_v57  ;;  %v1225_v26 = vsub.f32 %v2932_v20, %v1140_v6  ;;  %v1226_v3 = vsub.f32 %v2937_v14, %v1140_v6  ;;  %1412 = vadd.xlane.f32.xlu0 %v1411_v58  ;;  %1193 = vmax.xlane.f32.xlu1 %v1192_v56 }
 0x36b   : > { %v3195_v18 = vpop.eup %2072  ;;  %v1201_v17 = vmax.f32 %v3122_v23, %v3125_v22 }
 0x36c   : > { %2082 = vpow2.f32 %v1303_v13  ;;  %v1307_v63 = vmul.f32 1.442695, %v1225_v26  ;;  %v1309_v5 = vmul.f32 1.442695, %v1226_v3  ;;  %v1414_v8 = vadd.f32 %v3195_v18, %v3191_v49 }
 0x36d   : > { %2084 = vpow2.f32 %v1305_v1  ;;  %v3594_v1 = vld [vmem:[#allocation22_spill] sm:$0xff] }
 0x36e   : > { %v3199_v15 = vpop.eup %2074  ;;  %2086 = vpow2.f32 %v1307_v63  ;;  %1415 = vadd.xlane.f32.xlu1 %v1414_v8  ;;  %1196 = vmax.xlane.f32.xlu0 %v1195_v60  ;;  %v3593_v60 = vld [vmem:[#allocation21_spill] sm:$0xff] }
 0x36f   : > { %v3201_v9 = vpop.eup %2076  ;;  %2088 = vpow2.f32 %v1309_v5  ;;  %v1143_v20 = vpop.xlane.xlu0 %1142 }
 0x370   : > { %v1227_v14 = vsub.f32 %v2950_v59, %v1143_v20  ;;  %v1228_v31 = vsub.f32 %v3592_v41, %v1143_v20  ;;  %v1417_v37 = vadd.f32 %v3201_v9, %v3199_v15 }
 0x371   : > { %v1146_v56 = vpop.xlane.xlu1 %1145 }
 0x372   : > { %v3211_v57 = vpop.eup %2078  ;;  %v1311_v58 = vmul.f32 1.442695, %v1227_v14  ;;  %v1313_v6 = vmul.f32 1.442695, %v1228_v31  ;;  %v1229_v13 = vsub.f32 %v3593_v60, %v1146_v56  ;;  %v1230_v59 = vsub.f32 %v3594_v1, %v1146_v56  ;;  %1418 = vadd.xlane.f32.xlu0 %v1417_v37  ;;  %1199 = vmax.xlane.f32.xlu1 %v1198_v11  ;;  %v3598_v31 = vld [vmem:[#allocation23_spill] sm:$0xff]  ;;  %v3599_v11 = vld [vmem:[#allocation24_spill] sm:$0xff] }
 0x373   : > { %v3215_v26 = vpop.eup %2080 }
 0x374   : > { %2090 = vpow2.f32 %v1311_v58  ;;  %v1315_v3 = vmul.f32 1.442695, %v1229_v13  ;;  %v1317_v63 = vmul.f32 1.442695, %v1230_v59  ;;  %v1420_v5 = vadd.f32 %v3215_v26, %v3211_v57  ;;  %v3601_v59 = vld [vmem:[#allocation25_spill] sm:$0xff] }
 0x375   : > { %2092 = vpow2.f32 %v1313_v6  ;;  %v1204_v6 = vmax.f32 %v3128_v12, %v3131_v29 }
 0x376   : > { %v3219_v8 = vpop.eup %2082  ;;  %2094 = vpow2.f32 %v1315_v3  ;;  %1421 = vadd.xlane.f32.xlu1 %v1420_v5  ;;  %1202 = vmax.xlane.f32.xlu0 %v1201_v17 }
 0x377   : > { %3595 = vst [vmem:[#allocation20_spill] sm:$0xff] %v3219_v8  ;;  %v3221_v20 = vpop.eup %2084  ;;  %2096 = vpow2.f32 %v1317_v63  ;;  %v1149_v14 = vpop.xlane.xlu0 %1148  ;;  %v3602_v63 = vld [vmem:[#allocation26_spill] sm:$0xff] }
 0x378   : > { %3596 = vst [vmem:[#allocation21_spill] sm:$0xff] %v3221_v20  ;;  %v3223_v41 = vpop.eup %2086  ;;  %v1231_v37 = vsub.f32 %v3598_v31, %v1149_v14  ;;  %v1232_v56 = vsub.f32 %v3599_v11, %v1149_v14  ;;  %v1423_v58 = vadd.f32 %v3221_v20, %v3219_v8 }
 0x379   : > { %3597 = vst [vmem:[#allocation22_spill] sm:$0xff] %v3223_v41  ;;  %v3231_v60 = vpop.eup %2088  ;;  %v1152_v13 = vpop.xlane.xlu1 %1151 }
 0x37a   : > { %3600 = vst [vmem:[#allocation23_spill] sm:$0xff] %v3231_v60  ;;  %v1319_v17 = vmul.f32 1.442695, %v1231_v37  ;;  %v1321_v1 = vmul.f32 1.442695, %v1232_v56  ;;  %v1233_v3 = vsub.f32 %v3601_v59, %v1152_v13  ;;  %v1234_v5 = vsub.f32 %v3602_v63, %v1152_v13  ;;  %1424 = vadd.xlane.f32.xlu0 %v1423_v58  ;;  %1205 = vmax.xlane.f32.xlu1 %v1204_v6  ;;  %v3603_v13 = vld [vmem:[#allocation27_spill] sm:$0xff] }
 0x37b   : > { %v1426_v11 = vadd.f32 %v3231_v60, %v3223_v41  ;;  %v3604_v6 = vld [vmem:[#allocation28_spill] sm:$0xff] }
 0x37c   : > { %2098 = vpow2.f32 %v1319_v17  ;;  %v1323_v31 = vmul.f32 1.442695, %v1233_v3  ;;  %v1325_v14 = vmul.f32 1.442695, %v1234_v5 }
 0x37d   : > { %2100 = vpow2.f32 %v1321_v1 }
 0x37e   : > { %v3237_v8 = vpop.eup %2090  ;;  %2102 = vpow2.f32 %v1323_v31  ;;  %1427 = vadd.xlane.f32.xlu1 %v1426_v11  ;;  %v3605_v11 = vld [vmem:[#allocation29_spill] sm:$0xff] }
 0x37f   : > { %v3239_v20 = vpop.eup %2092  ;;  %2104 = vpow2.f32 %v1325_v14  ;;  %v1155_v37 = vpop.xlane.xlu0 %1154 }
 0x380   : > { %v3241_v56 = vpop.eup %2094  ;;  %v1235_v58 = vsub.f32 %v3603_v13, %v1155_v37  ;;  %v1236_v17 = vsub.f32 %v3604_v6, %v1155_v37  ;;  %v1429_v59 = vadd.f32 %v3239_v20, %v3237_v8 }
 0x381   : > { %v3247_v3 = vpop.eup %2096  ;;  %v1158_v1 = vpop.xlane.xlu1 %1157 }
 0x382   : > { %v1327_v63 = vmul.f32 1.442695, %v1235_v58  ;;  %v1329_v5 = vmul.f32 1.442695, %v1236_v17  ;;  %v1237_v31 = vsub.f32 %v3004_v0, %v1158_v1  ;;  %v1238_v41 = vsub.f32 %v3605_v11, %v1158_v1  ;;  %1430 = vadd.xlane.f32.xlu0 %v1429_v59 }
 0x383   : > { %v1432_v14 = vadd.f32 %v3247_v3, %v3241_v56 }
 0x384   : > { %2106 = vpow2.f32 %v1327_v63  ;;  %v1331_v13 = vmul.f32 1.442695, %v1237_v31  ;;  %v1333_v60 = vmul.f32 1.442695, %v1238_v41 }
 0x385   : > { %2108 = vpow2.f32 %v1329_v5  ;;  %1433 = vadd.xlane.f32.xlu1 %v1432_v14 }
 0x386   : > { %v3253_v37 = vpop.eup %2098  ;;  %2110 = vpow2.f32 %v1331_v13 }
 0x387   : > { %v3255_v6 = vpop.eup %2100  ;;  %2112 = vpow2.f32 %v1333_v60  ;;  %v1161_v58 = vpop.xlane.xlu0 %1160 }
 0x388   : > { %v3257_v17 = vpop.eup %2102  ;;  %v1239_v0 = vsub.f32 %v3022_v32, %v1161_v58  ;;  %v1240_v59 = vsub.f32 %v3025_v24, %v1161_v58  ;;  %v1435_v1 = vadd.f32 %v3255_v6, %v3253_v37 }
 0x389   : > { %v3263_v63 = vpop.eup %2104  ;;  %v1164_v41 = vpop.xlane.xlu1 %1163 }
 0x38a   : > { %v1335_v5 = vmul.f32 1.442695, %v1239_v0  ;;  %v1337_v31 = vmul.f32 1.442695, %v1240_v59  ;;  %v1241_v11 = vsub.f32 %v3028_v61, %v1164_v41  ;;  %v1242_v14 = vsub.f32 %v3031_v30, %v1164_v41  ;;  %1436 = vadd.xlane.f32.xlu0 %v1435_v1 }
 0x38b   : > { %v1438_v60 = vadd.f32 %v3263_v63, %v3257_v17 }
 0x38c   : > { %2114 = vpow2.f32 %v1335_v5  ;;  %v1339_v32 = vmul.f32 1.442695, %v1241_v11  ;;  %v1341_v13 = vmul.f32 1.442695, %v1242_v14 }
 0x38d   : > { %2116 = vpow2.f32 %v1337_v31  ;;  %1439 = vadd.xlane.f32.xlu1 %v1438_v60 }
 0x38e   : > { %v3269_v24 = vpop.eup %2106  ;;  %2118 = vpow2.f32 %v1339_v32 }
 0x38f   : > { %v3271_v58 = vpop.eup %2108  ;;  %2120 = vpow2.f32 %v1341_v13  ;;  %v1167_v0 = vpop.xlane.xlu0 %1166 }
 0x390   : > { %v3273_v59 = vpop.eup %2110  ;;  %v1243_v61 = vsub.f32 %v3038_v38, %v1167_v0  ;;  %v1244_v30 = vsub.f32 %v3041_v39, %v1167_v0  ;;  %v1441_v1 = vadd.f32 %v3271_v58, %v3269_v24 }
 0x391   : > { %v3279_v41 = vpop.eup %2112  ;;  %v1170_v5 = vpop.xlane.xlu1 %1169 }
 0x392   : > { %v1343_v31 = vmul.f32 1.442695, %v1243_v61  ;;  %v1345_v11 = vmul.f32 1.442695, %v1244_v30  ;;  %v1245_v14 = vsub.f32 %v3044_v40, %v1170_v5  ;;  %v1246_v60 = vsub.f32 %v3047_v19, %v1170_v5  ;;  %1442 = vadd.xlane.f32.xlu0 %v1441_v1 }
 0x393   : > { %v1444_v32 = vadd.f32 %v3279_v41, %v3273_v59 }
 0x394   : > { %2122 = vpow2.f32 %v1343_v31  ;;  %v1347_v38 = vmul.f32 1.442695, %v1245_v14  ;;  %v1349_v13 = vmul.f32 1.442695, %v1246_v60 }
 0x395   : > { %2124 = vpow2.f32 %v1345_v11  ;;  %1445 = vadd.xlane.f32.xlu1 %v1444_v32 }
 0x396   : > { %v3285_v39 = vpop.eup %2114  ;;  %2126 = vpow2.f32 %v1347_v38 }
 0x397   : > { %3606 = vst [vmem:[#allocation24_spill] sm:$0xff] %v3285_v39  ;;  %v3287_v0 = vpop.eup %2116  ;;  %2128 = vpow2.f32 %v1349_v13  ;;  %v1173_v61 = vpop.xlane.xlu0 %1172 }
 0x398   : > { %v3289_v30 = vpop.eup %2118  ;;  %v1247_v40 = vsub.f32 %v3054_v42, %v1173_v61  ;;  %v1248_v19 = vsub.f32 %v3057_v43, %v1173_v61  ;;  %v1447_v1 = vadd.f32 %v3287_v0, %v3285_v39  ;;  %v3611_v39 = vld [vmem:[#allocation32_spill] sm:$0xff] }
 0x399   : > { %3607 = vst [vmem:[#allocation25_spill] sm:$0xff] %v3289_v30  ;;  %v3295_v5 = vpop.eup %2120  ;;  %v1176_v31 = vpop.xlane.xlu1 %1175 }
 0x39a   : > { %3608 = vst [vmem:[#allocation26_spill] sm:$0xff] %v3295_v5  ;;  %v1351_v11 = vmul.f32 1.442695, %v1247_v40  ;;  %v1353_v14 = vmul.f32 1.442695, %v1248_v19  ;;  %v1249_v60 = vsub.f32 %v3060_v46, %v1176_v31  ;;  %v1250_v32 = vsub.f32 %v3063_v28, %v1176_v31  ;;  %1448 = vadd.xlane.f32.xlu0 %v1447_v1  ;;  %v3609_v28 = vld [vmem:[#allocation30_spill] sm:$0xff] }
 0x39b   : > { %v1450_v38 = vadd.f32 %v3295_v5, %v3289_v30 }
 0x39c   : > { %2130 = vpow2.f32 %v1351_v11  ;;  %v1355_v42 = vmul.f32 1.442695, %v1249_v60  ;;  %v1357_v13 = vmul.f32 1.442695, %v1250_v32 }
 0x39d   : > { %2132 = vpow2.f32 %v1353_v14  ;;  %1451 = vadd.xlane.f32.xlu1 %v1450_v38  ;;  %v3610_v38 = vld [vmem:[#allocation31_spill] sm:$0xff] }
 0x39e   : > { %v3301_v43 = vpop.eup %2122  ;;  %2134 = vpow2.f32 %v1355_v42 }
 0x39f   : > { %v3303_v61 = vpop.eup %2124  ;;  %2136 = vpow2.f32 %v1357_v13  ;;  %v1179_v40 = vpop.xlane.xlu0 %1178 }
 0x3a0   : > { %v3305_v19 = vpop.eup %2126  ;;  %v1251_v46 = vsub.f32 %v3070_v48, %v1179_v40  ;;  %v1252_v1 = vsub.f32 %v3609_v28, %v1179_v40  ;;  %v1453_v31 = vadd.f32 %v3303_v61, %v3301_v43 }
 0x3a1   : > { %v3311_v11 = vpop.eup %2128  ;;  %v1182_v14 = vpop.xlane.xlu1 %1181 }
 0x3a2   : > { %v1359_v60 = vmul.f32 1.442695, %v1251_v46  ;;  %v1361_v32 = vmul.f32 1.442695, %v1252_v1  ;;  %v1253_v42 = vsub.f32 %v3610_v38, %v1182_v14  ;;  %v1254_v30 = vsub.f32 %v3611_v39, %v1182_v14  ;;  %1454 = vadd.xlane.f32.xlu0 %v1453_v31 }
 0x3a3   : > { %v1456_v13 = vadd.f32 %v3311_v11, %v3305_v19 }
 0x3a4   : > { %2138 = vpow2.f32 %v1359_v60  ;;  %v1363_v48 = vmul.f32 1.442695, %v1253_v42  ;;  %v1365_v5 = vmul.f32 1.442695, %v1254_v30 }
 0x3a5   : > { %2140 = vpow2.f32 %v1361_v32  ;;  %1457 = vadd.xlane.f32.xlu1 %v1456_v13 }
 0x3a6   : > { %v3317_v40 = vpop.eup %2130  ;;  %2142 = vpow2.f32 %v1363_v48 }
 0x3a7   : > { %3612 = vst [vmem:[#allocation27_spill] sm:$0xff] %v3317_v40  ;;  %v3319_v28 = vpop.eup %2132  ;;  %2144 = vpow2.f32 %v1365_v5 }
 0x3a8   : > { %v3321_v46 = vpop.eup %2134  ;;  %v1459_v39 = vadd.f32 %v3319_v28, %v3317_v40 }
 0x3a9   : > { %3613 = vst [vmem:[#allocation28_spill] sm:$0xff] %v3321_v46  ;;  %v3325_v1 = vpop.eup %2136 }
 0x3aa   : > { %3614 = vst [vmem:[#allocation29_spill] sm:$0xff] %v3325_v1  ;;  %1460 = vadd.xlane.f32.xlu0 %v1459_v39  ;;  %v1462_v31 = vadd.f32 %v3325_v1, %v3321_v46 }
 0x3ac   : > { %1463 = vadd.xlane.f32.xlu1 %v1462_v31 }
 0x3ae   : > { %v3329_v30 = vpop.eup %2138 }
 0x3af   : > { %3615 = vst [vmem:[#allocation30_spill] sm:$0xff] %v3329_v30  ;;  %v3331_v14 = vpop.eup %2140 }
 0x3b0   : > { %3616 = vst [vmem:[#allocation31_spill] sm:$0xff] %v3331_v14  ;;  %v3333_v60 = vpop.eup %2142  ;;  %v1465_v5 = vadd.f32 %v3331_v14, %v3329_v30 }
 0x3b1   : > { %3617 = vst [vmem:[#allocation32_spill] sm:$0xff] %v3333_v60  ;;  %v3337_v32 = vpop.eup %2144 }
 0x3b2   : > { %3618 = vst [vmem:[#allocation33_spill] sm:$0xff] %v3337_v32  ;;  %1466 = vadd.xlane.f32.xlu0 %v1465_v5  ;;  %v1468_v38 = vadd.f32 %v3337_v32, %v3333_v60 }
 0x3b4   : > { %1469 = vadd.xlane.f32.xlu1 %v1468_v38 }
 0x3e7   : > { %v1401_v42 = vpop.xlane.xlu0 %1400 }
 0x3e8   : > { %2146 = vrcp.f32 %v1401_v42 }
 0x3e9   : > { %v1404_v13 = vpop.xlane.xlu1 %1403 }
 0x3ea   : > { %2148 = vrcp.f32 %v1404_v13 }
 0x3eb   : > { %v1185_v48 = vpop.xlane.xlu0 %1184 }
 0x3ec   : > { %v1255_v39 = vsub.f32 %v3086_v52, %v1185_v48  ;;  %v1256_v31 = vsub.f32 %v3089_v53, %v1185_v48 }
 0x3ed   : > { %v1188_v40 = vpop.xlane.xlu1 %1187 }
 0x3ee   : > { %v1367_v46 = vmul.f32 1.442695, %v1255_v39  ;;  %v1369_v1 = vmul.f32 1.442695, %v1256_v31  ;;  %v1257_v30 = vsub.f32 %v3092_v54, %v1188_v40  ;;  %v1258_v5 = vsub.f32 %v3095_v35, %v1188_v40 }
 0x3ef   : > { %v1407_v14 = vpop.xlane.xlu0 %1406 }
 0x3f0   : > { %2150 = vpow2.f32 %v1367_v46  ;;  %v1371_v60 = vmul.f32 1.442695, %v1257_v30  ;;  %v1373_v38 = vmul.f32 1.442695, %v1258_v5 }
 0x3f1   : > { %2152 = vpow2.f32 %v1369_v1 }
 0x3f2   : > { %v2147_v42 = vpop.eup %2146  ;;  %2154 = vpow2.f32 %v1371_v60 }
 0x3f3   : > { %2156 = vpow2.f32 %v1373_v38  ;;  %v1410_v13 = vpop.xlane.xlu1 %1409  ;;  %v1191_v32 = vpop.xlane.xlu0 %1190  ;;  %v1528_v54 = vmul.f32 %v2147_v42, %v3143_v51  ;;  %v1527_v40 = vmul.f32 %v2147_v42, %v3141_v62 }
 0x3f4   : > { %v2149_v52 = vpop.eup %2148  ;;  %2158 = vrcp.f32 %v1407_v14  ;;  %v1259_v53 = vsub.f32 %v3098_v36, %v1191_v32  ;;  %v1260_v48 = vsub.f32 %v3101_v4, %v1191_v32 }
 0x3f5   : > { %2160 = vrcp.f32 %v1410_v13  ;;  %v1530_v35 = vmul.f32 %v2149_v52, %v3151_v44  ;;  %v1529_v46 = vmul.f32 %v2149_v52, %v3145_v47 }
 0x3f6   : > { %v1375_v1 = vmul.f32 1.442695, %v1259_v53  ;;  %v1377_v30 = vmul.f32 1.442695, %v1260_v48 }
 0x3f7   : > { %v1413_v60 = vpop.xlane.xlu0 %1412  ;;  %v1194_v39 = vpop.xlane.xlu1 %1193  ;;  %v1592_v31 = vpack.c.bf16 %v1530_v35, %v1528_v54  ;;  %v1591_v5 = vpack.c.bf16 %v1529_v46, %v1527_v40 }
 0x3f8   : > { %2162 = vpow2.f32 %v1375_v1  ;;  %v1261_v36 = vsub.f32 %v3104_v21, %v1194_v39  ;;  %v1262_v4 = vsub.f32 %v3107_v16, %v1194_v39 }
 0x3f9   : > { %2164 = vpow2.f32 %v1377_v30  ;;  %1635 = vmatprep.subr.bf16.mxu0 %v1592_v31 }
 0x3fa   : > { %v3353_v51 = vpop.eup %2150  ;;  %2166 = vrcp.f32 %v1413_v60  ;;  %v1379_v44 = vmul.f32 1.442695, %v1261_v36  ;;  %v1381_v62 = vmul.f32 1.442695, %v1262_v4  ;;  %1636 = vmatpush1.bf16.xpose.msra.mxu0 %v1591_v5 }
 0x3fb   : > { %v3355_v47 = vpop.eup %2152  ;;  %v1416_v14 = vpop.xlane.xlu1 %1415 }
 0x3fc   : > { %v1197_v32 = vpop.xlane.xlu0 %1196  ;;  %v3357_v38 = vpop.eup %2154  ;;  %2168 = vpow2.f32 %v1379_v44  ;;  %v1471_v16 = vadd.f32 %v3355_v47, %v3353_v51 }
 0x3fd   : > { %v1263_v42 = vsub.f32 %v3110_v55, %v1197_v32  ;;  %v1264_v21 = vsub.f32 %v3113_v2, %v1197_v32  ;;  %v3363_v13 = vpop.eup %2156  ;;  %2170 = vpow2.f32 %v1381_v62 }
 0x3fe   : > { %v2159_v52 = vpop.eup %2158  ;;  %2172 = vrcp.f32 %v1416_v14  ;;  %1472 = vadd.xlane.f32.xlu0 %v1471_v16  ;;  %v1474_v54 = vadd.f32 %v3363_v13, %v3357_v38 }
 0x3ff   : > { %v1383_v53 = vmul.f32 1.442695, %v1263_v42  ;;  %v1385_v48 = vmul.f32 1.442695, %v1264_v21  ;;  %v2161_v35 = vpop.eup %2160  ;;  %v1200_v46 = vpop.xlane.xlu1 %1199  ;;  %v1532_v55 = vmul.f32 %v2159_v52, %v3163_v27  ;;  %v1531_v60 = vmul.f32 %v2159_v52, %v3161_v34 }
 0x400   : > { %v1419_v40 = vpop.xlane.xlu0 %1418  ;;  %v1265_v2 = vsub.f32 %v3116_v45, %v1200_v46  ;;  %v1266_v1 = vsub.f32 %v3119_v25, %v1200_v46  ;;  %1475 = vadd.xlane.f32.xlu1 %v1474_v54  ;;  %v1534_v30 = vmul.f32 %v2161_v35, %v3173_v7  ;;  %v1533_v39 = vmul.f32 %v2161_v35, %v3169_v50 }
 0x401   : > { %2174 = vpow2.f32 %v1383_v53 }
 0x402   : > { %2176 = vpow2.f32 %v1385_v48  ;;  %v3373_v31 = vpop.eup %2162  ;;  %v1387_v5 = vmul.f32 1.442695, %v1265_v2  ;;  %v1389_v36 = vmul.f32 1.442695, %v1266_v1  ;;  %v1594_v4 = vpack.c.bf16 %v1534_v30, %v1532_v55 }
 0x403   : > { %v3375_v44 = vpop.eup %2164  ;;  %2178 = vrcp.f32 %v1419_v40  ;;  %v1422_v27 = vpop.xlane.xlu1 %1421  ;;  %v1593_v62 = vpack.c.bf16 %v1533_v39, %v1531_v60 }
 0x404   : > { %v1203_v45 = vpop.xlane.xlu0 %1202  ;;  %v2167_v25 = vpop.eup %2166  ;;  %2180 = vpow2.f32 %v1387_v5  ;;  %1637 = vmatprep.subr.bf16.mxu0 %v1594_v4  ;;  %v1477_v50 = vadd.f32 %v3375_v44, %v3373_v31 }
 0x405   : > { %v1267_v7 = vsub.f32 %v3122_v23, %v1203_v45  ;;  %v1268_v34 = vsub.f32 %v3125_v22, %v1203_v45  ;;  %2182 = vpow2.f32 %v1389_v36  ;;  %1638 = vmatpush1.bf16.xpose.msra.mxu0 %v1593_v62  ;;  %v1536_v52 = vmul.f32 %v2167_v25, %v3181_v10 }
 0x406   : > { %v3381_v14 = vpop.eup %2168  ;;  %2184 = vrcp.f32 %v1422_v27  ;;  %1478 = vadd.xlane.f32.xlu0 %v1477_v50  ;;  %v1535_v40 = vmul.f32 %v2167_v25, %v3179_v33 }
 0x407   : > { %v1391_v32 = vmul.f32 1.442695, %v1267_v7  ;;  %v1393_v42 = vmul.f32 1.442695, %v1268_v34  ;;  %v3383_v21 = vpop.eup %2170  ;;  %v1206_v16 = vpop.xlane.xlu1 %1205 }
 0x408   : > { %v2173_v53 = vpop.eup %2172  ;;  %v1425_v23 = vpop.xlane.xlu0 %1424  ;;  %v1269_v22 = vsub.f32 %v3128_v12, %v1206_v16  ;;  %v1270_v48 = vsub.f32 %v3131_v29, %v1206_v16  ;;  %v1480_v54 = vadd.f32 %v3383_v21, %v3381_v14 }
 0x409   : > { %2186 = vpow2.f32 %v1391_v32  ;;  %v1538_v35 = vmul.f32 %v2173_v53, %v3195_v18  ;;  %v1537_v46 = vmul.f32 %v2173_v53, %v3191_v49  ;;  %v3619_v53 = vld [vmem:[#allocation21_spill] sm:$0xff] }
 0x40a   : > { %2188 = vpow2.f32 %v1393_v42  ;;  %v1395_v10 = vmul.f32 1.442695, %v1269_v22  ;;  %v1397_v2 = vmul.f32 1.442695, %v1270_v48  ;;  %1481 = vadd.xlane.f32.xlu1 %v1480_v54  ;;  %v3620_v22 = vld [vmem:[#allocation23_spill] sm:$0xff]  ;;  %v3621_v54 = vld [vmem:[#allocation20_spill] sm:$0xff] }
 0x40b   : > { %v3393_v55 = vpop.eup %2174  ;;  %2190 = vrcp.f32 %v1425_v23  ;;  %v1596_v12 = vpack.c.bf16 %v1538_v35, %v1536_v52  ;;  %v1428_v29 = vpop.xlane.xlu1 %1427  ;;  %v1595_v30 = vpack.c.bf16 %v1537_v46, %v1535_v40  ;;  %v3622_v40 = vld [vmem:[#allocation22_spill] sm:$0xff] }
 0x40c   : > { %v3395_v1 = vpop.eup %2176  ;;  %2192 = vpow2.f32 %v1395_v10 }
 0x40d   : > { %v1483_v60 = vadd.f32 %v3395_v1, %v3393_v55  ;;  %v2179_v18 = vpop.eup %2178  ;;  %2194 = vpow2.f32 %v1397_v2  ;;  %1639 = vmatprep.subr.bf16.mxu0 %v1596_v12 }
 0x40e   : > { %v3399_v33 = vpop.eup %2180  ;;  %2196 = vrcp.f32 %v1428_v29  ;;  %1640 = vmatpush1.bf16.xpose.msra.mxu0 %v1595_v30  ;;  %v1540_v4 = vmul.f32 %v2179_v18, %v3201_v9  ;;  %v1539_v45 = vmul.f32 %v2179_v18, %v3199_v15 }
 0x40f   : > { %1484 = vadd.xlane.f32.xlu0 %v1483_v60  ;;  %v3401_v49 = vpop.eup %2182  ;;  %v1431_v39 = vpop.xlane.xlu0 %1430 }
 0x410   : > { %v2185_v5 = vpop.eup %2184  ;;  %v1486_v36 = vadd.f32 %v3401_v49, %v3399_v33  ;;  %2198 = vrcp.f32 %v1431_v39 }
 0x411   : > { %v1542_v27 = vmul.f32 %v2185_v5, %v3215_v26  ;;  %v1541_v62 = vmul.f32 %v2185_v5, %v3211_v57 }
 0x412   : > { %1487 = vadd.xlane.f32.xlu1 %v1486_v36  ;;  %v1434_v7 = vpop.xlane.xlu1 %1433 }
 0x413   : > { %v3409_v25 = vpop.eup %2186  ;;  %2200 = vrcp.f32 %v1434_v7  ;;  %v1598_v50 = vpack.c.bf16 %v1542_v27, %v1540_v4  ;;  %v1597_v32 = vpack.c.bf16 %v1541_v62, %v1539_v45 }
 0x414   : > { %v3411_v34 = vpop.eup %2188 }
 0x415   : > { %v1489_v42 = vadd.f32 %v3411_v34, %v3409_v25  ;;  %v2191_v9 = vpop.eup %2190  ;;  %1641 = vmatprep.subr.bf16.mxu0 %v1598_v50 }
 0x416   : > { %v3415_v16 = vpop.eup %2192  ;;  %1642 = vmatpush1.bf16.xpose.msra.mxu0 %v1597_v32  ;;  %v1544_v23 = vmul.f32 %v2191_v9, %v3619_v53  ;;  %v1543_v35 = vmul.f32 %v2191_v9, %v3621_v54 }
 0x417   : > { %1490 = vadd.xlane.f32.xlu0 %v1489_v42  ;;  %v3417_v15 = vpop.eup %2194  ;;  %v1437_v57 = vpop.xlane.xlu0 %1436 }
 0x418   : > { %v2197_v26 = vpop.eup %2196  ;;  %v1492_v52 = vadd.f32 %v3417_v15, %v3415_v16  ;;  %2202 = vrcp.f32 %v1437_v57 }
 0x419   : > { %v1546_v48 = vmul.f32 %v2197_v26, %v3620_v22  ;;  %v1545_v46 = vmul.f32 %v2197_v26, %v3622_v40 }
 0x41a   : > { %1493 = vadd.xlane.f32.xlu1 %v1492_v52  ;;  %v1440_v10 = vpop.xlane.xlu1 %1439  ;;  %v2199_v2 = vpop.eup %2198 }
 0x41b   : > { %2204 = vrcp.f32 %v1440_v10  ;;  %v1600_v12 = vpack.c.bf16 %v1546_v48, %v1544_v23  ;;  %v1599_v29 = vpack.c.bf16 %v1545_v46, %v1543_v35  ;;  %v1548_v60 = vmul.f32 %v2199_v2, %v3239_v20  ;;  %v3623_v46 = vld [vmem:[#allocation26_spill] sm:$0xff] }
 0x41c   : > { %v1547_v27 = vmul.f32 %v2199_v2, %v3237_v8  ;;  %v3624_v2 = vld [vmem:[#allocation25_spill] sm:$0xff] }
 0x41d   : > { %v2201_v30 = vpop.eup %2200  ;;  %1643 = vmatprep.subr.bf16.mxu0 %v1600_v12 }
 0x41e   : > { %1644 = vmatpush1.bf16.xpose.msra.mxu0 %v1599_v29  ;;  %v1550_v18 = vmul.f32 %v2201_v30, %v3247_v3  ;;  %v1549_v36 = vmul.f32 %v2201_v30, %v3241_v56  ;;  %v438_v56 = vld [vmem:[#allocation10 + $0x8] sm:$0xf]  ;;  %v3625_v29 = vld [vmem:[#allocation24_spill] sm:$0xff] }
 0x41f   : > { %v1443_v39 = vpop.xlane.xlu0 %1442 }
 0x420   : > { %v1602_v5 = vpack.c.bf16 %v1550_v18, %v1548_v60  ;;  %2206 = vrcp.f32 %v1443_v39  ;;  %v1601_v62 = vpack.c.bf16 %v1549_v36, %v1547_v27 }
 0x422   : > { %1645 = vmatprep.subr.bf16.mxu0 %v1602_v5  ;;  %v1446_v4 = vpop.xlane.xlu1 %1445  ;;  %v2203_v45 = vpop.eup %2202 }
 0x423   : > { %2208 = vrcp.f32 %v1446_v4  ;;  %v1552_v50 = vmul.f32 %v2203_v45, %v3255_v6  ;;  %v1551_v57 = vmul.f32 %v2203_v45, %v3253_v37 }
 0x425   : > { %v2205_v7 = vpop.eup %2204 }
 0x426   : > { %1646 = vmatpush1.bf16.xpose.msra.mxu0 %v1601_v62  ;;  %v1554_v20 = vmul.f32 %v2205_v7, %v3263_v63  ;;  %v1553_v42 = vmul.f32 %v2205_v7, %v3257_v17 }
 0x427   : > { %v1449_v32 = vpop.xlane.xlu0 %1448 }
 0x428   : > { %v1604_v3 = vpack.c.bf16 %v1554_v20, %v1552_v50  ;;  %2210 = vrcp.f32 %v1449_v32  ;;  %v1603_v26 = vpack.c.bf16 %v1553_v42, %v1551_v57  ;;  %v3626_v32 = vld [vmem:[#allocation29_spill] sm:$0xff] }
 0x42a   : > { %1647 = vmatprep.subr.bf16.mxu0 %v1604_v3  ;;  %v1452_v9 = vpop.xlane.xlu1 %1451  ;;  %v2207_v8 = vpop.eup %2206 }
 0x42b   : > { %2212 = vrcp.f32 %v1452_v9  ;;  %v1556_v6 = vmul.f32 %v2207_v8, %v3271_v58  ;;  %v1555_v48 = vmul.f32 %v2207_v8, %v3269_v24  ;;  %v3628_v9 = vld [vmem:[#allocation27_spill] sm:$0xff] }
 0x42d   : > { %441 = vperm.xlu0 %2049, %v438_v56   ;;  %v2209_v52 = vpop.eup %2208 }
 0x42e   : > { %1648 = vmatpush1.bf16.xpose.msra.mxu0 %v1603_v26  ;;  %v1558_v63 = vmul.f32 %v2209_v52, %v3279_v41  ;;  %v1557_v17 = vmul.f32 %v2209_v52, %v3273_v59  ;;  %v3629_v26 = vld [vmem:[#allocation31_spill] sm:$0xff] }
 0x42f   : > { %v1455_v53 = vpop.xlane.xlu0 %1454 }
 0x430   : > { %v1606_v23 = vpack.c.bf16 %v1558_v63, %v1556_v6  ;;  %2214 = vrcp.f32 %v1455_v53  ;;  %v1605_v54 = vpack.c.bf16 %v1557_v17, %v1555_v48  ;;  %v3630_v6 = vld [vmem:[#allocation33_spill] sm:$0xff]  ;;  %v3631_v53 = vld [vmem:[#allocation32_spill] sm:$0xff] }
 0x432   : > { %1649 = vmatprep.subr.bf16.mxu0 %v1606_v23  ;;  %v1458_v22 = vpop.xlane.xlu1 %1457  ;;  %v2211_v37 = vpop.eup %2210  ;;  %v3632_v23 = vld [vmem:[#allocation30_spill] sm:$0xff] }
 0x433   : > { %2216 = vrcp.f32 %v1458_v22  ;;  %v1560_v40 = vmul.f32 %v2211_v37, %v3287_v0  ;;  %v1559_v30 = vmul.f32 %v2211_v37, %v3625_v29 }
 0x435   : > { %v2213_v35 = vpop.eup %2212 }
 0x436   : > { %1650 = vmatpush1.bf16.xpose.msra.mxu0 %v1605_v54  ;;  %v1562_v58 = vmul.f32 %v2213_v35, %v3623_v46  ;;  %v1561_v12 = vmul.f32 %v2213_v35, %v3624_v2 }
 0x437   : > { %v1461_v10 = vpop.xlane.xlu0 %1460 }
 0x438   : > { %2218 = vrcp.f32 %v1461_v10  ;;  %v1608_v41 = vpack.c.bf16 %v1562_v58, %v1560_v40  ;;  %v1607_v60 = vpack.c.bf16 %v1561_v12, %v1559_v30 }
 0x439   : > { %v1464_v59 = vpop.xlane.xlu1 %1463 }
 0x43a   : > { %1651 = vmatprep.subr.bf16.mxu0 %v1608_v41  ;;  %2220 = vrcp.f32 %v1464_v59  ;;  %v2215_v24 = vpop.eup %2214 }
 0x43b   : > { %v1564_v39 = vmul.f32 %v2215_v24, %v3303_v61  ;;  %v1563_v62 = vmul.f32 %v2215_v24, %v3301_v43 }
 0x43d   : > { %v2217_v18 = vpop.eup %2216 }
 0x43e   : > { %1652 = vmatpush1.bf16.xpose.msra.mxu0 %v1607_v60  ;;  %v1566_v0 = vmul.f32 %v2217_v18, %v3311_v11  ;;  %v1565_v4 = vmul.f32 %v2217_v18, %v3305_v19  ;;  %v3627_v11 = vld [vmem:[#allocation28_spill] sm:$0xff] }
 0x43f   : > { %v1467_v5 = vpop.xlane.xlu0 %1466 }
 0x440   : > { %2222 = vrcp.f32 %v1467_v5  ;;  %v1610_v36 = vpack.c.bf16 %v1566_v0, %v1564_v39  ;;  %v1609_v50 = vpack.c.bf16 %v1565_v4, %v1563_v62  ;;  %v3633_v62 = vld [vmem:[#allocation18_spill] sm:$0xff] }
 0x441   : > { %v1470_v27 = vpop.xlane.xlu1 %1469 }
 0x442   : > { %v2219_v45 = vpop.eup %2218  ;;  %1653 = vmatprep.subr.bf16.mxu0 %v1610_v36  ;;  %2224 = vrcp.f32 %v1470_v27 }
 0x443   : > { %v1568_v20 = vmul.f32 %v2219_v45, %v3319_v28  ;;  %v1567_v19 = vmul.f32 %v2219_v45, %v3628_v9 }
 0x444   : > { %v2221_v7 = vpop.eup %2220 }
 0x445   : > { %v1570_v3 = vmul.f32 %v2221_v7, %v3626_v32  ;;  %v1569_v42 = vmul.f32 %v2221_v7, %v3627_v11  ;;  %v3634_v7 = vld [vmem:[#allocation19_spill] sm:$0xff] }
 0x446   : > { %1654 = vmatpush1.bf16.xpose.msra.mxu0 %v1609_v50 }
 0x447   : > { %v1612_v61 = vpack.c.bf16 %v1570_v3, %v1568_v20  ;;  %v1611_v8 = vpack.c.bf16 %v1569_v42, %v1567_v19 }
 0x449   : > { %1655 = vmatprep.subr.bf16.mxu0 %v1612_v61 }
 0x44a   : > { %v2223_v56 = vpop.eup %2222 }
 0x44b   : > { %v1572_v52 = vmul.f32 %v2223_v56, %v3629_v26  ;;  %v1571_v17 = vmul.f32 %v2223_v56, %v3632_v23 }
 0x44c   : > { %v2225_v57 = vpop.eup %2224 }
 0x44d   : > { %v1574_v43 = vmul.f32 %v2225_v57, %v3630_v6  ;;  %v1573_v28 = vmul.f32 %v2225_v57, %v3631_v53 }
 0x44e   : > { %1656 = vmatpush1.bf16.xpose.msra.mxu0 %v1611_v8 }
 0x44f   : > { %v1614_v63 = vpack.c.bf16 %v1574_v43, %v1572_v52  ;;  %v1613_v22 = vpack.c.bf16 %v1573_v28, %v1571_v17 }
 0x451   : > { %1657 = vmatprep.subr.bf16.mxu0 %v1614_v63 }
 0x456   : > { %1658 = vmatpush1.bf16.xpose.msra.mxu0 %v1613_v22 }
 0x48b   : > { %v1473_v48 = vpop.xlane.xlu0 %1472 }
 0x48c   : > { %2226 = vrcp.f32 %v1473_v48 }
 0x48d   : > { %v1476_v37 = vpop.xlane.xlu1 %1475 }
 0x48e   : > { %2228 = vrcp.f32 %v1476_v37 }
 0x493   : > { %v1479_v54 = vpop.xlane.xlu0 %1478 }
 0x494   : > { %2230 = vrcp.f32 %v1479_v54 }
 0x496   : > { %v2227_v35 = vpop.eup %2226 }
 0x497   : > { %v1482_v40 = vpop.xlane.xlu1 %1481  ;;  %v1576_v58 = vmul.f32 %v2227_v35, %v3355_v47  ;;  %v1575_v41 = vmul.f32 %v2227_v35, %v3353_v51 }
 0x498   : > { %v2229_v46 = vpop.eup %2228  ;;  %2232 = vrcp.f32 %v1482_v40 }
 0x499   : > { %v1578_v10 = vmul.f32 %v2229_v46, %v3363_v13  ;;  %v1577_v2 = vmul.f32 %v2229_v46, %v3357_v38 }
 0x49b   : > { %v1616_v59 = vpack.c.bf16 %v1578_v10, %v1576_v58  ;;  %v1615_v29 = vpack.c.bf16 %v1577_v2, %v1575_v41 }
 0x49c   : > { %v1485_v12 = vpop.xlane.xlu0 %1484 }
 0x49d   : > { %1659 = vmatprep.subr.bf16.mxu0 %v1616_v59  ;;  %2234 = vrcp.f32 %v1485_v12 }
 0x49e   : > { %1660 = vmatpush1.bf16.xpose.msra.mxu0 %v1615_v29  ;;  %v2231_v24 = vpop.eup %2230 }
 0x49f   : > { %v1488_v30 = vpop.xlane.xlu1 %1487  ;;  %v1580_v39 = vmul.f32 %v2231_v24, %v3375_v44  ;;  %v1579_v13 = vmul.f32 %v2231_v24, %v3373_v31 }
 0x4a0   : > { %2236 = vrcp.f32 %v1488_v30 }
 0x4a2   : > { %v2233_v60 = vpop.eup %2232 }
 0x4a3   : > { %v1582_v47 = vmul.f32 %v2233_v60, %v3383_v21  ;;  %v1581_v51 = vmul.f32 %v2233_v60, %v3381_v14 }
 0x4a4   : > { %v1491_v18 = vpop.xlane.xlu0 %1490 }
 0x4a5   : > { %v1618_v38 = vpack.c.bf16 %v1582_v47, %v1580_v39  ;;  %v1617_v0 = vpack.c.bf16 %v1581_v51, %v1579_v13  ;;  %2238 = vrcp.f32 %v1491_v18 }
 0x4a7   : > { %1661 = vmatprep.subr.bf16.mxu0 %v1618_v38  ;;  %v1494_v5 = vpop.xlane.xlu1 %1493  ;;  %v2235_v36 = vpop.eup %2234 }
 0x4a8   : > { %2240 = vrcp.f32 %v1494_v5  ;;  %1662 = vmatpush1.bf16.xpose.msra.mxu0 %v1617_v0  ;;  %v1584_v45 = vmul.f32 %v2235_v36, %v3395_v1  ;;  %v1583_v21 = vmul.f32 %v2235_v36, %v3393_v55 }
 0x4aa   : > { %v2237_v4 = vpop.eup %2236 }
 0x4ab   : > { %v1586_v44 = vmul.f32 %v2237_v4, %v3401_v49  ;;  %v1585_v31 = vmul.f32 %v2237_v4, %v3399_v33 }
 0x4ac   : > { %v442_v27 = vpop.permute.xlu0 %441 }
 0x4ad   : > { %v482_v14 = vadd.f32 %v3633_v62, %v442_v27  ;;  %v484_v50 = vadd.f32 %v3634_v7, %v442_v27  ;;  %v1620_v20 = vpack.c.bf16 %v1586_v44, %v1584_v45  ;;  %v1619_v32 = vpack.c.bf16 %v1585_v31, %v1583_v21 }
 0x4af   : > { %v1839_v3 = vpack.c.bf16 %v484_v50, %v482_v14  ;;  %1663 = vmatprep.subr.bf16.mxu0 %v1620_v20  ;;  %v2239_v61 = vpop.eup %2238 }
 0x4b0   : > { %1664 = vmatpush1.bf16.xpose.msra.mxu0 %v1619_v32  ;;  %v1588_v49 = vmul.f32 %v2239_v61, %v3411_v34  ;;  %v1587_v33 = vmul.f32 %v2239_v61, %v3409_v25 }
 0x4b1   : > { %1840 = vst.sshfl [vmem:[#allocation4] sm:$0x33 pattern:$0x76325410] %v1839_v3 }
 0x4b2   : > { %v2241_v1 = vpop.eup %2240 }
 0x4b3   : > { %v1590_v55 = vmul.f32 %v2241_v1, %v3417_v15  ;;  %v1589_v11 = vmul.f32 %v2241_v1, %v3415_v16 }
 0x4b5   : > { %v1622_v42 = vpack.c.bf16 %v1590_v55, %v1588_v49  ;;  %v1621_v56 = vpack.c.bf16 %v1589_v11, %v1587_v33 }
 0x4b7   : > { %1665 = vmatprep.subr.bf16.mxu0 %v1622_v42 }
 0x4b8   : > { %v1879_v9 = vld.sshfl [vmem:[#allocation4] sm:$0x33 pattern:$0x76325410]  ;;  %1666 = vmatpush1.bf16.xpose.msra.mxu0 %v1621_v56 }
 0x4b9   : > { %v1632_v19 = vcombine.high %v1879_v9, %v1879_v9 }
 0x4bb   : > { %1667 = vmatprep.mubr.bf16.mxu0 %v1632_v19 }
 0x4bf   : > { %1668 = vmatmul.mubr.bf16.vlgmr.msra.gmra.mrb[68].mxu0 %v1879_v9 }
 0x592   : > { %v1669_v34 = vpop.f32.mrb[68].mxu0 }
 0x593   : > { %v1671_v15 = vpop.f32.mrb[69].mxu0 }
 0x594   : > { %v1678_v57 = vcombine.low %v1669_v34, %v1671_v15  ;;  %v1673_v25 = vpop.f32.mrb[70].mxu0 }
 0x595   : > { %v1674_v16 = vpop.f32.mrb[71].mxu0 }
 0x596   : > { %1680 = vst [vmem:[%s277_s27] sm:$0xff] %v1678_v57 }
 0x597   : > { %2369 = shalt.err (!%p2366_p0)
}
 0x598   : > { %s2370_s14 = scalar_lea.hbm %s3476_s22, 128  ;;  %s2374_s12 = scalar_lea.hbm %s3529_s4, 256 }
 0x599   : > { %p2371_p4 = scmp.ne.s32.totalorder %s3476_s22, %s2370_s14  ;;  %p2375_p1 = scmp.lt.u32.totalorder %s3476_s22, %s3529_s4 }
 0x59a   : > { %p2376_p12 = scmp.lt.u32.totalorder %s2374_s12, %s2370_s14  ;;  %p2378_p7 = scmp.lt.u32.totalorder %s2370_s14, %s3476_s22 }
 0x59b   : > { %p2372_p8 = pnand %p2371_p4, %p2637_p3 }
 0x59c   : > { %p2377_p13 = por %p2376_p12, %p2375_p1 }
 0x59d   : > { %p2373_p2 = pneg %p2372_p8 }
 0x59e   : > { %p2379_p6 = por %p2378_p7, %p2377_p13 }
 0x5a0   : > { %p2380_p10 = pnand %p2379_p6, %p2373_p2 }
 0x5a2   : > { %2383 = shalt.err (!%p2380_p10)
}
 0x5a3   : > { %1965 = dma.vmem_to_hbm [thread:$0]  (%p2637_p3), %s3478_s21, 128, %s3476_s22, %s1682_s30  }
 0x5a4 PF: > { %s1710_s23 = sand.u32 1, %s2426_s15   ;;  %p3635_p11 = scmp.ne.s32.totalorder %s3565_s26, 0 }
 0x5a5   : > { %p3636_p5 = scmp.ge.s32.totalorder %s2446_s20, 2  ;;  %s1711_s25 = scalar_lea.sflag [#allocation7], %s1710_s23 }
 0x5a7   : > { %p1982_p9 = pnand %p3636_p5, %p3635_p11 }
 0x5a9   : > { %2421 = dma.done.wait (!%p1982_p9), %s1711_s25, 128  }
 0x5aa   : > { %2423 = vsyncadd (!%p1982_p9), %s1711_s25, 4294967168  ;;  %s22_s20 = sadd.s32 1, %s2446_s20   ;;  %s3637_s15 = smov %s2430_s16 }
 0x5ab   : > { %p19_p0 = scmp.ge.s32.totalorder %s22_s20, 4   ;;  %s3638_s16 = smov %s2434_s17 }
 0x5ac   : > { %s3639_s17 = smov %s2646_s10  ;;  %s3640_s18 = smov %s2442_s19 }
 0x5ad   : > { %s3641_s19 = smov %s3643_s1  ;;  %21 = sbr.rel (!%p19_p0) target bundleno = 10 (0xa), region = 103 }
 0x5b4   :  { %1716 = vsyncpa [#allocation6], 1 }
 0x5b5   :  { %1718 = vsyncpa [#allocation6 + $0x1], 1 }
 0x5b6   :  { %1719 = vsyncpa [#allocation9], 1 }
 0x5b7   :  { %1720 = vsyncpa [#allocation12], 1 }
 0x5b8   :  { %1721 = vsyncpa [#allocation7], 1 }
 0x5b9   :  { %1723 = vsyncpa [#allocation7 + $0x1], 1 }

</bundles_post_ra>
